<compile_context>
chip_gen: v7x
topology: tpu7x:2x2x1
jax: 0.10.0
libtpu: 0.0.40
codegen_flags: <defaults>
</compile_context>

<pallas_src>
import jax
import jax.numpy as jnp
from jax.experimental import pallas as pl
from jax.experimental.pallas import tpu as pltpu

BN_EPS = 1e-5


def domain_classifier_kernel(
    x_ref,                      # (B, 1024) f32, VMEM
    w1_ref, w2_ref, w3_ref, w4_ref,   # (in, 512) bf16, VMEM
    w5_ref,                     # (1, 512) f32, VMEM (PyTorch layout, no padding)
    gamma_ref, beta_ref,        # (4, 512) f32, VMEM
    alpha_ref,                  # (4,) f32, SMEM  (PReLU per-layer scalar)
    b5_ref,                     # (1,) f32, SMEM
    o_ref,                      # (B, 1) f32, VMEM
):
    """Whole forward pass on one VMEM-resident batch tile."""

    def linear_bn_prelu(h, w_ref, layer_idx):
        # Linear (MXU, bf16 inputs, f32 accumulation). Bias is omitted:
        # BatchNorm's mean subtraction cancels it exactly.
        z = jnp.dot(h.astype(jnp.bfloat16), w_ref[...],
                    preferred_element_type=jnp.float32)        # (B, 512) f32

        # BatchNorm1d, training semantics: biased batch statistics, one pass.
        inv_n = 1.0 / z.shape[0]
        mean = jnp.sum(z, axis=0, keepdims=True) * inv_n       # (1, 512)
        mean_sq = jnp.sum(z * z, axis=0, keepdims=True) * inv_n
        var = mean_sq - mean * mean

        # Folded affine: zn = z * s + t
        s = gamma_ref[layer_idx, :][None, :] * jax.lax.rsqrt(var + BN_EPS)
        t = beta_ref[layer_idx, :][None, :] - mean * s
        zn = z * s + t

        # PReLU with a single shared parameter per layer.
        alpha = alpha_ref[layer_idx]                            # scalar (SMEM)
        return jnp.where(zn >= 0.0, zn, alpha * zn)

    h = x_ref[...].astype(jnp.float32)                          # (B, 1024)
    h = linear_bn_prelu(h, w1_ref, 0)
    h = linear_bn_prelu(h, w2_ref, 1)
    h = linear_bn_prelu(h, w3_ref, 2)
    h = linear_bn_prelu(h, w4_ref, 3)

    # Final Linear(512 -> 1): VPU multiply + lane reduction (avoids an N=1
    # MXU matmul that would use 1/256 of the array).
    out = jnp.sum(h * w5_ref[...], axis=-1, keepdims=True) + b5_ref[0]
    o_ref[...] = out.astype(o_ref.dtype)


def domain_classifier_forward(x, params):
    """x: any shape whose trailing elements flatten to (-1, 1024)."""
    x2 = x.reshape(-1, 1024).astype(jnp.float32)
    B = x2.shape[0]
    assert B >= 2, "training-mode BatchNorm needs batch size >= 2"

    vmem = pl.BlockSpec(memory_space=pltpu.MemorySpace.VMEM)
    smem = pl.BlockSpec(memory_space=pltpu.MemorySpace.SMEM)

    args = (
        x2,
        params["w1"], params["w2"], params["w3"], params["w4"],
        params["w5"],
        params["bn_gamma"], params["bn_beta"],
        params["prelu_alpha"],
        params["b5"],
    )
    in_specs = [vmem] * 8 + [smem, smem]

    return pl.pallas_call(
        domain_classifier_kernel,
        out_shape=jax.ShapeDtypeStruct((B, 1), jnp.float32),
        in_specs=in_specs,
        out_specs=vmem,
        compiler_params=pltpu.CompilerParams(vmem_limit_bytes=32 << 20),
    )(*args)


def init_params(key):
    """Deterministic parameter init matching the PyTorch __init__.

    Linear weights: kaiming_normal_ (std = sqrt(2 / fan_in)), biases zero.
    BatchNorm1d: gamma=1, beta=0 (training-mode BN, running stats unused).
    PReLU: single alpha = 0.25 per layer.
    w1..w4 are stored transposed (in, out) in bfloat16 so the hot path is the
    MXU-native x @ W; w5 keeps the PyTorch (1, 512) layout in f32. b1..b4 are
    dropped (zero-init AND exactly cancelled by BatchNorm's mean subtraction).
    """
    dims = [(1024, 512), (512, 512), (512, 512), (512, 512)]
    params = {}
    keys = jax.random.split(key, 5)
    for i, ((fan_in, fan_out), k) in enumerate(zip(dims, keys[:4]), start=1):
        std = (2.0 / fan_in) ** 0.5
        w = jax.random.normal(k, (fan_in, fan_out), jnp.float32) * std
        params[f"w{i}"] = w.astype(jnp.bfloat16)
    std5 = (2.0 / 512) ** 0.5
    params["w5"] = jax.random.normal(keys[4], (1, 512), jnp.float32) * std5
    params["b5"] = jnp.zeros((1,), jnp.float32)
    params["bn_gamma"] = jnp.ones((4, 512), jnp.float32)
    params["bn_beta"] = jnp.zeros((4, 512), jnp.float32)
    params["prelu_alpha"] = jnp.full((4,), 0.25, jnp.float32)
    return params


def reference_forward(x, params):
    """Pure-JAX reference mirroring the PyTorch forward (training-mode BN),
    using the same bf16 matmul inputs / f32 accumulation as the kernel."""
    h = x.reshape(-1, 1024).astype(jnp.float32)
    n = h.shape[0]
    for i in range(4):
        z = jnp.dot(h.astype(jnp.bfloat16), params[f"w{i+1}"],
                    preferred_element_type=jnp.float32)
        mean = jnp.sum(z, axis=0, keepdims=True) / n
        mean_sq = jnp.sum(z * z, axis=0, keepdims=True) / n
        var = mean_sq - mean * mean
        s = params["bn_gamma"][i][None, :] * jax.lax.rsqrt(var + BN_EPS)
        t = params["bn_beta"][i][None, :] - mean * s
        zn = z * s + t
        a = params["prelu_alpha"][i]
        h = jnp.where(zn >= 0.0, zn, a * zn)
    return jnp.sum(h * params["w5"], axis=-1, keepdims=True) + params["b5"][0]


if __name__ == "__main__":
    key = jax.random.PRNGKey(0)
    k_param, k_x = jax.random.split(key)

    params = init_params(k_param)
    # Batch of 8 feature vectors; forward views input as (-1, 1024).
    x = jax.random.normal(k_x, (8, 1024), jnp.float32)

    out = domain_classifier_forward(x, params)
    out = jax.block_until_ready(out)

    ref = reference_forward(x, params)
    assert out.shape == (8, 1)
    assert jnp.allclose(out, ref, atol=5e-3, rtol=5e-3), (
        f"max abs err {jnp.max(jnp.abs(out - ref))}"
    )
    print("KERNEL_OK")
</pallas_src>

<mosaic_0001>
module attributes {stable_mosaic.version = 11 : i64} {
  func.func @domain_classifier_kernel(%arg0: memref<8x1024xf32, #tpu.memory_space<vmem>>, %arg1: memref<1024x512xbf16, #tpu.memory_space<vmem>>, %arg2: memref<512x512xbf16, #tpu.memory_space<vmem>>, %arg3: memref<512x512xbf16, #tpu.memory_space<vmem>>, %arg4: memref<512x512xbf16, #tpu.memory_space<vmem>>, %arg5: memref<1x512xf32, #tpu.memory_space<vmem>>, %arg6: memref<4x512xf32, #tpu.memory_space<vmem>>, %arg7: memref<4x512xf32, #tpu.memory_space<vmem>>, %arg8: memref<4xf32, #tpu.memory_space<smem>>, %arg9: memref<1xf32, #tpu.memory_space<smem>>, %arg10: memref<8x1xf32, #tpu.memory_space<vmem>>) attributes {dimension_semantics = [], scalar_prefetch = 0 : i64, scratch_operands = 0 : i64, tpu.core_type = #tpu.core_type<tc>} {
    %c0 = arith.constant 0 : index
    %c0_0 = arith.constant 0 : index
    %0 = vector.load %arg0[%c0, %c0_0] : memref<8x1024xf32, #tpu.memory_space<vmem>>, vector<8x1024xf32>
    %1 = arith.truncf %0 : vector<8x1024xf32> to vector<8x1024xbf16>
    %c0_1 = arith.constant 0 : index
    %c0_2 = arith.constant 0 : index
    %2 = vector.load %arg1[%c0_1, %c0_2] : memref<1024x512xbf16, #tpu.memory_space<vmem>>, vector<1024x512xbf16>
    %cst = arith.constant dense<0.000000e+00> : vector<8x512xf32>
    %3 = tpu.matmul %1, %2, %cst {dimension_numbers = #tpu.dot_dimension_numbers<[1], [0], [0], [1], [0, 0, 1, 1], [], []>} : vector<8x1024xbf16>, vector<1024x512xbf16>, vector<8x512xf32> -> vector<8x512xf32>
    %cst_3 = arith.constant dense<0.000000e+00> : vector<512xf32>
    %4 = vector.multi_reduction <add>, %3, %cst_3 [0] : vector<8x512xf32> to vector<512xf32>
    %5 = vector.shape_cast %4 : vector<512xf32> to vector<1x512xf32>
    %cst_4 = arith.constant 1.250000e-01 : f32
    %6 = vector.broadcast %cst_4 : f32 to vector<1x512xf32>
    %7 = arith.mulf %5, %6 : vector<1x512xf32>
    %8 = arith.mulf %3, %3 : vector<8x512xf32>
    %cst_5 = arith.constant dense<0.000000e+00> : vector<512xf32>
    %9 = vector.multi_reduction <add>, %8, %cst_5 [0] : vector<8x512xf32> to vector<512xf32>
    %10 = vector.shape_cast %9 : vector<512xf32> to vector<1x512xf32>
    %cst_6 = arith.constant 1.250000e-01 : f32
    %11 = vector.broadcast %cst_6 : f32 to vector<1x512xf32>
    %12 = arith.mulf %10, %11 : vector<1x512xf32>
    %13 = arith.mulf %7, %7 : vector<1x512xf32>
    %14 = arith.subf %12, %13 : vector<1x512xf32>
    %c0_7 = arith.constant 0 : index
    %c0_8 = arith.constant 0 : index
    %15 = vector.load %arg6[%c0_7, %c0_8] : memref<4x512xf32, #tpu.memory_space<vmem>>, vector<1x512xf32>
    %16 = vector.shape_cast %15 : vector<1x512xf32> to vector<512xf32>
    %17 = vector.shape_cast %16 : vector<512xf32> to vector<1x512xf32>
    %cst_9 = arith.constant 9.99999974E-6 : f32
    %18 = vector.broadcast %cst_9 : f32 to vector<1x512xf32>
    %19 = arith.addf %14, %18 : vector<1x512xf32>
    %20 = math.rsqrt %19 : vector<1x512xf32>
    %21 = arith.mulf %17, %20 : vector<1x512xf32>
    %c0_10 = arith.constant 0 : index
    %c0_11 = arith.constant 0 : index
    %22 = vector.load %arg7[%c0_10, %c0_11] : memref<4x512xf32, #tpu.memory_space<vmem>>, vector<1x512xf32>
    %23 = vector.shape_cast %22 : vector<1x512xf32> to vector<512xf32>
    %24 = vector.shape_cast %23 : vector<512xf32> to vector<1x512xf32>
    %25 = arith.mulf %7, %21 : vector<1x512xf32>
    %26 = arith.subf %24, %25 : vector<1x512xf32>
    %27 = vector.broadcast %21 : vector<1x512xf32> to vector<8x512xf32>
    %28 = arith.mulf %3, %27 : vector<8x512xf32>
    %29 = vector.broadcast %26 : vector<1x512xf32> to vector<8x512xf32>
    %30 = arith.addf %28, %29 : vector<8x512xf32>
    %c0_12 = arith.constant 0 : index
    %31 = memref.load %arg8[%c0_12] : memref<4xf32, #tpu.memory_space<smem>>
    %cst_13 = arith.constant 0.000000e+00 : f32
    %32 = vector.broadcast %cst_13 : f32 to vector<8x512xf32>
    %33 = arith.cmpf oge, %30, %32 : vector<8x512xf32>
    %34 = vector.broadcast %31 : f32 to vector<8x512xf32>
    %35 = arith.mulf %34, %30 : vector<8x512xf32>
    %36 = arith.select %33, %30, %35 : vector<8x512xi1>, vector<8x512xf32>
    %37 = arith.truncf %36 : vector<8x512xf32> to vector<8x512xbf16>
    %c0_14 = arith.constant 0 : index
    %c0_15 = arith.constant 0 : index
    %38 = vector.load %arg2[%c0_14, %c0_15] : memref<512x512xbf16, #tpu.memory_space<vmem>>, vector<512x512xbf16>
    %cst_16 = arith.constant dense<0.000000e+00> : vector<8x512xf32>
    %39 = tpu.matmul %37, %38, %cst_16 {dimension_numbers = #tpu.dot_dimension_numbers<[1], [0], [0], [1], [0, 0, 1, 1], [], []>} : vector<8x512xbf16>, vector<512x512xbf16>, vector<8x512xf32> -> vector<8x512xf32>
    %cst_17 = arith.constant dense<0.000000e+00> : vector<512xf32>
    %40 = vector.multi_reduction <add>, %39, %cst_17 [0] : vector<8x512xf32> to vector<512xf32>
    %41 = vector.shape_cast %40 : vector<512xf32> to vector<1x512xf32>
    %cst_18 = arith.constant 1.250000e-01 : f32
    %42 = vector.broadcast %cst_18 : f32 to vector<1x512xf32>
    %43 = arith.mulf %41, %42 : vector<1x512xf32>
    %44 = arith.mulf %39, %39 : vector<8x512xf32>
    %cst_19 = arith.constant dense<0.000000e+00> : vector<512xf32>
    %45 = vector.multi_reduction <add>, %44, %cst_19 [0] : vector<8x512xf32> to vector<512xf32>
    %46 = vector.shape_cast %45 : vector<512xf32> to vector<1x512xf32>
    %cst_20 = arith.constant 1.250000e-01 : f32
    %47 = vector.broadcast %cst_20 : f32 to vector<1x512xf32>
    %48 = arith.mulf %46, %47 : vector<1x512xf32>
    %49 = arith.mulf %43, %43 : vector<1x512xf32>
    %50 = arith.subf %48, %49 : vector<1x512xf32>
    %c1 = arith.constant 1 : index
    %c0_21 = arith.constant 0 : index
    %51 = vector.load %arg6[%c1, %c0_21] : memref<4x512xf32, #tpu.memory_space<vmem>>, vector<1x512xf32>
    %52 = vector.shape_cast %51 : vector<1x512xf32> to vector<512xf32>
    %53 = vector.shape_cast %52 : vector<512xf32> to vector<1x512xf32>
    %cst_22 = arith.constant 9.99999974E-6 : f32
    %54 = vector.broadcast %cst_22 : f32 to vector<1x512xf32>
    %55 = arith.addf %50, %54 : vector<1x512xf32>
    %56 = math.rsqrt %55 : vector<1x512xf32>
    %57 = arith.mulf %53, %56 : vector<1x512xf32>
    %c1_23 = arith.constant 1 : index
    %c0_24 = arith.constant 0 : index
    %58 = vector.load %arg7[%c1_23, %c0_24] : memref<4x512xf32, #tpu.memory_space<vmem>>, vector<1x512xf32>
    %59 = vector.shape_cast %58 : vector<1x512xf32> to vector<512xf32>
    %60 = vector.shape_cast %59 : vector<512xf32> to vector<1x512xf32>
    %61 = arith.mulf %43, %57 : vector<1x512xf32>
    %62 = arith.subf %60, %61 : vector<1x512xf32>
    %63 = vector.broadcast %57 : vector<1x512xf32> to vector<8x512xf32>
    %64 = arith.mulf %39, %63 : vector<8x512xf32>
    %65 = vector.broadcast %62 : vector<1x512xf32> to vector<8x512xf32>
    %66 = arith.addf %64, %65 : vector<8x512xf32>
    %c1_25 = arith.constant 1 : index
    %67 = memref.load %arg8[%c1_25] : memref<4xf32, #tpu.memory_space<smem>>
    %cst_26 = arith.constant 0.000000e+00 : f32
    %68 = vector.broadcast %cst_26 : f32 to vector<8x512xf32>
    %69 = arith.cmpf oge, %66, %68 : vector<8x512xf32>
    %70 = vector.broadcast %67 : f32 to vector<8x512xf32>
    %71 = arith.mulf %70, %66 : vector<8x512xf32>
    %72 = arith.select %69, %66, %71 : vector<8x512xi1>, vector<8x512xf32>
    %73 = arith.truncf %72 : vector<8x512xf32> to vector<8x512xbf16>
    %c0_27 = arith.constant 0 : index
    %c0_28 = arith.constant 0 : index
    %74 = vector.load %arg3[%c0_27, %c0_28] : memref<512x512xbf16, #tpu.memory_space<vmem>>, vector<512x512xbf16>
    %cst_29 = arith.constant dense<0.000000e+00> : vector<8x512xf32>
    %75 = tpu.matmul %73, %74, %cst_29 {dimension_numbers = #tpu.dot_dimension_numbers<[1], [0], [0], [1], [0, 0, 1, 1], [], []>} : vector<8x512xbf16>, vector<512x512xbf16>, vector<8x512xf32> -> vector<8x512xf32>
    %cst_30 = arith.constant dense<0.000000e+00> : vector<512xf32>
    %76 = vector.multi_reduction <add>, %75, %cst_30 [0] : vector<8x512xf32> to vector<512xf32>
    %77 = vector.shape_cast %76 : vector<512xf32> to vector<1x512xf32>
    %cst_31 = arith.constant 1.250000e-01 : f32
    %78 = vector.broadcast %cst_31 : f32 to vector<1x512xf32>
    %79 = arith.mulf %77, %78 : vector<1x512xf32>
    %80 = arith.mulf %75, %75 : vector<8x512xf32>
    %cst_32 = arith.constant dense<0.000000e+00> : vector<512xf32>
    %81 = vector.multi_reduction <add>, %80, %cst_32 [0] : vector<8x512xf32> to vector<512xf32>
    %82 = vector.shape_cast %81 : vector<512xf32> to vector<1x512xf32>
    %cst_33 = arith.constant 1.250000e-01 : f32
    %83 = vector.broadcast %cst_33 : f32 to vector<1x512xf32>
    %84 = arith.mulf %82, %83 : vector<1x512xf32>
    %85 = arith.mulf %79, %79 : vector<1x512xf32>
    %86 = arith.subf %84, %85 : vector<1x512xf32>
    %c2 = arith.constant 2 : index
    %c0_34 = arith.constant 0 : index
    %87 = vector.load %arg6[%c2, %c0_34] : memref<4x512xf32, #tpu.memory_space<vmem>>, vector<1x512xf32>
    %88 = vector.shape_cast %87 : vector<1x512xf32> to vector<512xf32>
    %89 = vector.shape_cast %88 : vector<512xf32> to vector<1x512xf32>
    %cst_35 = arith.constant 9.99999974E-6 : f32
    %90 = vector.broadcast %cst_35 : f32 to vector<1x512xf32>
    %91 = arith.addf %86, %90 : vector<1x512xf32>
    %92 = math.rsqrt %91 : vector<1x512xf32>
    %93 = arith.mulf %89, %92 : vector<1x512xf32>
    %c2_36 = arith.constant 2 : index
    %c0_37 = arith.constant 0 : index
    %94 = vector.load %arg7[%c2_36, %c0_37] : memref<4x512xf32, #tpu.memory_space<vmem>>, vector<1x512xf32>
    %95 = vector.shape_cast %94 : vector<1x512xf32> to vector<512xf32>
    %96 = vector.shape_cast %95 : vector<512xf32> to vector<1x512xf32>
    %97 = arith.mulf %79, %93 : vector<1x512xf32>
    %98 = arith.subf %96, %97 : vector<1x512xf32>
    %99 = vector.broadcast %93 : vector<1x512xf32> to vector<8x512xf32>
    %100 = arith.mulf %75, %99 : vector<8x512xf32>
    %101 = vector.broadcast %98 : vector<1x512xf32> to vector<8x512xf32>
    %102 = arith.addf %100, %101 : vector<8x512xf32>
    %c2_38 = arith.constant 2 : index
    %103 = memref.load %arg8[%c2_38] : memref<4xf32, #tpu.memory_space<smem>>
    %cst_39 = arith.constant 0.000000e+00 : f32
    %104 = vector.broadcast %cst_39 : f32 to vector<8x512xf32>
    %105 = arith.cmpf oge, %102, %104 : vector<8x512xf32>
    %106 = vector.broadcast %103 : f32 to vector<8x512xf32>
    %107 = arith.mulf %106, %102 : vector<8x512xf32>
    %108 = arith.select %105, %102, %107 : vector<8x512xi1>, vector<8x512xf32>
    %109 = arith.truncf %108 : vector<8x512xf32> to vector<8x512xbf16>
    %c0_40 = arith.constant 0 : index
    %c0_41 = arith.constant 0 : index
    %110 = vector.load %arg4[%c0_40, %c0_41] : memref<512x512xbf16, #tpu.memory_space<vmem>>, vector<512x512xbf16>
    %cst_42 = arith.constant dense<0.000000e+00> : vector<8x512xf32>
    %111 = tpu.matmul %109, %110, %cst_42 {dimension_numbers = #tpu.dot_dimension_numbers<[1], [0], [0], [1], [0, 0, 1, 1], [], []>} : vector<8x512xbf16>, vector<512x512xbf16>, vector<8x512xf32> -> vector<8x512xf32>
    %cst_43 = arith.constant dense<0.000000e+00> : vector<512xf32>
    %112 = vector.multi_reduction <add>, %111, %cst_43 [0] : vector<8x512xf32> to vector<512xf32>
    %113 = vector.shape_cast %112 : vector<512xf32> to vector<1x512xf32>
    %cst_44 = arith.constant 1.250000e-01 : f32
    %114 = vector.broadcast %cst_44 : f32 to vector<1x512xf32>
    %115 = arith.mulf %113, %114 : vector<1x512xf32>
    %116 = arith.mulf %111, %111 : vector<8x512xf32>
    %cst_45 = arith.constant dense<0.000000e+00> : vector<512xf32>
    %117 = vector.multi_reduction <add>, %116, %cst_45 [0] : vector<8x512xf32> to vector<512xf32>
    %118 = vector.shape_cast %117 : vector<512xf32> to vector<1x512xf32>
    %cst_46 = arith.constant 1.250000e-01 : f32
    %119 = vector.broadcast %cst_46 : f32 to vector<1x512xf32>
    %120 = arith.mulf %118, %119 : vector<1x512xf32>
    %121 = arith.mulf %115, %115 : vector<1x512xf32>
    %122 = arith.subf %120, %121 : vector<1x512xf32>
    %c3 = arith.constant 3 : index
    %c0_47 = arith.constant 0 : index
    %123 = vector.load %arg6[%c3, %c0_47] : memref<4x512xf32, #tpu.memory_space<vmem>>, vector<1x512xf32>
    %124 = vector.shape_cast %123 : vector<1x512xf32> to vector<512xf32>
    %125 = vector.shape_cast %124 : vector<512xf32> to vector<1x512xf32>
    %cst_48 = arith.constant 9.99999974E-6 : f32
    %126 = vector.broadcast %cst_48 : f32 to vector<1x512xf32>
    %127 = arith.addf %122, %126 : vector<1x512xf32>
    %128 = math.rsqrt %127 : vector<1x512xf32>
    %129 = arith.mulf %125, %128 : vector<1x512xf32>
    %c3_49 = arith.constant 3 : index
    %c0_50 = arith.constant 0 : index
    %130 = vector.load %arg7[%c3_49, %c0_50] : memref<4x512xf32, #tpu.memory_space<vmem>>, vector<1x512xf32>
    %131 = vector.shape_cast %130 : vector<1x512xf32> to vector<512xf32>
    %132 = vector.shape_cast %131 : vector<512xf32> to vector<1x512xf32>
    %133 = arith.mulf %115, %129 : vector<1x512xf32>
    %134 = arith.subf %132, %133 : vector<1x512xf32>
    %135 = vector.broadcast %129 : vector<1x512xf32> to vector<8x512xf32>
    %136 = arith.mulf %111, %135 : vector<8x512xf32>
    %137 = vector.broadcast %134 : vector<1x512xf32> to vector<8x512xf32>
    %138 = arith.addf %136, %137 : vector<8x512xf32>
    %c3_51 = arith.constant 3 : index
    %139 = memref.load %arg8[%c3_51] : memref<4xf32, #tpu.memory_space<smem>>
    %cst_52 = arith.constant 0.000000e+00 : f32
    %140 = vector.broadcast %cst_52 : f32 to vector<8x512xf32>
    %141 = arith.cmpf oge, %138, %140 : vector<8x512xf32>
    %142 = vector.broadcast %139 : f32 to vector<8x512xf32>
    %143 = arith.mulf %142, %138 : vector<8x512xf32>
    %144 = arith.select %141, %138, %143 : vector<8x512xi1>, vector<8x512xf32>
    %c0_53 = arith.constant 0 : index
    %c0_54 = arith.constant 0 : index
    %145 = vector.load %arg5[%c0_53, %c0_54] : memref<1x512xf32, #tpu.memory_space<vmem>>, vector<1x512xf32>
    %146 = vector.broadcast %145 : vector<1x512xf32> to vector<8x512xf32>
    %147 = arith.mulf %144, %146 : vector<8x512xf32>
    %cst_55 = arith.constant dense<0.000000e+00> : vector<8xf32>
    %148 = vector.multi_reduction <add>, %147, %cst_55 [1] : vector<8x512xf32> to vector<8xf32>
    %149 = vector.shape_cast %148 : vector<8xf32> to vector<8x1xf32>
    %c0_56 = arith.constant 0 : index
    %150 = memref.load %arg9[%c0_56] : memref<1xf32, #tpu.memory_space<smem>>
    %151 = vector.broadcast %150 : f32 to vector<8x1xf32>
    %152 = arith.addf %149, %151 : vector<8x1xf32>
    %c0_57 = arith.constant 0 : index
    %c0_58 = arith.constant 0 : index
    %153 = vector.load %arg10[%c0_57, %c0_58] : memref<8x1xf32, #tpu.memory_space<vmem>>, vector<8x1xf32>
    tpu.vector_store %arg10[%c0_57, %c0_58], %152 {strides = array<i32>} : memref<8x1xf32, #tpu.memory_space<vmem>>, vector<8x1xf32>,
    return
  }
}

</mosaic_0001>

<bundles_post_ra>
// kernel: tpu_custom_call.1
= control target key start
LH: loop header
LB: loop body
LE: loop exit
PB: predicated region body
PF: predicated region fallthrough
CT: control target
= control target key end

     0   :  { %16 = vsyncpa [#allocation4], 0  ;;  %s7907_s0 = inlined_call_operand.hbm [shape: f32[8,1024], index: 0, kind: input, shape index: {}]   ;;  %s7908_s1 = inlined_call_operand.hbm [shape: bf16[1024,512], index: 1, kind: input, shape index: {}]   ;;  %s7909_s2 = inlined_call_operand.hbm [shape: bf16[512,512], index: 2, kind: input, shape index: {}]   ;;  %s7910_s3 = inlined_call_operand.hbm [shape: bf16[512,512], index: 3, kind: input, shape index: {}]   ;;  %s7911_s4 = inlined_call_operand.hbm [shape: bf16[512,512], index: 4, kind: input, shape index: {}]   ;;  %s7912_s5 = inlined_call_operand.vmem [shape: f32[1,512], index: 5, kind: input, shape index: {}]   ;;  %s7913_s6 = inlined_call_operand.vmem [shape: f32[4,512], index: 6, kind: input, shape index: {}]   ;;  %s7914_s7 = inlined_call_operand.hbm [shape: f32[4,512], index: 7, kind: input, shape index: {}]   ;;  %s7915_s8 = inlined_call_operand.vmem [shape: f32[4], index: 8, kind: input, shape index: {}]   ;;  %s7916_s9 = inlined_call_operand.<no memory space> [shape: f32[1], index: 9, kind: input, shape index: {}]   ;;  %s7917_s10 = inlined_call_operand.vmem [shape: f32[8,1], index: 10, kind: output, shape index: {}]  }
   0x1   :  { %17 = vsyncpa [#allocation7], 0 }
   0x2   :  { %18 = vsyncpa [#allocation10], 0 }
   0x3   :  { %19 = vsyncpa [#allocation13], 0 }
   0x4   :  { %20 = vsyncpa [#allocation5], 0  ;;  %s7540_s13 = smov [#allocation6]   ;;  %s7386_s17 = scalar_lea.hbm %s7908_s1, 32768 }
   0x5   :  { %s36_s14 = sshll.u32 %s7540_s13, 4  ;;  %p7387_p0 = scmp.ne.s32.totalorder %s7908_s1, %s7386_s17  ;;  %s37_s14 = int_to_ptr.vmem [resolvable:$true] %s36_s14 }
   0x6   :  { %p7390_p1 = scmp.lt.u32.totalorder %s7386_s17, %s7908_s1 }
   0x8   :  { %p7392_p2 = pnand %p7390_p1, %p7387_p0 }
   0xa   :  { %7395 = shalt.err (!%p7392_p2)
}
   0xb   :  { %s7396_s22 = scalar_lea.vmem %s37_s14, 32768  ;;  %p7401_p4 = scmp.lt.s32.totalorder %s37_s14, %s37_s14 }
   0xc   :  { %p7397_p3 = scmp.ne.s32.totalorder %s37_s14, %s7396_s22  ;;  %p7402_p5 = scmp.lt.s32.totalorder %s7396_s22, %s7396_s22 }
   0xe   :  { %p7403_p6 = por %p7402_p5, %p7401_p4 }
  0x10   :  { %p7404_p7 = pnand %p7403_p6, %p7397_p3 }
  0x12   :  { %7407 = shalt.err (!%p7404_p7)
}
  0x13   :  { %s7541_s23 = smov 256   ;;  %s7542_s24 = smov 16  }
  0x14   :  { %42 = dma.hbm_to_vmem [thread:$0]  %s7908_s1, 32768, %s37_s14, [#allocation7], %s7541_s23, %s7541_s23, %s7542_s24  }
  0x15   :  { %s7543_s27 = smov [#allocation9]   ;;  %s7544_s29 = smov [#allocation3]  }
  0x16   :  { %s60_s28 = sshll.u32 %s7543_s27, 4  ;;  %s27_s30 = sshll.u32 %s7544_s29, 4  ;;  %s61_s28 = int_to_ptr.vmem [resolvable:$true] %s60_s28  ;;  %s28_s30 = int_to_ptr.vmem [resolvable:$true] %s27_s30 }
  0x17   :  { %s7408_s13 = scalar_lea.hbm %s7910_s3, 16384 }
  0x18   :  { %p7409_p8 = scmp.ne.s32.totalorder %s7910_s3, %s7408_s13  ;;  %p7412_p9 = scmp.lt.u32.totalorder %s7408_s13, %s7910_s3 }
  0x1a   :  { %p7414_p10 = pnand %p7412_p9, %p7409_p8 }
  0x1c   :  { %7417 = shalt.err (!%p7414_p10)
}
  0x1d   :  { %s7418_s1 = scalar_lea.vmem %s61_s28, 16384  ;;  %p7423_p12 = scmp.lt.s32.totalorder %s61_s28, %s61_s28 }
  0x1e   :  { %p7419_p11 = scmp.ne.s32.totalorder %s61_s28, %s7418_s1  ;;  %p7424_p13 = scmp.lt.s32.totalorder %s7418_s1, %s7418_s1 }
  0x20   :  { %p7425_p0 = por %p7424_p13, %p7423_p12 }
  0x22   :  { %p7426_p1 = pnand %p7425_p0, %p7419_p11 }
  0x24   :  { %7429 = shalt.err (!%p7426_p1)
}
  0x25   :  { %66 = dma.hbm_to_vmem [thread:$0]  %s7910_s3, 16384, %s61_s28, [#allocation10], %s7541_s23, %s7541_s23, %s7542_s24  }
  0x26   :  { %s7430_s22 = scalar_lea.hbm %s7907_s0, 1024 }
  0x27   :  { %p7431_p2 = scmp.ne.s32.totalorder %s7907_s0, %s7430_s22  ;;  %p7434_p3 = scmp.lt.u32.totalorder %s7430_s22, %s7907_s0 }
  0x29   :  { %p7436_p4 = pnand %p7434_p3, %p7431_p2 }
  0x2b   :  { %7439 = shalt.err (!%p7436_p4)
}
  0x2c   :  { %s7440_s11 = scalar_lea.vmem %s28_s30, 1024  ;;  %p7445_p6 = scmp.lt.s32.totalorder %s28_s30, %s28_s30 }
  0x2d   :  { %p7441_p5 = scmp.ne.s32.totalorder %s28_s30, %s7440_s11  ;;  %p7446_p7 = scmp.lt.s32.totalorder %s7440_s11, %s7440_s11 }
  0x2f   :  { %p7447_p8 = por %p7446_p7, %p7445_p6 }
  0x31   :  { %p7448_p9 = pnand %p7447_p8, %p7441_p5 }
  0x33   :  { %7451 = shalt.err (!%p7448_p9)
}
  0x34   :  { %30 = dma.hbm_to_vmem [thread:$0]  %s7907_s0, 1024, %s28_s30, [#allocation4]  }
  0x35   :  { %s7545_s12 = smov [#allocation8]   ;;  %s7546_s15 = smov [#allocation11]  }
  0x36   :  { %s48_s13 = sshll.u32 %s7545_s12, 4  ;;  %s72_s16 = sshll.u32 %s7546_s15, 4  ;;  %s49_s13 = int_to_ptr.vmem [resolvable:$true] %s48_s13  ;;  %s73_s16 = int_to_ptr.vmem [resolvable:$true] %s72_s16 }
  0x37   :  { %s7452_s1 = scalar_lea.hbm %s7909_s2, 16384 }
  0x38   :  { %p7453_p10 = scmp.ne.s32.totalorder %s7909_s2, %s7452_s1  ;;  %p7456_p11 = scmp.lt.u32.totalorder %s7452_s1, %s7909_s2 }
  0x3a   :  { %p7458_p12 = pnand %p7456_p11, %p7453_p10 }
  0x3c   :  { %7461 = shalt.err (!%p7458_p12)
}
  0x3d   :  { %s7462_s0 = scalar_lea.vmem %s49_s13, 16384  ;;  %p7467_p0 = scmp.lt.s32.totalorder %s49_s13, %s49_s13 }
  0x3e   :  { %p7463_p13 = scmp.ne.s32.totalorder %s49_s13, %s7462_s0  ;;  %p7468_p1 = scmp.lt.s32.totalorder %s7462_s0, %s7462_s0 }
  0x40   :  { %p7469_p2 = por %p7468_p1, %p7467_p0 }
  0x42   :  { %p7470_p3 = pnand %p7469_p2, %p7463_p13 }
  0x44   :  { %7473 = shalt.err (!%p7470_p3)
}
  0x45   :  { %54 = dma.hbm_to_vmem [thread:$0]  %s7909_s2, 16384, %s49_s13, [#allocation7], %s7541_s23, %s7541_s23, %s7542_s24  }
  0x46   :  { %s7474_s27 = scalar_lea.hbm %s7911_s4, 16384 }
  0x47   :  { %p7475_p4 = scmp.ne.s32.totalorder %s7911_s4, %s7474_s27  ;;  %p7478_p5 = scmp.lt.u32.totalorder %s7474_s27, %s7911_s4 }
  0x49   :  { %p7480_p6 = pnand %p7478_p5, %p7475_p4 }
  0x4b   :  { %7483 = shalt.err (!%p7480_p6)
}
  0x4c   :  { %s7484_s12 = scalar_lea.vmem %s73_s16, 16384  ;;  %p7489_p8 = scmp.lt.s32.totalorder %s73_s16, %s73_s16 }
  0x4d   :  { %p7485_p7 = scmp.ne.s32.totalorder %s73_s16, %s7484_s12  ;;  %p7490_p9 = scmp.lt.s32.totalorder %s7484_s12, %s7484_s12 }
  0x4f   :  { %p7491_p10 = por %p7490_p9, %p7489_p8 }
  0x51   :  { %p7492_p11 = pnand %p7491_p10, %p7485_p7 }
  0x53   :  { %7495 = shalt.err (!%p7492_p11)
}
  0x54   :  { %78 = dma.hbm_to_vmem [thread:$0]  %s7911_s4, 16384, %s73_s16, [#allocation10], %s7541_s23, %s7541_s23, %s7542_s24  }
  0x55   :  { %s7547_s15 = smov [#allocation12]   ;;  %s99_s14 = sshll.u32 %s7915_s8, 4  ;;  %s100_s14 = int_to_ptr.vmem [resolvable:$true] %s99_s14 }
  0x56   :  { %s89_s17 = sshll.u32 %s7547_s15, 4  ;;  %s7496_s21 = scalar_lea.hbm %s7914_s7, 256  ;;  %s90_s17 = int_to_ptr.vmem [resolvable:$true] %s89_s17 }
  0x57   :  { %p7497_p12 = scmp.ne.s32.totalorder %s7914_s7, %s7496_s21  ;;  %p7500_p13 = scmp.lt.u32.totalorder %s7496_s21, %s7914_s7 }
  0x59   :  { %p7502_p0 = pnand %p7500_p13, %p7497_p12 }
  0x5b   :  { %7505 = shalt.err (!%p7502_p0)
}
  0x5c   :  { %s7506_s4 = scalar_lea.vmem %s90_s17, 256  ;;  %p7511_p2 = scmp.lt.s32.totalorder %s90_s17, %s90_s17 }
  0x5d   :  { %p7507_p1 = scmp.ne.s32.totalorder %s90_s17, %s7506_s4  ;;  %p7512_p3 = scmp.lt.s32.totalorder %s7506_s4, %s7506_s4 }
  0x5f   :  { %p7513_p4 = por %p7512_p3, %p7511_p2 }
  0x61   :  { %p7514_p5 = pnand %p7513_p4, %p7507_p1 }
  0x63   :  { %7517 = shalt.err (!%p7514_p5)
}
  0x64   :  { %92 = dma.hbm_to_vmem [thread:$0]  %s7914_s7, 256, %s90_s17, [#allocation13]  }
  0x65   :  { %s7518_s24 = scalar_lea.vmem %s100_s14, 16  ;;  %p7523_p7 = scmp.lt.s32.totalorder %s100_s14, %s100_s14 }
  0x66   :  { %p7519_p6 = scmp.ne.s32.totalorder %s100_s14, %s7518_s24  ;;  %p7524_p8 = scmp.lt.s32.totalorder %s7518_s24, %s7518_s24 }
  0x68   :  { %p7525_p9 = por %p7524_p8, %p7523_p7 }
  0x6a   :  { %p7526_p10 = pnand %p7525_p9, %p7519_p6 }
  0x6c   :  { %7529 = shalt.err (!%p7526_p10)
}
  0x6d   :  { %s7548_s16 = smov [#allocation14]  }
  0x6e   :  { %102 = dma.vmem_to_smem %s100_s14, 16, %s7548_s16, [#allocation5]  }
  0x6f   :  { %7530 = dma.done.wait [#allocation4], 1024  }
  0x70   :  { %7531 = vsyncadd [#allocation4], 4294966272 }
  0x71   :  { %7532 = dma.done.wait [#allocation7], 49152  }
  0x72   :  { %7533 = vsyncadd [#allocation7], 4294918144 }
  0x73   :  { %7534 = dma.done.wait [#allocation10], 32768  }
  0x74   :  { %7535 = vsyncadd [#allocation10], 4294934528 }
  0x75   :  { %7536 = dma.done.wait [#allocation13], 256  }
  0x76   :  { %7537 = vsyncadd [#allocation13], 4294967040 }
  0x77   :  { %7538 = dma.done.wait [#allocation5], 16  }
  0x78   :  { %7539 = vsyncadd [#allocation5], 4294967280 }
  0x79   :  { %126 = sfence }
  0x7a   :  { %v6394_v0 = vld [vmem:[#allocation6 + $0x4] ss:$16 sps:$4 sm:$0xff]   ;;  %v6396_v1 = vld [vmem:[#allocation6 + $0xc] ss:$16 sps:$4 sm:$0xff]   ;;  %v6398_v2 = vld [vmem:[#allocation6] ss:$16 sps:$4 sm:$0xff]  }
  0x7b   :  { %1679 = vmatprep.subr.bf16.mxu0 %v6394_v0  ;;  %v6399_v3 = vld [vmem:[#allocation6 + $0x8] ss:$16 sps:$4 sm:$0xff]   ;;  %1843 = vmatprep.subr.bf16.mxu1 %v6396_v1  ;;  %v6400_v4 = vld [vmem:[#allocation6 + $0x24] ss:$16 sps:$4 sm:$0xff]   ;;  %v6402_v5 = vld [vmem:[#allocation6 + $0x2c] ss:$16 sps:$4 sm:$0xff]  }
  0x7c   :  { %1680 = vmatpush1.bf16.msra.mxu0 %v6398_v2  ;;  %1844 = vmatpush1.bf16.msra.mxu1 %v6399_v3  ;;  %v6404_v6 = vld [vmem:[#allocation6 + $0x20] ss:$16 sps:$4 sm:$0xff]   ;;  %v6405_v7 = vld [vmem:[#allocation6 + $0x28] ss:$16 sps:$4 sm:$0xff]   ;;  %v6406_v8 = vld [vmem:[#allocation6 + $0x44] ss:$16 sps:$4 sm:$0xff]  }
  0x7d   :  { %1681 = vmatprep.subr.bf16.mxu0 %v6400_v4  ;;  %1845 = vmatprep.subr.bf16.mxu1 %v6402_v5  ;;  %v6408_v9 = vld [vmem:[#allocation6 + $0x4c] ss:$16 sps:$4 sm:$0xff]   ;;  %v6410_v10 = vld [vmem:[#allocation6 + $0x40] ss:$16 sps:$4 sm:$0xff]   ;;  %v6411_v11 = vld [vmem:[#allocation6 + $0x48] ss:$16 sps:$4 sm:$0xff]  }
  0x7e   :  { %v6412_v12 = vld [vmem:[#allocation6 + $0x64] ss:$16 sps:$4 sm:$0xff]   ;;  %v6414_v13 = vld [vmem:[#allocation6 + $0x6c] ss:$16 sps:$4 sm:$0xff]   ;;  %v6416_v14 = vld [vmem:[#allocation6 + $0x60] ss:$16 sps:$4 sm:$0xff]  }
  0x7f   :  { %v6417_v15 = vld [vmem:[#allocation6 + $0x68] ss:$16 sps:$4 sm:$0xff]   ;;  %v6418_v16 = vld [vmem:[#allocation6 + $0x84] ss:$16 sps:$4 sm:$0xff]   ;;  %v6420_v17 = vld [vmem:[#allocation6 + $0x8c] ss:$16 sps:$4 sm:$0xff]  }
  0x80   :  { %1682 = vmatpush1.bf16.msra.mxu0 %v6404_v6  ;;  %1846 = vmatpush1.bf16.msra.mxu1 %v6405_v7  ;;  %v6422_v18 = vld [vmem:[#allocation6 + $0x80] ss:$16 sps:$4 sm:$0xff]   ;;  %v6423_v19 = vld [vmem:[#allocation6 + $0x88] ss:$16 sps:$4 sm:$0xff]   ;;  %v6424_v20 = vld [vmem:[#allocation6 + $0xa4] ss:$16 sps:$4 sm:$0xff]  }
  0x81   :  { %1683 = vmatprep.subr.bf16.mxu0 %v6406_v8  ;;  %1847 = vmatprep.subr.bf16.mxu1 %v6408_v9  ;;  %v6426_v21 = vld [vmem:[#allocation6 + $0xac] ss:$16 sps:$4 sm:$0xff]   ;;  %v6428_v22 = vld [vmem:[#allocation6 + $0xa0] ss:$16 sps:$4 sm:$0xff]   ;;  %v6429_v23 = vld [vmem:[#allocation6 + $0xa8] ss:$16 sps:$4 sm:$0xff]  }
  0x82   :  { %v6430_v24 = vld [vmem:[#allocation6 + $0xc4] ss:$16 sps:$4 sm:$0xff]   ;;  %v6432_v25 = vld [vmem:[#allocation6 + $0xcc] ss:$16 sps:$4 sm:$0xff]   ;;  %v6434_v26 = vld [vmem:[#allocation6 + $0xc0] ss:$16 sps:$4 sm:$0xff]  }
  0x83   :  { %v6435_v27 = vld [vmem:[#allocation6 + $0xc8] ss:$16 sps:$4 sm:$0xff]   ;;  %v6436_v28 = vld [vmem:[#allocation6 + $0xe4] ss:$16 sps:$4 sm:$0xff]   ;;  %v6438_v29 = vld [vmem:[#allocation6 + $0xec] ss:$16 sps:$4 sm:$0xff]  }
  0x84   :  { %1684 = vmatpush1.bf16.msra.mxu0 %v6410_v10  ;;  %1848 = vmatpush1.bf16.msra.mxu1 %v6411_v11  ;;  %v6440_v30 = vld [vmem:[#allocation6 + $0xe0] ss:$16 sps:$4 sm:$0xff]   ;;  %v6441_v31 = vld [vmem:[#allocation6 + $0xe8] ss:$16 sps:$4 sm:$0xff]   ;;  %v6442_v32 = vld [vmem:[#allocation6 + $0x104] ss:$16 sps:$4 sm:$0xff]  }
  0x85   :  { %1685 = vmatprep.subr.bf16.mxu0 %v6412_v12  ;;  %1849 = vmatprep.subr.bf16.mxu1 %v6414_v13  ;;  %v6444_v33 = vld [vmem:[#allocation6 + $0x10c] ss:$16 sps:$4 sm:$0xff]   ;;  %v6446_v34 = vld [vmem:[#allocation6 + $0x100] ss:$16 sps:$4 sm:$0xff]   ;;  %v6447_v35 = vld [vmem:[#allocation6 + $0x108] ss:$16 sps:$4 sm:$0xff]  }
  0x86   :  { %v6448_v36 = vld [vmem:[#allocation6 + $0x124] ss:$16 sps:$4 sm:$0xff]   ;;  %v6450_v37 = vld [vmem:[#allocation6 + $0x12c] ss:$16 sps:$4 sm:$0xff]   ;;  %v6452_v38 = vld [vmem:[#allocation6 + $0x120] ss:$16 sps:$4 sm:$0xff]  }
  0x87   :  { %v6453_v39 = vld [vmem:[#allocation6 + $0x128] ss:$16 sps:$4 sm:$0xff]   ;;  %v6454_v40 = vld [vmem:[#allocation6 + $0x144] ss:$16 sps:$4 sm:$0xff]   ;;  %v6456_v41 = vld [vmem:[#allocation6 + $0x14c] ss:$16 sps:$4 sm:$0xff]  }
  0x88   :  { %1686 = vmatpush1.bf16.msra.mxu0 %v6416_v14  ;;  %1850 = vmatpush1.bf16.msra.mxu1 %v6417_v15  ;;  %v6458_v42 = vld [vmem:[#allocation6 + $0x140] ss:$16 sps:$4 sm:$0xff]   ;;  %v6459_v43 = vld [vmem:[#allocation6 + $0x148] ss:$16 sps:$4 sm:$0xff]   ;;  %v6460_v44 = vld [vmem:[#allocation6 + $0x164] ss:$16 sps:$4 sm:$0xff]  }
  0x89   :  { %1687 = vmatprep.subr.bf16.mxu0 %v6418_v16  ;;  %1851 = vmatprep.subr.bf16.mxu1 %v6420_v17  ;;  %v6462_v45 = vld [vmem:[#allocation6 + $0x16c] ss:$16 sps:$4 sm:$0xff]   ;;  %v6464_v47 = vld [vmem:[#allocation6 + $0x160] ss:$16 sps:$4 sm:$0xff]   ;;  %v6465_v49 = vld [vmem:[#allocation6 + $0x168] ss:$16 sps:$4 sm:$0xff]  }
  0x8a   :  { %v128_v46 = vld [vmem:[#allocation3 + $0x8] sm:$0xff]  ;;  %v6466_v50 = vld [vmem:[#allocation6 + $0x184] ss:$16 sps:$4 sm:$0xff]   ;;  %v6470_v52 = vld [vmem:[#allocation6 + $0x180] ss:$16 sps:$4 sm:$0xff]   ;;  %s2199_s27 = sld [smem:[#allocation14]] }
  0x8b   :  { %v136_v48 = vpack.c.bf16 %v128_v46, %v128_v46  ;;  %v6468_v51 = vld [vmem:[#allocation6 + $0x18c] ss:$16 sps:$4 sm:$0xff]   ;;  %v6471_v53 = vld [vmem:[#allocation6 + $0x188] ss:$16 sps:$4 sm:$0xff]   ;;  %v6472_v54 = vld [vmem:[#allocation6 + $0x1a4] ss:$16 sps:$4 sm:$0xff]  }
  0x8c   :  { %1688 = vmatpush1.bf16.msra.mxu0 %v6422_v18  ;;  %1852 = vmatpush1.bf16.msra.mxu1 %v6423_v19  ;;  %v6474_v55 = vld [vmem:[#allocation6 + $0x1ac] ss:$16 sps:$4 sm:$0xff]   ;;  %v6476_v56 = vld [vmem:[#allocation6 + $0x1a0] ss:$16 sps:$4 sm:$0xff]   ;;  %v6477_v57 = vld [vmem:[#allocation6 + $0x1a8] ss:$16 sps:$4 sm:$0xff]  }
  0x8d   :  { %1689 = vmatprep.subr.bf16.mxu0 %v6424_v20  ;;  %1853 = vmatprep.subr.bf16.mxu1 %v6426_v21  ;;  %v6478_v58 = vld [vmem:[#allocation6 + $0x1c4] ss:$16 sps:$4 sm:$0xff]   ;;  %v6480_v59 = vld [vmem:[#allocation6 + $0x1cc] ss:$16 sps:$4 sm:$0xff]   ;;  %v6482_v60 = vld [vmem:[#allocation6 + $0x1c0] ss:$16 sps:$4 sm:$0xff]  }
  0x8e   :  { %1711 = vmatprep.mubr.bf16.mxu0 %v136_v48  ;;  %1875 = vmatprep.mubr.bf16.mxu1 %v136_v48  ;;  %v6483_v61 = vld [vmem:[#allocation6 + $0x1c8] ss:$16 sps:$4 sm:$0xff]   ;;  %v6484_v62 = vld [vmem:[#allocation6 + $0x1e4] ss:$16 sps:$4 sm:$0xff]   ;;  %v6486_v63 = vld [vmem:[#allocation6 + $0x1ec] ss:$16 sps:$4 sm:$0xff]  }
  0x8f   :  { %v6488_v0 = vld [vmem:[#allocation6 + $0x1e0] ss:$16 sps:$4 sm:$0xff]   ;;  %v6489_v1 = vld [vmem:[#allocation6 + $0x1e8] ss:$16 sps:$4 sm:$0xff]   ;;  %v6492_v3 = vld [vmem:[#allocation6 + $0x204] ss:$16 sps:$4 sm:$0xff]  }
  0x90   :  { %1690 = vmatpush1.bf16.msra.mxu0 %v6428_v22  ;;  %1854 = vmatpush1.bf16.msra.mxu1 %v6429_v23  ;;  %v127_v2 = vld [vmem:[#allocation3] sm:$0xff]  ;;  %v6495_v4 = vld [vmem:[#allocation6 + $0x20c] ss:$16 sps:$4 sm:$0xff]   ;;  %v6493_v7 = vld [vmem:[#allocation6 + $0x208] ss:$16 sps:$4 sm:$0xff]   ;;  %s6075_s3 = sld [smem:[#allocation14 + $0x1]] }
  0x91   :  { %1691 = vmatprep.subr.bf16.mxu0 %v6430_v24  ;;  %1855 = vmatprep.subr.bf16.mxu1 %v6432_v25  ;;  %v135_v5 = vpack.c.bf16 %v127_v2, %v127_v2  ;;  %v6490_v6 = vld [vmem:[#allocation6 + $0x200] ss:$16 sps:$4 sm:$0xff]   ;;  %v6498_v8 = vld [vmem:[#allocation6 + $0x224] ss:$16 sps:$4 sm:$0xff]   ;;  %v6501_v9 = vld [vmem:[#allocation6 + $0x22c] ss:$16 sps:$4 sm:$0xff]  }
  0x92   :  { %v6496_v10 = vld [vmem:[#allocation6 + $0x220] ss:$16 sps:$4 sm:$0xff]   ;;  %v6499_v11 = vld [vmem:[#allocation6 + $0x228] ss:$16 sps:$4 sm:$0xff]   ;;  %v6504_v12 = vld [vmem:[#allocation6 + $0x244] ss:$16 sps:$4 sm:$0xff]  }
  0x93   :  { %v6507_v13 = vld [vmem:[#allocation6 + $0x24c] ss:$16 sps:$4 sm:$0xff]   ;;  %v6502_v14 = vld [vmem:[#allocation6 + $0x240] ss:$16 sps:$4 sm:$0xff]   ;;  %v6505_v15 = vld [vmem:[#allocation6 + $0x248] ss:$16 sps:$4 sm:$0xff]  }
  0x94   :  { %1692 = vmatpush1.bf16.msra.mxu0 %v6434_v26  ;;  %1856 = vmatpush1.bf16.msra.mxu1 %v6435_v27  ;;  %v6510_v16 = vld [vmem:[#allocation6 + $0x264] ss:$16 sps:$4 sm:$0xff]   ;;  %v6513_v17 = vld [vmem:[#allocation6 + $0x26c] ss:$16 sps:$4 sm:$0xff]   ;;  %v6508_v18 = vld [vmem:[#allocation6 + $0x260] ss:$16 sps:$4 sm:$0xff]  }
  0x95   :  { %1693 = vmatprep.subr.bf16.mxu0 %v6436_v28  ;;  %1857 = vmatprep.subr.bf16.mxu1 %v6438_v29  ;;  %v6511_v19 = vld [vmem:[#allocation6 + $0x268] ss:$16 sps:$4 sm:$0xff]   ;;  %v6516_v20 = vld [vmem:[#allocation6 + $0x284] ss:$16 sps:$4 sm:$0xff]   ;;  %v6519_v21 = vld [vmem:[#allocation6 + $0x28c] ss:$16 sps:$4 sm:$0xff]  }
  0x96   :  { %v6514_v22 = vld [vmem:[#allocation6 + $0x280] ss:$16 sps:$4 sm:$0xff]   ;;  %v6517_v23 = vld [vmem:[#allocation6 + $0x288] ss:$16 sps:$4 sm:$0xff]   ;;  %v6522_v24 = vld [vmem:[#allocation6 + $0x2a4] ss:$16 sps:$4 sm:$0xff]  }
  0x97   :  { %v6525_v25 = vld [vmem:[#allocation6 + $0x2ac] ss:$16 sps:$4 sm:$0xff]   ;;  %v6520_v26 = vld [vmem:[#allocation6 + $0x2a0] ss:$16 sps:$4 sm:$0xff]   ;;  %v6523_v27 = vld [vmem:[#allocation6 + $0x2a8] ss:$16 sps:$4 sm:$0xff]  }
  0x98   :  { %1694 = vmatpush1.bf16.msra.mxu0 %v6440_v30  ;;  %1858 = vmatpush1.bf16.msra.mxu1 %v6441_v31  ;;  %v6528_v28 = vld [vmem:[#allocation6 + $0x2c4] ss:$16 sps:$4 sm:$0xff]   ;;  %v6531_v29 = vld [vmem:[#allocation6 + $0x2cc] ss:$16 sps:$4 sm:$0xff]   ;;  %v6526_v31 = vld [vmem:[#allocation6 + $0x2c0] ss:$16 sps:$4 sm:$0xff]  }
  0x99   :  { %1695 = vmatprep.subr.bf16.mxu0 %v6442_v32  ;;  %1859 = vmatprep.subr.bf16.mxu1 %v6444_v33  ;;  %v130_v30 = vld [vmem:[#allocation3 + $0x18] sm:$0xff]  ;;  %v6552_v46 = vld [vmem:[#allocation6 + $0x344] ss:$16 sps:$4 sm:$0xff]   ;;  %v6550_v48 = vld [vmem:[#allocation6 + $0x340] ss:$16 sps:$4 sm:$0xff]   ;;  %s6205_s2 = sld [smem:[#allocation14 + $0x2]] }
  0x9a   :  { %v138_v32 = vpack.c.bf16 %v130_v30, %v130_v30  ;;  %v6529_v33 = vld [vmem:[#allocation6 + $0x2c8] ss:$16 sps:$4 sm:$0xff]   ;;  %v6582_v2 = vld [vmem:[#allocation6 + $0x3e4] ss:$16 sps:$4 sm:$0xff]  }
  0x9b   :  { %v6618_v30 = vld [vmem:[#allocation6 + $0x4a4] ss:$16 sps:$4 sm:$0xff]  }
  0x9c   :  { %1696 = vmatpush1.bf16.msra.mxu0 %v6446_v34  ;;  %1860 = vmatpush1.bf16.msra.mxu1 %v6447_v35  ;;  %v6534_v34 = vld [vmem:[#allocation6 + $0x2e4] ss:$16 sps:$4 sm:$0xff]   ;;  %v6537_v35 = vld [vmem:[#allocation6 + $0x2ec] ss:$16 sps:$4 sm:$0xff]  }
  0x9d   :  { %1697 = vmatprep.subr.bf16.mxu0 %v6448_v36  ;;  %1861 = vmatprep.subr.bf16.mxu1 %v6450_v37  ;;  %v6532_v36 = vld [vmem:[#allocation6 + $0x2e0] ss:$16 sps:$4 sm:$0xff]   ;;  %v6535_v37 = vld [vmem:[#allocation6 + $0x2e8] ss:$16 sps:$4 sm:$0xff]  }
  0xa0   :  { %1698 = vmatpush1.bf16.msra.mxu0 %v6452_v38  ;;  %1862 = vmatpush1.bf16.msra.mxu1 %v6453_v39  ;;  %v6540_v38 = vld [vmem:[#allocation6 + $0x304] ss:$16 sps:$4 sm:$0xff]   ;;  %v6543_v39 = vld [vmem:[#allocation6 + $0x30c] ss:$16 sps:$4 sm:$0xff]  }
  0xa1   :  { %1699 = vmatprep.subr.bf16.mxu0 %v6454_v40  ;;  %1863 = vmatprep.subr.bf16.mxu1 %v6456_v41  ;;  %v6538_v40 = vld [vmem:[#allocation6 + $0x300] ss:$16 sps:$4 sm:$0xff]   ;;  %v6541_v41 = vld [vmem:[#allocation6 + $0x308] ss:$16 sps:$4 sm:$0xff]  }
  0xa4   :  { %1700 = vmatpush1.bf16.msra.mxu0 %v6458_v42  ;;  %1864 = vmatpush1.bf16.msra.mxu1 %v6459_v43  ;;  %v6546_v42 = vld [vmem:[#allocation6 + $0x324] ss:$16 sps:$4 sm:$0xff]   ;;  %v6549_v43 = vld [vmem:[#allocation6 + $0x32c] ss:$16 sps:$4 sm:$0xff]  }
  0xa5   :  { %1701 = vmatprep.subr.bf16.mxu0 %v6460_v44  ;;  %1865 = vmatprep.subr.bf16.mxu1 %v6462_v45  ;;  %v6544_v44 = vld [vmem:[#allocation6 + $0x320] ss:$16 sps:$4 sm:$0xff]   ;;  %v6547_v45 = vld [vmem:[#allocation6 + $0x328] ss:$16 sps:$4 sm:$0xff]  }
  0xa8   :  { %1702 = vmatpush1.bf16.msra.mxu0 %v6464_v47  ;;  %1866 = vmatpush1.bf16.msra.mxu1 %v6465_v49  ;;  %v6555_v47 = vld [vmem:[#allocation6 + $0x34c] ss:$16 sps:$4 sm:$0xff]   ;;  %v6553_v49 = vld [vmem:[#allocation6 + $0x348] ss:$16 sps:$4 sm:$0xff]  }
  0xa9   :  { %1703 = vmatprep.subr.bf16.mxu0 %v6466_v50  ;;  %1867 = vmatprep.subr.bf16.mxu1 %v6468_v51  ;;  %v6558_v50 = vld [vmem:[#allocation6 + $0x364] ss:$16 sps:$4 sm:$0xff]   ;;  %v6561_v51 = vld [vmem:[#allocation6 + $0x36c] ss:$16 sps:$4 sm:$0xff]  }
  0xac   :  { %1704 = vmatpush1.bf16.msra.mxu0 %v6470_v52  ;;  %1868 = vmatpush1.bf16.msra.mxu1 %v6471_v53  ;;  %v6556_v52 = vld [vmem:[#allocation6 + $0x360] ss:$16 sps:$4 sm:$0xff]   ;;  %v6559_v53 = vld [vmem:[#allocation6 + $0x368] ss:$16 sps:$4 sm:$0xff]  }
  0xad   :  { %1705 = vmatprep.subr.bf16.mxu0 %v6472_v54  ;;  %1869 = vmatprep.subr.bf16.mxu1 %v6474_v55  ;;  %v6564_v54 = vld [vmem:[#allocation6 + $0x384] ss:$16 sps:$4 sm:$0xff]   ;;  %v6567_v55 = vld [vmem:[#allocation6 + $0x38c] ss:$16 sps:$4 sm:$0xff]  }
  0xb0   :  { %1706 = vmatpush1.bf16.msra.mxu0 %v6476_v56  ;;  %1870 = vmatpush1.bf16.msra.mxu1 %v6477_v57  ;;  %v6562_v56 = vld [vmem:[#allocation6 + $0x380] ss:$16 sps:$4 sm:$0xff]   ;;  %v6565_v57 = vld [vmem:[#allocation6 + $0x388] ss:$16 sps:$4 sm:$0xff]  }
  0xb1   :  { %1707 = vmatprep.subr.bf16.mxu0 %v6478_v58  ;;  %1871 = vmatprep.subr.bf16.mxu1 %v6480_v59  ;;  %v6570_v58 = vld [vmem:[#allocation6 + $0x3a4] ss:$16 sps:$4 sm:$0xff]   ;;  %v6573_v59 = vld [vmem:[#allocation6 + $0x3ac] ss:$16 sps:$4 sm:$0xff]  }
  0xb4   :  { %1708 = vmatpush1.bf16.msra.mxu0 %v6482_v60  ;;  %1872 = vmatpush1.bf16.msra.mxu1 %v6483_v61  ;;  %v6568_v60 = vld [vmem:[#allocation6 + $0x3a0] ss:$16 sps:$4 sm:$0xff]   ;;  %v6571_v61 = vld [vmem:[#allocation6 + $0x3a8] ss:$16 sps:$4 sm:$0xff]  }
  0xb5   :  { %1709 = vmatprep.subr.bf16.mxu0 %v6484_v62  ;;  %1873 = vmatprep.subr.bf16.mxu1 %v6486_v63  ;;  %v6576_v62 = vld [vmem:[#allocation6 + $0x3c4] ss:$16 sps:$4 sm:$0xff]   ;;  %v6579_v63 = vld [vmem:[#allocation6 + $0x3cc] ss:$16 sps:$4 sm:$0xff]  }
  0xb8   :  { %1710 = vmatpush1.bf16.msra.mxu0 %v6488_v0  ;;  %1874 = vmatpush1.bf16.msra.mxu1 %v6489_v1  ;;  %v6574_v0 = vld [vmem:[#allocation6 + $0x3c0] ss:$16 sps:$4 sm:$0xff]   ;;  %v6577_v1 = vld [vmem:[#allocation6 + $0x3c8] ss:$16 sps:$4 sm:$0xff]  }
  0xb9   :  { %1720 = vmatprep.subr.bf16.mxu0 %v6492_v3  ;;  %1884 = vmatprep.subr.bf16.mxu1 %v6495_v4  ;;  %v6585_v3 = vld [vmem:[#allocation6 + $0x3ec] ss:$16 sps:$4 sm:$0xff]   ;;  %v6580_v4 = vld [vmem:[#allocation6 + $0x3e0] ss:$16 sps:$4 sm:$0xff]  }
  0xbb   :  { %1712 = vmatmul.mubr.bf16.vlgmr.msra.gmra.mrb[0].mxu0 %v135_v5  ;;  %1876 = vmatmul.mubr.bf16.vlgmr.msra.gmra.mrb[0].mxu1 %v135_v5  ;;  %v6583_v5 = vld [vmem:[#allocation6 + $0x3e8] ss:$16 sps:$4 sm:$0xff]  }
  0xbc   :  { %1721 = vmatpush1.bf16.msra.mxu0 %v6490_v6  ;;  %1885 = vmatpush1.bf16.msra.mxu1 %v6493_v7  ;;  %v6588_v6 = vld [vmem:[#allocation6 + $0x404] ss:$16 sps:$4 sm:$0xff]  }
  0xbd   :  { %1722 = vmatprep.subr.bf16.mxu0 %v6498_v8  ;;  %1886 = vmatprep.subr.bf16.mxu1 %v6501_v9  ;;  %v129_v7 = vld [vmem:[#allocation3 + $0x10] sm:$0xff]  ;;  %v6591_v8 = vld [vmem:[#allocation6 + $0x40c] ss:$16 sps:$4 sm:$0xff]  }
  0xbe   :  { %1752 = vmatprep.mubr.bf16.mxu0 %v138_v32  ;;  %1916 = vmatprep.mubr.bf16.mxu1 %v138_v32  ;;  %v6586_v9 = vld [vmem:[#allocation6 + $0x400] ss:$16 sps:$4 sm:$0xff]  }
  0xbf   :  { %v6616_v32 = vld [vmem:[#allocation6 + $0x4a0] ss:$16 sps:$4 sm:$0xff]  }
  0xc0   :  { %1723 = vmatpush1.bf16.msra.mxu0 %v6496_v10  ;;  %1887 = vmatpush1.bf16.msra.mxu1 %v6499_v11  ;;  %v6589_v10 = vld [vmem:[#allocation6 + $0x408] ss:$16 sps:$4 sm:$0xff]   ;;  %v137_v11 = vpack.c.bf16 %v129_v7, %v129_v7  ;;  %v6681_v7 = vld [vmem:[#allocation6 + $0x5ec] ss:$16 sps:$4 sm:$0xff]  }
  0xc1   :  { %1724 = vmatprep.subr.bf16.mxu0 %v6504_v12  ;;  %1888 = vmatprep.subr.bf16.mxu1 %v6507_v13  ;;  %v6594_v12 = vld [vmem:[#allocation6 + $0x424] ss:$16 sps:$4 sm:$0xff]   ;;  %v6597_v13 = vld [vmem:[#allocation6 + $0x42c] ss:$16 sps:$4 sm:$0xff]  }
  0xc4   :  { %1725 = vmatpush1.bf16.msra.mxu0 %v6502_v14  ;;  %1889 = vmatpush1.bf16.msra.mxu1 %v6505_v15  ;;  %v132_v14 = vld [vmem:[#allocation3 + $0x28] sm:$0xff] }
  0xc5   :  { %1726 = vmatprep.subr.bf16.mxu0 %v6510_v16  ;;  %1890 = vmatprep.subr.bf16.mxu1 %v6513_v17  ;;  %v140_v15 = vpack.c.bf16 %v132_v14, %v132_v14  ;;  %v6592_v16 = vld [vmem:[#allocation6 + $0x420] ss:$16 sps:$4 sm:$0xff]   ;;  %v6595_v17 = vld [vmem:[#allocation6 + $0x428] ss:$16 sps:$4 sm:$0xff]  }
  0xc6   :  { %v6682_v14 = vld [vmem:[#allocation6 + $0x600] ss:$16 sps:$4 sm:$0xff]  }
  0xc8   :  { %1727 = vmatpush1.bf16.msra.mxu0 %v6508_v18  ;;  %1891 = vmatpush1.bf16.msra.mxu1 %v6511_v19  ;;  %v6600_v18 = vld [vmem:[#allocation6 + $0x444] ss:$16 sps:$4 sm:$0xff]   ;;  %v6603_v19 = vld [vmem:[#allocation6 + $0x44c] ss:$16 sps:$4 sm:$0xff]  }
  0xc9   :  { %1728 = vmatprep.subr.bf16.mxu0 %v6516_v20  ;;  %1892 = vmatprep.subr.bf16.mxu1 %v6519_v21  ;;  %v6598_v20 = vld [vmem:[#allocation6 + $0x440] ss:$16 sps:$4 sm:$0xff]   ;;  %v6601_v21 = vld [vmem:[#allocation6 + $0x448] ss:$16 sps:$4 sm:$0xff]  }
  0xcc   :  { %1729 = vmatpush1.bf16.msra.mxu0 %v6514_v22  ;;  %1893 = vmatpush1.bf16.msra.mxu1 %v6517_v23  ;;  %v6606_v22 = vld [vmem:[#allocation6 + $0x464] ss:$16 sps:$4 sm:$0xff]   ;;  %v6609_v23 = vld [vmem:[#allocation6 + $0x46c] ss:$16 sps:$4 sm:$0xff]  }
  0xcd   :  { %1730 = vmatprep.subr.bf16.mxu0 %v6522_v24  ;;  %1894 = vmatprep.subr.bf16.mxu1 %v6525_v25  ;;  %v6604_v24 = vld [vmem:[#allocation6 + $0x460] ss:$16 sps:$4 sm:$0xff]   ;;  %v6607_v25 = vld [vmem:[#allocation6 + $0x468] ss:$16 sps:$4 sm:$0xff]  }
  0xd0   :  { %1731 = vmatpush1.bf16.msra.mxu0 %v6520_v26  ;;  %1895 = vmatpush1.bf16.msra.mxu1 %v6523_v27  ;;  %v6612_v26 = vld [vmem:[#allocation6 + $0x484] ss:$16 sps:$4 sm:$0xff]   ;;  %v6615_v27 = vld [vmem:[#allocation6 + $0x48c] ss:$16 sps:$4 sm:$0xff]  }
  0xd1   :  { %1732 = vmatprep.subr.bf16.mxu0 %v6528_v28  ;;  %1896 = vmatprep.subr.bf16.mxu1 %v6531_v29  ;;  %v6610_v28 = vld [vmem:[#allocation6 + $0x480] ss:$16 sps:$4 sm:$0xff]   ;;  %v6613_v29 = vld [vmem:[#allocation6 + $0x488] ss:$16 sps:$4 sm:$0xff]  }
  0xd4   :  { %1733 = vmatpush1.bf16.msra.mxu0 %v6526_v31  ;;  %1897 = vmatpush1.bf16.msra.mxu1 %v6529_v33  ;;  %v6621_v31 = vld [vmem:[#allocation6 + $0x4ac] ss:$16 sps:$4 sm:$0xff]   ;;  %v6619_v33 = vld [vmem:[#allocation6 + $0x4a8] ss:$16 sps:$4 sm:$0xff]  }
  0xd5   :  { %1734 = vmatprep.subr.bf16.mxu0 %v6534_v34  ;;  %1898 = vmatprep.subr.bf16.mxu1 %v6537_v35  ;;  %v6624_v34 = vld [vmem:[#allocation6 + $0x4c4] ss:$16 sps:$4 sm:$0xff]   ;;  %v6627_v35 = vld [vmem:[#allocation6 + $0x4cc] ss:$16 sps:$4 sm:$0xff]  }
  0xd8   :  { %1735 = vmatpush1.bf16.msra.mxu0 %v6532_v36  ;;  %1899 = vmatpush1.bf16.msra.mxu1 %v6535_v37  ;;  %v6622_v36 = vld [vmem:[#allocation6 + $0x4c0] ss:$16 sps:$4 sm:$0xff]   ;;  %v6625_v37 = vld [vmem:[#allocation6 + $0x4c8] ss:$16 sps:$4 sm:$0xff]  }
  0xd9   :  { %1736 = vmatprep.subr.bf16.mxu0 %v6540_v38  ;;  %1900 = vmatprep.subr.bf16.mxu1 %v6543_v39  ;;  %v6630_v38 = vld [vmem:[#allocation6 + $0x4e4] ss:$16 sps:$4 sm:$0xff]   ;;  %v6633_v39 = vld [vmem:[#allocation6 + $0x4ec] ss:$16 sps:$4 sm:$0xff]  }
  0xdc   :  { %1737 = vmatpush1.bf16.msra.mxu0 %v6538_v40  ;;  %1901 = vmatpush1.bf16.msra.mxu1 %v6541_v41  ;;  %v6628_v40 = vld [vmem:[#allocation6 + $0x4e0] ss:$16 sps:$4 sm:$0xff]   ;;  %v6631_v41 = vld [vmem:[#allocation6 + $0x4e8] ss:$16 sps:$4 sm:$0xff]  }
  0xdd   :  { %1738 = vmatprep.subr.bf16.mxu0 %v6546_v42  ;;  %1902 = vmatprep.subr.bf16.mxu1 %v6549_v43  ;;  %v6636_v42 = vld [vmem:[#allocation6 + $0x504] ss:$16 sps:$4 sm:$0xff]   ;;  %v6639_v43 = vld [vmem:[#allocation6 + $0x50c] ss:$16 sps:$4 sm:$0xff]  }
  0xe0   :  { %1739 = vmatpush1.bf16.msra.mxu0 %v6544_v44  ;;  %1903 = vmatpush1.bf16.msra.mxu1 %v6547_v45  ;;  %v6634_v44 = vld [vmem:[#allocation6 + $0x500] ss:$16 sps:$4 sm:$0xff]   ;;  %v6637_v45 = vld [vmem:[#allocation6 + $0x508] ss:$16 sps:$4 sm:$0xff]  }
  0xe1   :  { %1740 = vmatprep.subr.bf16.mxu0 %v6552_v46  ;;  %1904 = vmatprep.subr.bf16.mxu1 %v6555_v47  ;;  %v6642_v46 = vld [vmem:[#allocation6 + $0x524] ss:$16 sps:$4 sm:$0xff]   ;;  %v6645_v47 = vld [vmem:[#allocation6 + $0x52c] ss:$16 sps:$4 sm:$0xff]  }
  0xe4   :  { %1741 = vmatpush1.bf16.msra.mxu0 %v6550_v48  ;;  %1905 = vmatpush1.bf16.msra.mxu1 %v6553_v49  ;;  %v6640_v48 = vld [vmem:[#allocation6 + $0x520] ss:$16 sps:$4 sm:$0xff]   ;;  %v6643_v49 = vld [vmem:[#allocation6 + $0x528] ss:$16 sps:$4 sm:$0xff]  }
  0xe5   :  { %1742 = vmatprep.subr.bf16.mxu0 %v6558_v50  ;;  %1906 = vmatprep.subr.bf16.mxu1 %v6561_v51  ;;  %v6648_v50 = vld [vmem:[#allocation6 + $0x544] ss:$16 sps:$4 sm:$0xff]   ;;  %v6651_v51 = vld [vmem:[#allocation6 + $0x54c] ss:$16 sps:$4 sm:$0xff]  }
  0xe8   :  { %1743 = vmatpush1.bf16.msra.mxu0 %v6556_v52  ;;  %1907 = vmatpush1.bf16.msra.mxu1 %v6559_v53  ;;  %v6646_v52 = vld [vmem:[#allocation6 + $0x540] ss:$16 sps:$4 sm:$0xff]   ;;  %v6649_v53 = vld [vmem:[#allocation6 + $0x548] ss:$16 sps:$4 sm:$0xff]  }
  0xe9   :  { %1744 = vmatprep.subr.bf16.mxu0 %v6564_v54  ;;  %1908 = vmatprep.subr.bf16.mxu1 %v6567_v55  ;;  %v6654_v54 = vld [vmem:[#allocation6 + $0x564] ss:$16 sps:$4 sm:$0xff]   ;;  %v6657_v55 = vld [vmem:[#allocation6 + $0x56c] ss:$16 sps:$4 sm:$0xff]  }
  0xec   :  { %1745 = vmatpush1.bf16.msra.mxu0 %v6562_v56  ;;  %1909 = vmatpush1.bf16.msra.mxu1 %v6565_v57  ;;  %v6652_v56 = vld [vmem:[#allocation6 + $0x560] ss:$16 sps:$4 sm:$0xff]   ;;  %v6655_v57 = vld [vmem:[#allocation6 + $0x568] ss:$16 sps:$4 sm:$0xff]  }
  0xed   :  { %1746 = vmatprep.subr.bf16.mxu0 %v6570_v58  ;;  %1910 = vmatprep.subr.bf16.mxu1 %v6573_v59  ;;  %v6660_v58 = vld [vmem:[#allocation6 + $0x584] ss:$16 sps:$4 sm:$0xff]   ;;  %v6663_v59 = vld [vmem:[#allocation6 + $0x58c] ss:$16 sps:$4 sm:$0xff]  }
  0xf0   :  { %1747 = vmatpush1.bf16.msra.mxu0 %v6568_v60  ;;  %1911 = vmatpush1.bf16.msra.mxu1 %v6571_v61  ;;  %v6658_v60 = vld [vmem:[#allocation6 + $0x580] ss:$16 sps:$4 sm:$0xff]   ;;  %v6661_v61 = vld [vmem:[#allocation6 + $0x588] ss:$16 sps:$4 sm:$0xff]  }
  0xf1   :  { %1748 = vmatprep.subr.bf16.mxu0 %v6576_v62  ;;  %1912 = vmatprep.subr.bf16.mxu1 %v6579_v63  ;;  %v6666_v62 = vld [vmem:[#allocation6 + $0x5a4] ss:$16 sps:$4 sm:$0xff]   ;;  %v6669_v63 = vld [vmem:[#allocation6 + $0x5ac] ss:$16 sps:$4 sm:$0xff]  }
  0xf4   :  { %1749 = vmatpush1.bf16.msra.mxu0 %v6574_v0  ;;  %1913 = vmatpush1.bf16.msra.mxu1 %v6577_v1  ;;  %v6664_v0 = vld [vmem:[#allocation6 + $0x5a0] ss:$16 sps:$4 sm:$0xff]   ;;  %v6667_v1 = vld [vmem:[#allocation6 + $0x5a8] ss:$16 sps:$4 sm:$0xff]  }
  0xf5   :  { %1750 = vmatprep.subr.bf16.mxu0 %v6582_v2  ;;  %1914 = vmatprep.subr.bf16.mxu1 %v6585_v3  ;;  %v6672_v2 = vld [vmem:[#allocation6 + $0x5c4] ss:$16 sps:$4 sm:$0xff]   ;;  %v6675_v3 = vld [vmem:[#allocation6 + $0x5cc] ss:$16 sps:$4 sm:$0xff]  }
  0xf8   :  { %1751 = vmatpush1.bf16.msra.mxu0 %v6580_v4  ;;  %1915 = vmatpush1.bf16.msra.mxu1 %v6583_v5  ;;  %v6670_v4 = vld [vmem:[#allocation6 + $0x5c0] ss:$16 sps:$4 sm:$0xff]   ;;  %v6673_v5 = vld [vmem:[#allocation6 + $0x5c8] ss:$16 sps:$4 sm:$0xff]  }
  0xf9   :  { %1761 = vmatprep.subr.bf16.mxu0 %v6588_v6  ;;  %1925 = vmatprep.subr.bf16.mxu1 %v6591_v8  ;;  %v6678_v6 = vld [vmem:[#allocation6 + $0x5e4] ss:$16 sps:$4 sm:$0xff]   ;;  %v6676_v8 = vld [vmem:[#allocation6 + $0x5e0] ss:$16 sps:$4 sm:$0xff]  }
  0xfb   :  { %1753 = vmatmul.mubr.bf16.vlgmr.msra.gmra.mrb[0].mxu0 %v137_v11  ;;  %1917 = vmatmul.mubr.bf16.vlgmr.msra.gmra.mrb[0].mxu1 %v137_v11  ;;  %v6684_v11 = vld [vmem:[#allocation6 + $0x604] ss:$16 sps:$4 sm:$0xff]  }
  0xfc   :  { %1762 = vmatpush1.bf16.msra.mxu0 %v6586_v9  ;;  %1926 = vmatpush1.bf16.msra.mxu1 %v6589_v10  ;;  %v6679_v9 = vld [vmem:[#allocation6 + $0x5e8] ss:$16 sps:$4 sm:$0xff]   ;;  %v131_v10 = vld [vmem:[#allocation3 + $0x20] sm:$0xff] }
  0xfd   :  { %1763 = vmatprep.subr.bf16.mxu0 %v6594_v12  ;;  %1927 = vmatprep.subr.bf16.mxu1 %v6597_v13  ;;  %v6687_v12 = vld [vmem:[#allocation6 + $0x60c] ss:$16 sps:$4 sm:$0xff]  }
  0xfe   :  { %1793 = vmatprep.mubr.bf16.mxu0 %v140_v15  ;;  %1957 = vmatprep.mubr.bf16.mxu1 %v140_v15  ;;  %v134_v13 = vld [vmem:[#allocation3 + $0x38] sm:$0xff] }
  0xff   :  { %v6685_v15 = vld [vmem:[#allocation6 + $0x608] ss:$16 sps:$4 sm:$0xff]  }
 0x100   :  { %1764 = vmatpush1.bf16.msra.mxu0 %v6592_v16  ;;  %1928 = vmatpush1.bf16.msra.mxu1 %v6595_v17  ;;  %v139_v16 = vpack.c.bf16 %v131_v10, %v131_v10  ;;  %v6690_v17 = vld [vmem:[#allocation6 + $0x624] ss:$16 sps:$4 sm:$0xff]  }
 0x101   :  { %1765 = vmatprep.subr.bf16.mxu0 %v6600_v18  ;;  %1929 = vmatprep.subr.bf16.mxu1 %v6603_v19  ;;  %v6693_v18 = vld [vmem:[#allocation6 + $0x62c] ss:$16 sps:$4 sm:$0xff]   ;;  %v6688_v19 = vld [vmem:[#allocation6 + $0x620] ss:$16 sps:$4 sm:$0xff]   ;;  %v6774_v10 = vld [vmem:[#allocation6 + $0x7e4] ss:$16 sps:$4 sm:$0xff]  }
 0x104   :  { %1766 = vmatpush1.bf16.msra.mxu0 %v6598_v20  ;;  %1930 = vmatpush1.bf16.msra.mxu1 %v6601_v21  ;;  %v6691_v20 = vld [vmem:[#allocation6 + $0x628] ss:$16 sps:$4 sm:$0xff]   ;;  %v142_v21 = vpack.c.bf16 %v134_v13, %v134_v13 }
 0x105   :  { %1767 = vmatprep.subr.bf16.mxu0 %v6606_v22  ;;  %1931 = vmatprep.subr.bf16.mxu1 %v6609_v23  ;;  %v6696_v22 = vld [vmem:[#allocation6 + $0x644] ss:$16 sps:$4 sm:$0xff]   ;;  %v6699_v23 = vld [vmem:[#allocation6 + $0x64c] ss:$16 sps:$4 sm:$0xff]   ;;  %v6775_v13 = vld [vmem:[#allocation6 + $0x7e8] ss:$16 sps:$4 sm:$0xff]  }
 0x108   :  { %1768 = vmatpush1.bf16.msra.mxu0 %v6604_v24  ;;  %1932 = vmatpush1.bf16.msra.mxu1 %v6607_v25  ;;  %v6694_v24 = vld [vmem:[#allocation6 + $0x640] ss:$16 sps:$4 sm:$0xff]   ;;  %v6697_v25 = vld [vmem:[#allocation6 + $0x648] ss:$16 sps:$4 sm:$0xff]  }
 0x109   :  { %1769 = vmatprep.subr.bf16.mxu0 %v6612_v26  ;;  %1933 = vmatprep.subr.bf16.mxu1 %v6615_v27  ;;  %v6702_v26 = vld [vmem:[#allocation6 + $0x664] ss:$16 sps:$4 sm:$0xff]   ;;  %v6705_v27 = vld [vmem:[#allocation6 + $0x66c] ss:$16 sps:$4 sm:$0xff]  }
 0x10c   :  { %1770 = vmatpush1.bf16.msra.mxu0 %v6610_v28  ;;  %1934 = vmatpush1.bf16.msra.mxu1 %v6613_v29  ;;  %v6700_v28 = vld [vmem:[#allocation6 + $0x660] ss:$16 sps:$4 sm:$0xff]   ;;  %v6703_v29 = vld [vmem:[#allocation6 + $0x668] ss:$16 sps:$4 sm:$0xff]  }
 0x10d   :  { %1771 = vmatprep.subr.bf16.mxu0 %v6618_v30  ;;  %1935 = vmatprep.subr.bf16.mxu1 %v6621_v31  ;;  %v6708_v30 = vld [vmem:[#allocation6 + $0x684] ss:$16 sps:$4 sm:$0xff]   ;;  %v6711_v31 = vld [vmem:[#allocation6 + $0x68c] ss:$16 sps:$4 sm:$0xff]  }
 0x110   :  { %1772 = vmatpush1.bf16.msra.mxu0 %v6616_v32  ;;  %1936 = vmatpush1.bf16.msra.mxu1 %v6619_v33  ;;  %v6706_v32 = vld [vmem:[#allocation6 + $0x680] ss:$16 sps:$4 sm:$0xff]   ;;  %v6709_v33 = vld [vmem:[#allocation6 + $0x688] ss:$16 sps:$4 sm:$0xff]  }
 0x111   :  { %1773 = vmatprep.subr.bf16.mxu0 %v6624_v34  ;;  %1937 = vmatprep.subr.bf16.mxu1 %v6627_v35  ;;  %v6714_v34 = vld [vmem:[#allocation6 + $0x6a4] ss:$16 sps:$4 sm:$0xff]   ;;  %v6717_v35 = vld [vmem:[#allocation6 + $0x6ac] ss:$16 sps:$4 sm:$0xff]  }
 0x114   :  { %1774 = vmatpush1.bf16.msra.mxu0 %v6622_v36  ;;  %1938 = vmatpush1.bf16.msra.mxu1 %v6625_v37  ;;  %v6712_v36 = vld [vmem:[#allocation6 + $0x6a0] ss:$16 sps:$4 sm:$0xff]   ;;  %v6715_v37 = vld [vmem:[#allocation6 + $0x6a8] ss:$16 sps:$4 sm:$0xff]  }
 0x115   :  { %1775 = vmatprep.subr.bf16.mxu0 %v6630_v38  ;;  %1939 = vmatprep.subr.bf16.mxu1 %v6633_v39  ;;  %v6720_v38 = vld [vmem:[#allocation6 + $0x6c4] ss:$16 sps:$4 sm:$0xff]   ;;  %v6723_v39 = vld [vmem:[#allocation6 + $0x6cc] ss:$16 sps:$4 sm:$0xff]  }
 0x118   :  { %1776 = vmatpush1.bf16.msra.mxu0 %v6628_v40  ;;  %1940 = vmatpush1.bf16.msra.mxu1 %v6631_v41  ;;  %v6718_v40 = vld [vmem:[#allocation6 + $0x6c0] ss:$16 sps:$4 sm:$0xff]   ;;  %v6721_v41 = vld [vmem:[#allocation6 + $0x6c8] ss:$16 sps:$4 sm:$0xff]  }
 0x119   :  { %1777 = vmatprep.subr.bf16.mxu0 %v6636_v42  ;;  %1941 = vmatprep.subr.bf16.mxu1 %v6639_v43  ;;  %v6726_v42 = vld [vmem:[#allocation6 + $0x6e4] ss:$16 sps:$4 sm:$0xff]   ;;  %v6729_v43 = vld [vmem:[#allocation6 + $0x6ec] ss:$16 sps:$4 sm:$0xff]  }
 0x11c   :  { %1778 = vmatpush1.bf16.msra.mxu0 %v6634_v44  ;;  %1942 = vmatpush1.bf16.msra.mxu1 %v6637_v45  ;;  %v6724_v44 = vld [vmem:[#allocation6 + $0x6e0] ss:$16 sps:$4 sm:$0xff]   ;;  %v6727_v45 = vld [vmem:[#allocation6 + $0x6e8] ss:$16 sps:$4 sm:$0xff]  }
 0x11d   :  { %1779 = vmatprep.subr.bf16.mxu0 %v6642_v46  ;;  %1943 = vmatprep.subr.bf16.mxu1 %v6645_v47  ;;  %v6732_v46 = vld [vmem:[#allocation6 + $0x704] ss:$16 sps:$4 sm:$0xff]   ;;  %v6735_v47 = vld [vmem:[#allocation6 + $0x70c] ss:$16 sps:$4 sm:$0xff]  }
 0x120   :  { %1780 = vmatpush1.bf16.msra.mxu0 %v6640_v48  ;;  %1944 = vmatpush1.bf16.msra.mxu1 %v6643_v49  ;;  %v6730_v48 = vld [vmem:[#allocation6 + $0x700] ss:$16 sps:$4 sm:$0xff]   ;;  %v6733_v49 = vld [vmem:[#allocation6 + $0x708] ss:$16 sps:$4 sm:$0xff]  }
 0x121   :  { %1781 = vmatprep.subr.bf16.mxu0 %v6648_v50  ;;  %1945 = vmatprep.subr.bf16.mxu1 %v6651_v51  ;;  %v6738_v50 = vld [vmem:[#allocation6 + $0x724] ss:$16 sps:$4 sm:$0xff]   ;;  %v6741_v51 = vld [vmem:[#allocation6 + $0x72c] ss:$16 sps:$4 sm:$0xff]  }
 0x124   :  { %1782 = vmatpush1.bf16.msra.mxu0 %v6646_v52  ;;  %1946 = vmatpush1.bf16.msra.mxu1 %v6649_v53  ;;  %v6736_v52 = vld [vmem:[#allocation6 + $0x720] ss:$16 sps:$4 sm:$0xff]   ;;  %v6739_v53 = vld [vmem:[#allocation6 + $0x728] ss:$16 sps:$4 sm:$0xff]  }
 0x125   :  { %1783 = vmatprep.subr.bf16.mxu0 %v6654_v54  ;;  %1947 = vmatprep.subr.bf16.mxu1 %v6657_v55  ;;  %v6744_v54 = vld [vmem:[#allocation6 + $0x744] ss:$16 sps:$4 sm:$0xff]   ;;  %v6747_v55 = vld [vmem:[#allocation6 + $0x74c] ss:$16 sps:$4 sm:$0xff]  }
 0x128   :  { %1784 = vmatpush1.bf16.msra.mxu0 %v6652_v56  ;;  %1948 = vmatpush1.bf16.msra.mxu1 %v6655_v57  ;;  %v6742_v56 = vld [vmem:[#allocation6 + $0x740] ss:$16 sps:$4 sm:$0xff]   ;;  %v6745_v57 = vld [vmem:[#allocation6 + $0x748] ss:$16 sps:$4 sm:$0xff]  }
 0x129   :  { %1785 = vmatprep.subr.bf16.mxu0 %v6660_v58  ;;  %1949 = vmatprep.subr.bf16.mxu1 %v6663_v59  ;;  %v6750_v58 = vld [vmem:[#allocation6 + $0x764] ss:$16 sps:$4 sm:$0xff]   ;;  %v6753_v59 = vld [vmem:[#allocation6 + $0x76c] ss:$16 sps:$4 sm:$0xff]  }
 0x12c   :  { %1786 = vmatpush1.bf16.msra.mxu0 %v6658_v60  ;;  %1950 = vmatpush1.bf16.msra.mxu1 %v6661_v61  ;;  %v6748_v60 = vld [vmem:[#allocation6 + $0x760] ss:$16 sps:$4 sm:$0xff]   ;;  %v6751_v61 = vld [vmem:[#allocation6 + $0x768] ss:$16 sps:$4 sm:$0xff]  }
 0x12d   :  { %1787 = vmatprep.subr.bf16.mxu0 %v6666_v62  ;;  %1951 = vmatprep.subr.bf16.mxu1 %v6669_v63  ;;  %v6756_v62 = vld [vmem:[#allocation6 + $0x784] ss:$16 sps:$4 sm:$0xff]   ;;  %v6759_v63 = vld [vmem:[#allocation6 + $0x78c] ss:$16 sps:$4 sm:$0xff]  }
 0x130   :  { %1788 = vmatpush1.bf16.msra.mxu0 %v6664_v0  ;;  %1952 = vmatpush1.bf16.msra.mxu1 %v6667_v1  ;;  %v6754_v0 = vld [vmem:[#allocation6 + $0x780] ss:$16 sps:$4 sm:$0xff]   ;;  %v6757_v1 = vld [vmem:[#allocation6 + $0x788] ss:$16 sps:$4 sm:$0xff]  }
 0x131   :  { %1789 = vmatprep.subr.bf16.mxu0 %v6672_v2  ;;  %1953 = vmatprep.subr.bf16.mxu1 %v6675_v3  ;;  %v6762_v2 = vld [vmem:[#allocation6 + $0x7a4] ss:$16 sps:$4 sm:$0xff]   ;;  %v6765_v3 = vld [vmem:[#allocation6 + $0x7ac] ss:$16 sps:$4 sm:$0xff]  }
 0x134   :  { %1790 = vmatpush1.bf16.msra.mxu0 %v6670_v4  ;;  %1954 = vmatpush1.bf16.msra.mxu1 %v6673_v5  ;;  %v6760_v4 = vld [vmem:[#allocation6 + $0x7a0] ss:$16 sps:$4 sm:$0xff]   ;;  %v6763_v5 = vld [vmem:[#allocation6 + $0x7a8] ss:$16 sps:$4 sm:$0xff]  }
 0x135   :  { %1791 = vmatprep.subr.bf16.mxu0 %v6678_v6  ;;  %1955 = vmatprep.subr.bf16.mxu1 %v6681_v7  ;;  %v6768_v6 = vld [vmem:[#allocation6 + $0x7c4] ss:$16 sps:$4 sm:$0xff]   ;;  %v6771_v7 = vld [vmem:[#allocation6 + $0x7cc] ss:$16 sps:$4 sm:$0xff]  }
 0x138   :  { %1792 = vmatpush1.bf16.msra.mxu0 %v6676_v8  ;;  %1956 = vmatpush1.bf16.msra.mxu1 %v6679_v9  ;;  %v6766_v8 = vld [vmem:[#allocation6 + $0x7c0] ss:$16 sps:$4 sm:$0xff]   ;;  %v6769_v9 = vld [vmem:[#allocation6 + $0x7c8] ss:$16 sps:$4 sm:$0xff]  }
 0x139   :  { %1802 = vmatprep.subr.bf16.mxu0 %v6684_v11  ;;  %1966 = vmatprep.subr.bf16.mxu1 %v6687_v12  ;;  %v6777_v11 = vld [vmem:[#allocation6 + $0x7ec] ss:$16 sps:$4 sm:$0xff]   ;;  %v6772_v12 = vld [vmem:[#allocation6 + $0x7e0] ss:$16 sps:$4 sm:$0xff]  }
 0x13b   :  { %1794 = vmatmul.mubr.bf16.vlgmr.msra.gmra.mrb[0].mxu0 %v139_v16  ;;  %1958 = vmatmul.mubr.bf16.vlgmr.msra.gmra.mrb[0].mxu1 %v139_v16  ;;  %v6780_v16 = vld [vmem:[#allocation8 + $0x4] ss:$16 sps:$4 sm:$0xff]  }
 0x13c   :  { %1803 = vmatpush1.bf16.msra.mxu0 %v6682_v14  ;;  %1967 = vmatpush1.bf16.msra.mxu1 %v6685_v15  ;;  %v133_v14 = vld [vmem:[#allocation3 + $0x30] sm:$0xff] }
 0x13d   :  { %1804 = vmatprep.subr.bf16.mxu0 %v6690_v17  ;;  %1968 = vmatprep.subr.bf16.mxu1 %v6693_v18  ;;  %v141_v15 = vpack.c.bf16 %v133_v14, %v133_v14  ;;  %v6783_v17 = vld [vmem:[#allocation8 + $0xc] ss:$16 sps:$4 sm:$0xff]   ;;  %v6778_v18 = vld [vmem:[#allocation8] ss:$16 sps:$4 sm:$0xff]  }
 0x13e   :  { %1834 = vmatprep.mubr.bf16.mxu0 %v142_v21  ;;  %1998 = vmatprep.mubr.bf16.mxu1 %v142_v21  ;;  %v6789_v21 = vld [vmem:[#allocation8 + $0x2c] ss:$16 sps:$4 sm:$0xff]   ;;  %v6868_v14 = vld [vmem:[#allocation8 + $0x1e0] ss:$16 sps:$4 sm:$0xff]  }
 0x140   :  { %1805 = vmatpush1.bf16.msra.mxu0 %v6688_v19  ;;  %1969 = vmatpush1.bf16.msra.mxu1 %v6691_v20  ;;  %v6781_v19 = vld [vmem:[#allocation8 + $0x8] ss:$16 sps:$4 sm:$0xff]   ;;  %v6786_v20 = vld [vmem:[#allocation8 + $0x24] ss:$16 sps:$4 sm:$0xff]  }
 0x141   :  { %1806 = vmatprep.subr.bf16.mxu0 %v6696_v22  ;;  %1970 = vmatprep.subr.bf16.mxu1 %v6699_v23  ;;  %v6784_v22 = vld [vmem:[#allocation8 + $0x20] ss:$16 sps:$4 sm:$0xff]   ;;  %v6787_v23 = vld [vmem:[#allocation8 + $0x28] ss:$16 sps:$4 sm:$0xff]  }
 0x144   :  { %1807 = vmatpush1.bf16.msra.mxu0 %v6694_v24  ;;  %1971 = vmatpush1.bf16.msra.mxu1 %v6697_v25  ;;  %v6792_v24 = vld [vmem:[#allocation8 + $0x44] ss:$16 sps:$4 sm:$0xff]   ;;  %v6795_v25 = vld [vmem:[#allocation8 + $0x4c] ss:$16 sps:$4 sm:$0xff]  }
 0x145   :  { %1808 = vmatprep.subr.bf16.mxu0 %v6702_v26  ;;  %1972 = vmatprep.subr.bf16.mxu1 %v6705_v27  ;;  %v6790_v26 = vld [vmem:[#allocation8 + $0x40] ss:$16 sps:$4 sm:$0xff]   ;;  %v6793_v27 = vld [vmem:[#allocation8 + $0x48] ss:$16 sps:$4 sm:$0xff]  }
 0x148   :  { %1809 = vmatpush1.bf16.msra.mxu0 %v6700_v28  ;;  %1973 = vmatpush1.bf16.msra.mxu1 %v6703_v29  ;;  %v6798_v28 = vld [vmem:[#allocation8 + $0x64] ss:$16 sps:$4 sm:$0xff]   ;;  %v6801_v29 = vld [vmem:[#allocation8 + $0x6c] ss:$16 sps:$4 sm:$0xff]  }
 0x149   :  { %1810 = vmatprep.subr.bf16.mxu0 %v6708_v30  ;;  %1974 = vmatprep.subr.bf16.mxu1 %v6711_v31  ;;  %v6796_v30 = vld [vmem:[#allocation8 + $0x60] ss:$16 sps:$4 sm:$0xff]   ;;  %v6799_v31 = vld [vmem:[#allocation8 + $0x68] ss:$16 sps:$4 sm:$0xff]  }
 0x14c   :  { %1811 = vmatpush1.bf16.msra.mxu0 %v6706_v32  ;;  %1975 = vmatpush1.bf16.msra.mxu1 %v6709_v33  ;;  %v6804_v32 = vld [vmem:[#allocation8 + $0x84] ss:$16 sps:$4 sm:$0xff]   ;;  %v6807_v33 = vld [vmem:[#allocation8 + $0x8c] ss:$16 sps:$4 sm:$0xff]  }
 0x14d   :  { %1812 = vmatprep.subr.bf16.mxu0 %v6714_v34  ;;  %1976 = vmatprep.subr.bf16.mxu1 %v6717_v35  ;;  %v6802_v34 = vld [vmem:[#allocation8 + $0x80] ss:$16 sps:$4 sm:$0xff]   ;;  %v6805_v35 = vld [vmem:[#allocation8 + $0x88] ss:$16 sps:$4 sm:$0xff]  }
 0x150   :  { %1813 = vmatpush1.bf16.msra.mxu0 %v6712_v36  ;;  %1977 = vmatpush1.bf16.msra.mxu1 %v6715_v37  ;;  %v6810_v36 = vld [vmem:[#allocation8 + $0xa4] ss:$16 sps:$4 sm:$0xff]   ;;  %v6808_v37 = vld [vmem:[#allocation8 + $0xa0] ss:$16 sps:$4 sm:$0xff]  }
 0x151   :  { %1814 = vmatprep.subr.bf16.mxu0 %v6720_v38  ;;  %1978 = vmatprep.subr.bf16.mxu1 %v6723_v39  ;;  %v6811_v38 = vld [vmem:[#allocation8 + $0xa8] ss:$16 sps:$4 sm:$0xff]   ;;  %v6813_v39 = vld [vmem:[#allocation8 + $0xac] ss:$16 sps:$4 sm:$0xff]  }
 0x154   :  { %1815 = vmatpush1.bf16.msra.mxu0 %v6718_v40  ;;  %1979 = vmatpush1.bf16.msra.mxu1 %v6721_v41  ;;  %v6816_v40 = vld [vmem:[#allocation8 + $0xc4] ss:$16 sps:$4 sm:$0xff]   ;;  %v6819_v41 = vld [vmem:[#allocation8 + $0xcc] ss:$16 sps:$4 sm:$0xff]  }
 0x155   :  { %1816 = vmatprep.subr.bf16.mxu0 %v6726_v42  ;;  %1980 = vmatprep.subr.bf16.mxu1 %v6729_v43  ;;  %v6814_v42 = vld [vmem:[#allocation8 + $0xc0] ss:$16 sps:$4 sm:$0xff]   ;;  %v6817_v43 = vld [vmem:[#allocation8 + $0xc8] ss:$16 sps:$4 sm:$0xff]  }
 0x158   :  { %1817 = vmatpush1.bf16.msra.mxu0 %v6724_v44  ;;  %1981 = vmatpush1.bf16.msra.mxu1 %v6727_v45  ;;  %v6822_v44 = vld [vmem:[#allocation8 + $0xe4] ss:$16 sps:$4 sm:$0xff]   ;;  %v6825_v45 = vld [vmem:[#allocation8 + $0xec] ss:$16 sps:$4 sm:$0xff]  }
 0x159   :  { %1818 = vmatprep.subr.bf16.mxu0 %v6732_v46  ;;  %1982 = vmatprep.subr.bf16.mxu1 %v6735_v47  ;;  %v6820_v46 = vld [vmem:[#allocation8 + $0xe0] ss:$16 sps:$4 sm:$0xff]   ;;  %v6823_v47 = vld [vmem:[#allocation8 + $0xe8] ss:$16 sps:$4 sm:$0xff]  }
 0x15c   :  { %1819 = vmatpush1.bf16.msra.mxu0 %v6730_v48  ;;  %1983 = vmatpush1.bf16.msra.mxu1 %v6733_v49  ;;  %v6828_v48 = vld [vmem:[#allocation8 + $0x104] ss:$16 sps:$4 sm:$0xff]   ;;  %v6831_v49 = vld [vmem:[#allocation8 + $0x10c] ss:$16 sps:$4 sm:$0xff]  }
 0x15d   :  { %1820 = vmatprep.subr.bf16.mxu0 %v6738_v50  ;;  %1984 = vmatprep.subr.bf16.mxu1 %v6741_v51  ;;  %v6826_v50 = vld [vmem:[#allocation8 + $0x100] ss:$16 sps:$4 sm:$0xff]   ;;  %v6829_v51 = vld [vmem:[#allocation8 + $0x108] ss:$16 sps:$4 sm:$0xff]  }
 0x160   :  { %1821 = vmatpush1.bf16.msra.mxu0 %v6736_v52  ;;  %1985 = vmatpush1.bf16.msra.mxu1 %v6739_v53  ;;  %v6834_v52 = vld [vmem:[#allocation8 + $0x124] ss:$16 sps:$4 sm:$0xff]   ;;  %v6837_v53 = vld [vmem:[#allocation8 + $0x12c] ss:$16 sps:$4 sm:$0xff]  }
 0x161   :  { %1822 = vmatprep.subr.bf16.mxu0 %v6744_v54  ;;  %1986 = vmatprep.subr.bf16.mxu1 %v6747_v55  ;;  %v6832_v54 = vld [vmem:[#allocation8 + $0x120] ss:$16 sps:$4 sm:$0xff]   ;;  %v6835_v55 = vld [vmem:[#allocation8 + $0x128] ss:$16 sps:$4 sm:$0xff]  }
 0x164   :  { %1823 = vmatpush1.bf16.msra.mxu0 %v6742_v56  ;;  %1987 = vmatpush1.bf16.msra.mxu1 %v6745_v57  ;;  %v6838_v56 = vld [vmem:[#allocation8 + $0x140] ss:$16 sps:$4 sm:$0xff]   ;;  %v6840_v57 = vld [vmem:[#allocation8 + $0x144] ss:$16 sps:$4 sm:$0xff]  }
 0x165   :  { %1824 = vmatprep.subr.bf16.mxu0 %v6750_v58  ;;  %1988 = vmatprep.subr.bf16.mxu1 %v6753_v59  ;;  %v6841_v58 = vld [vmem:[#allocation8 + $0x148] ss:$16 sps:$4 sm:$0xff]   ;;  %v6843_v59 = vld [vmem:[#allocation8 + $0x14c] ss:$16 sps:$4 sm:$0xff]  }
 0x168   :  { %1825 = vmatpush1.bf16.msra.mxu0 %v6748_v60  ;;  %1989 = vmatpush1.bf16.msra.mxu1 %v6751_v61  ;;  %v6846_v60 = vld [vmem:[#allocation8 + $0x164] ss:$16 sps:$4 sm:$0xff]   ;;  %v6849_v61 = vld [vmem:[#allocation8 + $0x16c] ss:$16 sps:$4 sm:$0xff]  }
 0x169   :  { %1826 = vmatprep.subr.bf16.mxu0 %v6756_v62  ;;  %1990 = vmatprep.subr.bf16.mxu1 %v6759_v63  ;;  %v6844_v62 = vld [vmem:[#allocation8 + $0x160] ss:$16 sps:$4 sm:$0xff]   ;;  %v6847_v63 = vld [vmem:[#allocation8 + $0x168] ss:$16 sps:$4 sm:$0xff]  }
 0x16c   :  { %1827 = vmatpush1.bf16.msra.mxu0 %v6754_v0  ;;  %1991 = vmatpush1.bf16.msra.mxu1 %v6757_v1  ;;  %v6852_v0 = vld [vmem:[#allocation8 + $0x184] ss:$16 sps:$4 sm:$0xff]   ;;  %v6855_v1 = vld [vmem:[#allocation8 + $0x18c] ss:$16 sps:$4 sm:$0xff]  }
 0x16d   :  { %1828 = vmatprep.subr.bf16.mxu0 %v6762_v2  ;;  %1992 = vmatprep.subr.bf16.mxu1 %v6765_v3  ;;  %v6850_v2 = vld [vmem:[#allocation8 + $0x180] ss:$16 sps:$4 sm:$0xff]   ;;  %v6853_v3 = vld [vmem:[#allocation8 + $0x188] ss:$16 sps:$4 sm:$0xff]  }
 0x170   :  { %1829 = vmatpush1.bf16.msra.mxu0 %v6760_v4  ;;  %1993 = vmatpush1.bf16.msra.mxu1 %v6763_v5  ;;  %v6858_v4 = vld [vmem:[#allocation8 + $0x1a4] ss:$16 sps:$4 sm:$0xff]   ;;  %v6861_v5 = vld [vmem:[#allocation8 + $0x1ac] ss:$16 sps:$4 sm:$0xff]  }
 0x171   :  { %1830 = vmatprep.subr.bf16.mxu0 %v6768_v6  ;;  %1994 = vmatprep.subr.bf16.mxu1 %v6771_v7  ;;  %v6856_v6 = vld [vmem:[#allocation8 + $0x1a0] ss:$16 sps:$4 sm:$0xff]   ;;  %v6859_v7 = vld [vmem:[#allocation8 + $0x1a8] ss:$16 sps:$4 sm:$0xff]  }
 0x174   :  { %1831 = vmatpush1.bf16.msra.mxu0 %v6766_v8  ;;  %1995 = vmatpush1.bf16.msra.mxu1 %v6769_v9  ;;  %v6864_v8 = vld [vmem:[#allocation8 + $0x1c4] ss:$16 sps:$4 sm:$0xff]   ;;  %v6867_v9 = vld [vmem:[#allocation8 + $0x1cc] ss:$16 sps:$4 sm:$0xff]  }
 0x175   :  { %1832 = vmatprep.subr.bf16.mxu0 %v6774_v10  ;;  %1996 = vmatprep.subr.bf16.mxu1 %v6777_v11  ;;  %v6862_v10 = vld [vmem:[#allocation8 + $0x1c0] ss:$16 sps:$4 sm:$0xff]   ;;  %v6865_v11 = vld [vmem:[#allocation8 + $0x1c8] ss:$16 sps:$4 sm:$0xff]  }
 0x178   :  { %1833 = vmatpush1.bf16.msra.mxu0 %v6772_v12  ;;  %1997 = vmatpush1.bf16.msra.mxu1 %v6775_v13  ;;  %v6870_v12 = vld [vmem:[#allocation8 + $0x1e4] ss:$16 sps:$4 sm:$0xff]   ;;  %v6873_v13 = vld [vmem:[#allocation8 + $0x1ec] ss:$16 sps:$4 sm:$0xff]  }
 0x179   :  { %2985 = vmatprep.subr.bf16.mxu0 %v6780_v16  ;;  %3067 = vmatprep.subr.bf16.mxu1 %v6783_v17  ;;  %v6876_v16 = vld [vmem:[#allocation8 + $0x204] ss:$16 sps:$4 sm:$0xff]   ;;  %v6879_v17 = vld [vmem:[#allocation8 + $0x20c] ss:$16 sps:$4 sm:$0xff]  }
 0x17b   :  { %1835 = vmatmul.mubr.bf16.vlgmr.msra.gmra.mrb[0].mxu0 %v141_v15  ;;  %1999 = vmatmul.mubr.bf16.vlgmr.msra.gmra.mrb[0].mxu1 %v141_v15  ;;  %v6871_v15 = vld [vmem:[#allocation8 + $0x1e8] ss:$16 sps:$4 sm:$0xff]  }
 0x17c   :  { %2986 = vmatpush1.bf16.msra.mxu0 %v6778_v18  ;;  %3068 = vmatpush1.bf16.msra.mxu1 %v6781_v19 }
 0x17d   :  { %2987 = vmatprep.subr.bf16.mxu0 %v6786_v20  ;;  %3069 = vmatprep.subr.bf16.mxu1 %v6789_v21 }
 0x180   :  { %2988 = vmatpush1.bf16.msra.mxu0 %v6784_v22  ;;  %3070 = vmatpush1.bf16.msra.mxu1 %v6787_v23 }
 0x181   :  { %2989 = vmatprep.subr.bf16.mxu0 %v6792_v24  ;;  %3071 = vmatprep.subr.bf16.mxu1 %v6795_v25 }
 0x184   :  { %2990 = vmatpush1.bf16.msra.mxu0 %v6790_v26  ;;  %3072 = vmatpush1.bf16.msra.mxu1 %v6793_v27 }
 0x185   :  { %2991 = vmatprep.subr.bf16.mxu0 %v6798_v28  ;;  %3073 = vmatprep.subr.bf16.mxu1 %v6801_v29 }
 0x188   :  { %2992 = vmatpush1.bf16.msra.mxu0 %v6796_v30  ;;  %3074 = vmatpush1.bf16.msra.mxu1 %v6799_v31 }
 0x189   :  { %2993 = vmatprep.subr.bf16.mxu0 %v6804_v32  ;;  %3075 = vmatprep.subr.bf16.mxu1 %v6807_v33 }
 0x18c   :  { %2994 = vmatpush1.bf16.msra.mxu0 %v6802_v34  ;;  %3076 = vmatpush1.bf16.msra.mxu1 %v6805_v35 }
 0x18d   :  { %2995 = vmatprep.subr.bf16.mxu0 %v6810_v36  ;;  %3077 = vmatprep.subr.bf16.mxu1 %v6813_v39 }
 0x190   :  { %2996 = vmatpush1.bf16.msra.mxu0 %v6808_v37  ;;  %3078 = vmatpush1.bf16.msra.mxu1 %v6811_v38 }
 0x191   :  { %2997 = vmatprep.subr.bf16.mxu0 %v6816_v40  ;;  %3079 = vmatprep.subr.bf16.mxu1 %v6819_v41 }
 0x194   :  { %2998 = vmatpush1.bf16.msra.mxu0 %v6814_v42  ;;  %3080 = vmatpush1.bf16.msra.mxu1 %v6817_v43 }
 0x195   :  { %2999 = vmatprep.subr.bf16.mxu0 %v6822_v44  ;;  %3081 = vmatprep.subr.bf16.mxu1 %v6825_v45 }
 0x198   :  { %3000 = vmatpush1.bf16.msra.mxu0 %v6820_v46  ;;  %3082 = vmatpush1.bf16.msra.mxu1 %v6823_v47 }
 0x199   :  { %3001 = vmatprep.subr.bf16.mxu0 %v6828_v48  ;;  %3083 = vmatprep.subr.bf16.mxu1 %v6831_v49 }
 0x19c   :  { %3002 = vmatpush1.bf16.msra.mxu0 %v6826_v50  ;;  %3084 = vmatpush1.bf16.msra.mxu1 %v6829_v51 }
 0x19d   :  { %3003 = vmatprep.subr.bf16.mxu0 %v6834_v52  ;;  %3085 = vmatprep.subr.bf16.mxu1 %v6837_v53 }
 0x1a0   :  { %3004 = vmatpush1.bf16.msra.mxu0 %v6832_v54  ;;  %3086 = vmatpush1.bf16.msra.mxu1 %v6835_v55 }
 0x1a1   :  { %3005 = vmatprep.subr.bf16.mxu0 %v6840_v57  ;;  %3087 = vmatprep.subr.bf16.mxu1 %v6843_v59 }
 0x1a4   :  { %3006 = vmatpush1.bf16.msra.mxu0 %v6838_v56  ;;  %3088 = vmatpush1.bf16.msra.mxu1 %v6841_v58 }
 0x1a5   :  { %3007 = vmatprep.subr.bf16.mxu0 %v6846_v60  ;;  %3089 = vmatprep.subr.bf16.mxu1 %v6849_v61 }
 0x1a8   :  { %3008 = vmatpush1.bf16.msra.mxu0 %v6844_v62  ;;  %3090 = vmatpush1.bf16.msra.mxu1 %v6847_v63 }
 0x1a9   :  { %3009 = vmatprep.subr.bf16.mxu0 %v6852_v0  ;;  %3091 = vmatprep.subr.bf16.mxu1 %v6855_v1 }
 0x1ac   :  { %3010 = vmatpush1.bf16.msra.mxu0 %v6850_v2  ;;  %3092 = vmatpush1.bf16.msra.mxu1 %v6853_v3 }
 0x1ad   :  { %3011 = vmatprep.subr.bf16.mxu0 %v6858_v4  ;;  %3093 = vmatprep.subr.bf16.mxu1 %v6861_v5 }
 0x1b0   :  { %3012 = vmatpush1.bf16.msra.mxu0 %v6856_v6  ;;  %3094 = vmatpush1.bf16.msra.mxu1 %v6859_v7 }
 0x1b1   :  { %3013 = vmatprep.subr.bf16.mxu0 %v6864_v8  ;;  %3095 = vmatprep.subr.bf16.mxu1 %v6867_v9 }
 0x1b4   :  { %3014 = vmatpush1.bf16.msra.mxu0 %v6862_v10  ;;  %3096 = vmatpush1.bf16.msra.mxu1 %v6865_v11 }
 0x1b5   :  { %3015 = vmatprep.subr.bf16.mxu0 %v6870_v12  ;;  %3097 = vmatprep.subr.bf16.mxu1 %v6873_v13 }
 0x1b8   :  { %3016 = vmatpush1.bf16.msra.mxu0 %v6868_v14  ;;  %3098 = vmatpush1.bf16.msra.mxu1 %v6871_v15 }
 0x1b9   :  { %3026 = vmatprep.subr.bf16.mxu0 %v6876_v16  ;;  %3108 = vmatprep.subr.bf16.mxu1 %v6879_v17 }
 0x24e   :  { %v7692_v18 = vpop.f32.mrb[0].mxu0  ;;  %v7694_v19 = vpop.f32.mrb[0].mxu1 }
 0x24f   :  { %v2007_v20 = vrot.slane %v7692_v18, 4  ;;  %v2035_v21 = vmul.f32 %v7692_v18, %v7692_v18  ;;  %v2019_v22 = vrot.slane %v7694_v19, 4  ;;  %v2037_v23 = vmul.f32 %v7694_v19, %v7694_v19  ;;  %v7702_v24 = vpop.f32.mrb[1].mxu0  ;;  %v7704_v25 = vpop.f32.mrb[1].mxu1 }
 0x250   :  { %v2013_v26 = vrot.slane %v7702_v24, 4  ;;  %v2036_v27 = vmul.f32 %v7702_v24, %v7702_v24  ;;  %v2025_v28 = vrot.slane %v7704_v25, 4  ;;  %v2038_v29 = vmul.f32 %v7704_v25, %v7704_v25  ;;  %v1840_v30 = vpop.f32.mrb[2].mxu0  ;;  %v2004_v31 = vpop.f32.mrb[2].mxu1 }
 0x251   :  { %v2008_v32 = vadd.f32 %v2007_v20, %v7692_v18  ;;  %v2039_v33 = vrot.slane %v2035_v21, 4  ;;  %v2020_v34 = vadd.f32 %v2019_v22, %v7694_v19  ;;  %v2051_v35 = vrot.slane %v2037_v23, 4  ;;  %v1841_v36 = vpop.f32.mrb[3].mxu0  ;;  %v2005_v37 = vpop.f32.mrb[3].mxu1 }
 0x252   :  { %v2014_v38 = vadd.f32 %v2013_v26, %v7702_v24  ;;  %v2045_v39 = vrot.slane %v2036_v27, 4  ;;  %v2026_v40 = vadd.f32 %v2025_v28, %v7704_v25  ;;  %v2057_v41 = vrot.slane %v2038_v29, 4 }
 0x253   :  { %v2009_v42 = vrot.slane %v2008_v32, 2  ;;  %v2040_v43 = vadd.f32 %v2039_v33, %v2035_v21  ;;  %v2021_v44 = vrot.slane %v2020_v34, 2  ;;  %v2052_v45 = vadd.f32 %v2051_v35, %v2037_v23 }
 0x254   :  { %v2015_v46 = vrot.slane %v2014_v38, 2  ;;  %v2046_v47 = vadd.f32 %v2045_v39, %v2036_v27  ;;  %v2027_v48 = vrot.slane %v2026_v40, 2  ;;  %v2058_v49 = vadd.f32 %v2057_v41, %v2038_v29 }
 0x255   :  { %v2010_v50 = vadd.f32 %v2009_v42, %v2008_v32  ;;  %v2041_v51 = vrot.slane %v2040_v43, 2  ;;  %v2022_v52 = vadd.f32 %v2021_v44, %v2020_v34  ;;  %v2053_v53 = vrot.slane %v2052_v45, 2 }
 0x256   :  { %v2016_v54 = vadd.f32 %v2015_v46, %v2014_v38  ;;  %v2047_v55 = vrot.slane %v2046_v47, 2  ;;  %v2028_v56 = vadd.f32 %v2027_v48, %v2026_v40  ;;  %v2059_v57 = vrot.slane %v2058_v49, 2 }
 0x257   :  { %v2011_v58 = vrot.slane %v2010_v50, 1  ;;  %v2042_v59 = vadd.f32 %v2041_v51, %v2040_v43  ;;  %v2023_v60 = vrot.slane %v2022_v52, 1  ;;  %v2054_v61 = vadd.f32 %v2053_v53, %v2052_v45  ;;  %v2075_v53 = vld [vmem:[%s7913_s6] ss:$4 sm:$0xf] }
 0x258   :  { %v2017_v62 = vrot.slane %v2016_v54, 1  ;;  %v2048_v63 = vadd.f32 %v2047_v55, %v2046_v47  ;;  %v2029_v0 = vrot.slane %v2028_v56, 1  ;;  %v2060_v1 = vadd.f32 %v2059_v57, %v2058_v49 }
 0x259   :  { %v2012_v2 = vadd.f32 %v2011_v58, %v2010_v50  ;;  %v2043_v3 = vrot.slane %v2042_v59, 1  ;;  %v2024_v4 = vadd.f32 %v2023_v60, %v2022_v52  ;;  %v2055_v5 = vrot.slane %v2054_v61, 1 }
 0x25a   :  { %v2018_v6 = vadd.f32 %v2017_v62, %v2016_v54  ;;  %v2049_v7 = vrot.slane %v2048_v63, 1  ;;  %v2030_v8 = vadd.f32 %v2029_v0, %v2028_v56  ;;  %v2061_v9 = vrot.slane %v2060_v1, 1 }
 0x25b   :  { %v2031_v10 = vmul.f32 0.125, %v2012_v2  ;;  %v2044_v11 = vadd.f32 %v2043_v3, %v2042_v59  ;;  %v2033_v12 = vmul.f32 0.125, %v2024_v4  ;;  %v2056_v13 = vadd.f32 %v2055_v5, %v2054_v61 }
 0x25c   :  { %v2032_v14 = vmul.f32 0.125, %v2018_v6  ;;  %v2050_v15 = vadd.f32 %v2049_v7, %v2048_v63  ;;  %v2034_v16 = vmul.f32 0.125, %v2030_v8  ;;  %v2062_v17 = vadd.f32 %v2061_v9, %v2060_v1 }
 0x25d   :  { %v2063_v20 = vmul.f32 0.125, %v2044_v11  ;;  %v2067_v21 = vmul.f32 %v2031_v10, %v2031_v10  ;;  %v2065_v22 = vmul.f32 0.125, %v2056_v13  ;;  %v2069_v23 = vmul.f32 %v2033_v12, %v2033_v12 }
 0x25e   :  { %v2064_v26 = vmul.f32 0.125, %v2050_v15  ;;  %v2068_v27 = vmul.f32 %v2032_v14, %v2032_v14  ;;  %v2066_v28 = vmul.f32 0.125, %v2062_v17  ;;  %v2070_v29 = vmul.f32 %v2034_v16, %v2034_v16 }
 0x25f   :  { %v2071_v30 = vsub.f32 %v2063_v20, %v2067_v21  ;;  %v2073_v31 = vsub.f32 %v2065_v22, %v2069_v23  ;;  %v7549_v38 = vmov 1966171168   ;;  %v2093_v40 = vlaneseq }
 0x260   :  { %v2072_v32 = vsub.f32 %v2064_v26, %v2068_v27  ;;  %v2074_v33 = vsub.f32 %v2066_v28, %v2070_v29  ;;  %v2091_v39 = vunpack.c.l.s4 %v7549_v38  ;;  %v6885_v38 = vld [vmem:[#allocation8 + $0x22c] ss:$16 sps:$4 sm:$0xff]  }
 0x261   :  { %v2076_v34 = vadd.f32 1e-05, %v2071_v30  ;;  %v2078_v35 = vadd.f32 1e-05, %v2073_v31  ;;  %v2094_v42 = vshrl.u32 %v2093_v40, 7 }
 0x262   :  { %v2077_v36 = vadd.f32 1e-05, %v2072_v32  ;;  %v2079_v37 = vadd.f32 1e-05, %v2074_v33  ;;  %v2092_v41 = vunpack.c.0.s8 %v2091_v39  ;;  %v6874_v32 = vld [vmem:[#allocation8 + $0x200] ss:$16 sps:$4 sm:$0xff]  }
 0x263   :  { %7354 = vrsqrt.f32 %v2076_v34  ;;  %v7723_v54 = vsub.s32 0, %v2094_v42  ;;  %v7726_v56 = vsub.s32 1, %v2094_v42  ;;  %v7728_v57 = vsub.s32 2, %v2094_v42  ;;  %v6877_v33 = vld [vmem:[#allocation8 + $0x208] ss:$16 sps:$4 sm:$0xff]  }
 0x264   :  { %7356 = vrsqrt.f32 %v2078_v35  ;;  %v7716_v45 = vsub.s32 %v2092_v41, %v2094_v42  ;;  %v7730_v58 = vsub.s32 3, %v2094_v42  ;;  %v6880_v40 = vld [vmem:[#allocation8 + $0x220] ss:$16 sps:$4 sm:$0xff]   ;;  %v6883_v41 = vld [vmem:[#allocation8 + $0x228] ss:$16 sps:$4 sm:$0xff]  }
 0x265   :  { %7358 = vrsqrt.f32 %v2077_v36  ;;  %v6888_v42 = vld [vmem:[#allocation8 + $0x244] ss:$16 sps:$4 sm:$0xff]  }
 0x266   :  { %7360 = vrsqrt.f32 %v2079_v37  ;;  %v6882_v37 = vld [vmem:[#allocation8 + $0x224] ss:$16 sps:$4 sm:$0xff]  }
 0x26d   :  { %v7355_v43 = vpop.eup %7354 }
 0x26e   :  { %v7357_v44 = vpop.eup %7356 }
 0x26f   :  { %v7359_v46 = vpop.eup %7358 }
 0x270   :  { %v7361_v47 = vpop.eup %7360  ;;  %v2088_v48 = vcombine.low %v7355_v43, %v7359_v46  ;;  %v6891_v43 = vld [vmem:[#allocation8 + $0x24c] ss:$16 sps:$4 sm:$0xff]   ;;  %v6889_v46 = vld [vmem:[#allocation8 + $0x248] ss:$16 sps:$4 sm:$0xff]  }
 0x271   :  { %v2089_v49 = vcombine.low %v7357_v44, %v7361_v47  ;;  %v6886_v44 = vld [vmem:[#allocation8 + $0x240] ss:$16 sps:$4 sm:$0xff]   ;;  %v6894_v47 = vld [vmem:[#allocation8 + $0x264] ss:$16 sps:$4 sm:$0xff]  }
 0x272   :  { %v2096_v50 = vrot.slane %v2088_v48, %v7716_v45  ;;  %v6897_v48 = vld [vmem:[#allocation8 + $0x26c] ss:$16 sps:$4 sm:$0xff]  }
 0x273   :  { %v2103_v51 = vrot.slane %v2089_v49, %v7716_v45  ;;  %v6892_v49 = vld [vmem:[#allocation8 + $0x260] ss:$16 sps:$4 sm:$0xff]  }
 0x275   :  { %v2104_v52 = vcombine.low %v2096_v50, %v2103_v51  ;;  %v6895_v50 = vld [vmem:[#allocation8 + $0x268] ss:$16 sps:$4 sm:$0xff]   ;;  %v6900_v51 = vld [vmem:[#allocation8 + $0x284] ss:$16 sps:$4 sm:$0xff]  }
 0x277   :  { %v2111_v55 = vrot.slane %v2104_v52, %v7716_v45  ;;  %v6903_v52 = vld [vmem:[#allocation8 + $0x28c] ss:$16 sps:$4 sm:$0xff]  }
 0x279   :  { %v2113_v59 = vmul.f32 %v2111_v55, %v2075_v53  ;;  %v6898_v53 = vld [vmem:[#allocation8 + $0x280] ss:$16 sps:$4 sm:$0xff]   ;;  %v6901_v55 = vld [vmem:[#allocation8 + $0x288] ss:$16 sps:$4 sm:$0xff]  }
 0x27b   :  { %v2119_v60 = vrot.slane %v2113_v59, %v7723_v54  ;;  %v2123_v61 = vrot.slane %v2113_v59, %v7726_v56  ;;  %v2127_v62 = vrot.slane %v2113_v59, %v7728_v57  ;;  %v2131_v63 = vrot.slane %v2113_v59, %v7730_v58  ;;  %v6906_v59 = vld [vmem:[#allocation8 + $0x2a4] ss:$16 sps:$4 sm:$0xff]  }
 0x27d   :  { %v2136_v0 = vmul.f32 %v2119_v60, %v2031_v10  ;;  %v2137_v1 = vmul.f32 %v2123_v61, %v2032_v14  ;;  %v2138_v2 = vmul.f32 %v2127_v62, %v2033_v12  ;;  %v2139_v3 = vmul.f32 %v2131_v63, %v2034_v16  ;;  %v2114_v10 = vld [vmem:[#allocation12] ss:$4 sm:$0xf] }
 0x27e   :  { %v2173_v4 = vmul.f32 %v2131_v63, %v7704_v25  ;;  %v2171_v5 = vmul.f32 %v2123_v61, %v7702_v24  ;;  %v2170_v6 = vmul.f32 %v2119_v60, %v7692_v18  ;;  %v2172_v7 = vmul.f32 %v2127_v62, %v7694_v19  ;;  %v6909_v60 = vld [vmem:[#allocation8 + $0x2ac] ss:$16 sps:$4 sm:$0xff]   ;;  %v6904_v61 = vld [vmem:[#allocation8 + $0x2a0] ss:$16 sps:$4 sm:$0xff]   ;;  %v6907_v62 = vld [vmem:[#allocation8 + $0x2a8] ss:$16 sps:$4 sm:$0xff]  }
 0x27f   :  { %v2144_v8 = vcombine.low %v2136_v0, %v2137_v1  ;;  %v2145_v9 = vcombine.low %v2138_v2, %v2139_v3  ;;  %v2204_v16 = vstv %s2199_s27  ;;  %v6912_v63 = vld [vmem:[#allocation8 + $0x2c4] ss:$16 sps:$4 sm:$0xff]   ;;  %v6915_v0 = vld [vmem:[#allocation8 + $0x2cc] ss:$16 sps:$4 sm:$0xff]   ;;  %v6910_v1 = vld [vmem:[#allocation8 + $0x2c0] ss:$16 sps:$4 sm:$0xff]  }
 0x280   :  { %v6913_v2 = vld [vmem:[#allocation8 + $0x2c8] ss:$16 sps:$4 sm:$0xff]   ;;  %v6918_v3 = vld [vmem:[#allocation8 + $0x2e4] ss:$16 sps:$4 sm:$0xff]  }
 0x281   :  { %v2152_v11 = vrot.slane %v2144_v8, %v7716_v45  ;;  %v2159_v13 = vrot.slane %v2145_v9, %v7716_v45  ;;  %v6927_v8 = vld [vmem:[#allocation8 + $0x30c] ss:$16 sps:$4 sm:$0xff]   ;;  %v6922_v9 = vld [vmem:[#allocation8 + $0x300] ss:$16 sps:$4 sm:$0xff]  }
 0x283   :  { %v2160_v15 = vcombine.low %v2152_v11, %v2159_v13  ;;  %v6925_v11 = vld [vmem:[#allocation8 + $0x308] ss:$16 sps:$4 sm:$0xff]   ;;  %v6930_v13 = vld [vmem:[#allocation8 + $0x324] ss:$16 sps:$4 sm:$0xff]  }
 0x285   :  { %v2167_v12 = vrot.slane %v2160_v15, %v7716_v45  ;;  %v6933_v15 = vld [vmem:[#allocation8 + $0x32c] ss:$16 sps:$4 sm:$0xff]  }
 0x287   :  { %v2169_v14 = vsub.f32 %v2114_v10, %v2167_v12  ;;  %v6928_v10 = vld [vmem:[#allocation8 + $0x320] ss:$16 sps:$4 sm:$0xff]   ;;  %v6931_v12 = vld [vmem:[#allocation8 + $0x328] ss:$16 sps:$4 sm:$0xff]  }
 0x289   :  { %v2190_v25 = vrot.slane %v2169_v14, %v7730_v58  ;;  %v2182_v24 = vrot.slane %v2169_v14, %v7726_v56  ;;  %v2178_v18 = vrot.slane %v2169_v14, %v7723_v54  ;;  %v2186_v19 = vrot.slane %v2169_v14, %v7728_v57  ;;  %v6936_v14 = vld [vmem:[#allocation8 + $0x344] ss:$16 sps:$4 sm:$0xff]  }
 0x28b   :  { %v2198_v17 = vadd.f32 %v2190_v25, %v2173_v4  ;;  %v2196_v20 = vadd.f32 %v2182_v24, %v2171_v5  ;;  %v2195_v21 = vadd.f32 %v2178_v18, %v2170_v6  ;;  %v2197_v22 = vadd.f32 %v2186_v19, %v2172_v7  ;;  %v6921_v4 = vld [vmem:[#allocation8 + $0x2ec] ss:$16 sps:$4 sm:$0xff]   ;;  %v6916_v5 = vld [vmem:[#allocation8 + $0x2e0] ss:$16 sps:$4 sm:$0xff]   ;;  %v6919_v6 = vld [vmem:[#allocation8 + $0x2e8] ss:$16 sps:$4 sm:$0xff]  }
 0x28c   :  { %v6924_v7 = vld [vmem:[#allocation8 + $0x304] ss:$16 sps:$4 sm:$0xff]   ;;  %v6939_v25 = vld [vmem:[#allocation8 + $0x34c] ss:$16 sps:$4 sm:$0xff]   ;;  %v6934_v24 = vld [vmem:[#allocation8 + $0x340] ss:$16 sps:$4 sm:$0xff]  }
 0x28d   :  { %vm2201_vm0 = vcmp.ge.f32.partialorder %v2196_v20, 0.0  ;;  %v2206_v23 = vmul.f32 %v2204_v16, %v2196_v20  ;;  %vm2200_vm1 = vcmp.ge.f32.partialorder %v2195_v21, 0.0  ;;  %v2205_v26 = vmul.f32 %v2204_v16, %v2195_v21  ;;  %v6937_v18 = vld [vmem:[#allocation8 + $0x348] ss:$16 sps:$4 sm:$0xff]   ;;  %v6942_v19 = vld [vmem:[#allocation8 + $0x364] ss:$16 sps:$4 sm:$0xff]  }
 0x28e   :  { %vm2203_vm2 = vcmp.ge.f32.partialorder %v2198_v17, 0.0  ;;  %v2208_v27 = vmul.f32 %v2204_v16, %v2198_v17  ;;  %vm2202_vm3 = vcmp.ge.f32.partialorder %v2197_v22, 0.0  ;;  %v2207_v28 = vmul.f32 %v2204_v16, %v2197_v22  ;;  %v6945_v16 = vld [vmem:[#allocation8 + $0x36c] ss:$16 sps:$4 sm:$0xff]  }
 0x28f   :  { %v2210_v29 = vsel %vm2201_vm0, %v2196_v20, %v2206_v23  ;;  %v2209_v30 = vsel %vm2200_vm1, %v2195_v21, %v2205_v26  ;;  %v6943_v20 = vld [vmem:[#allocation8 + $0x368] ss:$16 sps:$4 sm:$0xff]   ;;  %v6948_v21 = vld [vmem:[#allocation8 + $0x384] ss:$16 sps:$4 sm:$0xff]   ;;  %v6946_v23 = vld [vmem:[#allocation8 + $0x380] ss:$16 sps:$4 sm:$0xff]  }
 0x290   :  { %v2214_v31 = vpack.c.bf16 %v2210_v29, %v2210_v29  ;;  %v2213_v34 = vpack.c.bf16 %v2209_v30, %v2209_v30  ;;  %v2212_v35 = vsel %vm2203_vm2, %v2198_v17, %v2208_v27  ;;  %v7747_v36 = vsel %vm2202_vm3, %v2197_v22, %v2207_v28  ;;  %v6940_v17 = vld [vmem:[#allocation8 + $0x360] ss:$16 sps:$4 sm:$0xff]   ;;  %v6951_v22 = vld [vmem:[#allocation8 + $0x38c] ss:$16 sps:$4 sm:$0xff]   ;;  %v6949_v26 = vld [vmem:[#allocation8 + $0x388] ss:$16 sps:$4 sm:$0xff]  }
 0x291   :  { %v2216_v39 = vpack.c.bf16 %v2212_v35, %v2212_v35  ;;  %v6954_v27 = vld [vmem:[#allocation8 + $0x3a4] ss:$16 sps:$4 sm:$0xff]   ;;  %v6957_v28 = vld [vmem:[#allocation8 + $0x3ac] ss:$16 sps:$4 sm:$0xff]   ;;  %v6952_v29 = vld [vmem:[#allocation8 + $0x3a0] ss:$16 sps:$4 sm:$0xff]  }
 0x292   :  { %3017 = vmatprep.mubr.bf16.mxu0 %v2214_v31  ;;  %3099 = vmatprep.mubr.bf16.mxu1 %v2214_v31  ;;  %v6955_v30 = vld [vmem:[#allocation8 + $0x3a8] ss:$16 sps:$4 sm:$0xff]   ;;  %v6960_v31 = vld [vmem:[#allocation8 + $0x3c4] ss:$16 sps:$4 sm:$0xff]   ;;  %vm5679_vm0 = vcmask 7168  }
 0x293   :  { %3018 = vmatmul.mubr.bf16.vlgmr.msra.gmra.mrb[4].mxu0 %v2213_v34  ;;  %3100 = vmatmul.mubr.bf16.vlgmr.msra.gmra.mrb[4].mxu1 %v2213_v34  ;;  %v6961_v34 = vld [vmem:[#allocation8 + $0x3c8] ss:$16 sps:$4 sm:$0xff]   ;;  %v6966_v35 = vld [vmem:[#allocation8 + $0x3e4] ss:$16 sps:$4 sm:$0xff]  }
 0x294   :  { %3027 = vmatpush1.bf16.msra.mxu0 %v6874_v32  ;;  %3109 = vmatpush1.bf16.msra.mxu1 %v6877_v33  ;;  %v6963_v32 = vld [vmem:[#allocation8 + $0x3cc] ss:$16 sps:$4 sm:$0xff]   ;;  %v6958_v33 = vld [vmem:[#allocation8 + $0x3c0] ss:$16 sps:$4 sm:$0xff]  }
 0x295   :  { %3058 = vmatprep.mubr.bf16.mxu0 %v2216_v39  ;;  %3140 = vmatprep.mubr.bf16.mxu1 %v2216_v39  ;;  %v6967_v39 = vld [vmem:[#allocation8 + $0x3e8] ss:$16 sps:$4 sm:$0xff]  }
 0x296   :  { %3028 = vmatprep.subr.bf16.mxu0 %v6882_v37  ;;  %3110 = vmatprep.subr.bf16.mxu1 %v6885_v38  ;;  %v6969_v37 = vld [vmem:[#allocation8 + $0x3ec] ss:$16 sps:$4 sm:$0xff]   ;;  %v6964_v38 = vld [vmem:[#allocation8 + $0x3e0] ss:$16 sps:$4 sm:$0xff]  }
 0x298   :  { %3029 = vmatpush1.bf16.msra.mxu0 %v6880_v40  ;;  %3111 = vmatpush1.bf16.msra.mxu1 %v6883_v41  ;;  %v2215_v40 = vpack.c.bf16 %v7747_v36, %v7747_v36  ;;  %v6972_v41 = vld [vmem:[#allocation9 + $0x4] ss:$16 sps:$4 sm:$0xff]   ;;  %v6987_v36 = vld [vmem:[#allocation9 + $0x4c] ss:$16 sps:$4 sm:$0xff]  }
 0x299   :  { %3030 = vmatprep.subr.bf16.mxu0 %v6888_v42  ;;  %3112 = vmatprep.subr.bf16.mxu1 %v6891_v43  ;;  %v6975_v42 = vld [vmem:[#allocation9 + $0xc] ss:$16 sps:$4 sm:$0xff]   ;;  %v6970_v43 = vld [vmem:[#allocation9] ss:$16 sps:$4 sm:$0xff]  }
 0x29c   :  { %3031 = vmatpush1.bf16.msra.mxu0 %v6886_v44  ;;  %3113 = vmatpush1.bf16.msra.mxu1 %v6889_v46  ;;  %v6973_v44 = vld [vmem:[#allocation9 + $0x8] ss:$16 sps:$4 sm:$0xff]   ;;  %v6978_v46 = vld [vmem:[#allocation9 + $0x24] ss:$16 sps:$4 sm:$0xff]  }
 0x29d   :  { %3032 = vmatprep.subr.bf16.mxu0 %v6894_v47  ;;  %3114 = vmatprep.subr.bf16.mxu1 %v6897_v48  ;;  %v6981_v47 = vld [vmem:[#allocation9 + $0x2c] ss:$16 sps:$4 sm:$0xff]   ;;  %v6976_v48 = vld [vmem:[#allocation9 + $0x20] ss:$16 sps:$4 sm:$0xff]  }
 0x2a0   :  { %3033 = vmatpush1.bf16.msra.mxu0 %v6892_v49  ;;  %3115 = vmatpush1.bf16.msra.mxu1 %v6895_v50  ;;  %v6979_v49 = vld [vmem:[#allocation9 + $0x28] ss:$16 sps:$4 sm:$0xff]   ;;  %v6984_v50 = vld [vmem:[#allocation9 + $0x44] ss:$16 sps:$4 sm:$0xff]  }
 0x2a1   :  { %3034 = vmatprep.subr.bf16.mxu0 %v6900_v51  ;;  %3116 = vmatprep.subr.bf16.mxu1 %v6903_v52  ;;  %v6982_v51 = vld [vmem:[#allocation9 + $0x40] ss:$16 sps:$4 sm:$0xff]   ;;  %v6985_v52 = vld [vmem:[#allocation9 + $0x48] ss:$16 sps:$4 sm:$0xff]  }
 0x2a4   :  { %3035 = vmatpush1.bf16.msra.mxu0 %v6898_v53  ;;  %3117 = vmatpush1.bf16.msra.mxu1 %v6901_v55  ;;  %v6990_v53 = vld [vmem:[#allocation9 + $0x64] ss:$16 sps:$4 sm:$0xff]   ;;  %v6993_v55 = vld [vmem:[#allocation9 + $0x6c] ss:$16 sps:$4 sm:$0xff]  }
 0x2a5   :  { %3036 = vmatprep.subr.bf16.mxu0 %v6906_v59  ;;  %3118 = vmatprep.subr.bf16.mxu1 %v6909_v60  ;;  %v6988_v59 = vld [vmem:[#allocation9 + $0x60] ss:$16 sps:$4 sm:$0xff]   ;;  %v6991_v60 = vld [vmem:[#allocation9 + $0x68] ss:$16 sps:$4 sm:$0xff]  }
 0x2a8   :  { %3037 = vmatpush1.bf16.msra.mxu0 %v6904_v61  ;;  %3119 = vmatpush1.bf16.msra.mxu1 %v6907_v62  ;;  %v6996_v61 = vld [vmem:[#allocation9 + $0x84] ss:$16 sps:$4 sm:$0xff]   ;;  %v6999_v62 = vld [vmem:[#allocation9 + $0x8c] ss:$16 sps:$4 sm:$0xff]  }
 0x2a9   :  { %3038 = vmatprep.subr.bf16.mxu0 %v6912_v63  ;;  %3120 = vmatprep.subr.bf16.mxu1 %v6915_v0  ;;  %v6994_v63 = vld [vmem:[#allocation9 + $0x80] ss:$16 sps:$4 sm:$0xff]   ;;  %v6997_v0 = vld [vmem:[#allocation9 + $0x88] ss:$16 sps:$4 sm:$0xff]  }
 0x2ac   :  { %3039 = vmatpush1.bf16.msra.mxu0 %v6910_v1  ;;  %3121 = vmatpush1.bf16.msra.mxu1 %v6913_v2  ;;  %v7002_v1 = vld [vmem:[#allocation9 + $0xa4] ss:$16 sps:$4 sm:$0xff]   ;;  %v7000_v2 = vld [vmem:[#allocation9 + $0xa0] ss:$16 sps:$4 sm:$0xff]  }
 0x2ad   :  { %3040 = vmatprep.subr.bf16.mxu0 %v6918_v3  ;;  %3122 = vmatprep.subr.bf16.mxu1 %v6921_v4  ;;  %v7003_v3 = vld [vmem:[#allocation9 + $0xa8] ss:$16 sps:$4 sm:$0xff]   ;;  %v7005_v4 = vld [vmem:[#allocation9 + $0xac] ss:$16 sps:$4 sm:$0xff]  }
 0x2b0   :  { %3041 = vmatpush1.bf16.msra.mxu0 %v6916_v5  ;;  %3123 = vmatpush1.bf16.msra.mxu1 %v6919_v6  ;;  %v7008_v5 = vld [vmem:[#allocation9 + $0xc4] ss:$16 sps:$4 sm:$0xff]   ;;  %v7011_v6 = vld [vmem:[#allocation9 + $0xcc] ss:$16 sps:$4 sm:$0xff]  }
 0x2b1   :  { %3042 = vmatprep.subr.bf16.mxu0 %v6924_v7  ;;  %3124 = vmatprep.subr.bf16.mxu1 %v6927_v8  ;;  %v7006_v7 = vld [vmem:[#allocation9 + $0xc0] ss:$16 sps:$4 sm:$0xff]   ;;  %v7009_v8 = vld [vmem:[#allocation9 + $0xc8] ss:$16 sps:$4 sm:$0xff]  }
 0x2b4   :  { %3043 = vmatpush1.bf16.msra.mxu0 %v6922_v9  ;;  %3125 = vmatpush1.bf16.msra.mxu1 %v6925_v11  ;;  %v7014_v9 = vld [vmem:[#allocation9 + $0xe4] ss:$16 sps:$4 sm:$0xff]   ;;  %v7017_v11 = vld [vmem:[#allocation9 + $0xec] ss:$16 sps:$4 sm:$0xff]  }
 0x2b5   :  { %3044 = vmatprep.subr.bf16.mxu0 %v6930_v13  ;;  %3126 = vmatprep.subr.bf16.mxu1 %v6933_v15  ;;  %v7012_v13 = vld [vmem:[#allocation9 + $0xe0] ss:$16 sps:$4 sm:$0xff]   ;;  %v7015_v15 = vld [vmem:[#allocation9 + $0xe8] ss:$16 sps:$4 sm:$0xff]  }
 0x2b8   :  { %3045 = vmatpush1.bf16.msra.mxu0 %v6928_v10  ;;  %3127 = vmatpush1.bf16.msra.mxu1 %v6931_v12  ;;  %v7020_v10 = vld [vmem:[#allocation9 + $0x104] ss:$16 sps:$4 sm:$0xff]   ;;  %v7023_v12 = vld [vmem:[#allocation9 + $0x10c] ss:$16 sps:$4 sm:$0xff]  }
 0x2b9   :  { %3046 = vmatprep.subr.bf16.mxu0 %v6936_v14  ;;  %3128 = vmatprep.subr.bf16.mxu1 %v6939_v25  ;;  %v7018_v14 = vld [vmem:[#allocation9 + $0x100] ss:$16 sps:$4 sm:$0xff]   ;;  %v7021_v25 = vld [vmem:[#allocation9 + $0x108] ss:$16 sps:$4 sm:$0xff]  }
 0x2bc   :  { %3047 = vmatpush1.bf16.msra.mxu0 %v6934_v24  ;;  %3129 = vmatpush1.bf16.msra.mxu1 %v6937_v18  ;;  %v7026_v24 = vld [vmem:[#allocation9 + $0x124] ss:$16 sps:$4 sm:$0xff]   ;;  %v7029_v18 = vld [vmem:[#allocation9 + $0x12c] ss:$16 sps:$4 sm:$0xff]  }
 0x2bd   :  { %3048 = vmatprep.subr.bf16.mxu0 %v6942_v19  ;;  %3130 = vmatprep.subr.bf16.mxu1 %v6945_v16  ;;  %v7024_v19 = vld [vmem:[#allocation9 + $0x120] ss:$16 sps:$4 sm:$0xff]   ;;  %v7027_v16 = vld [vmem:[#allocation9 + $0x128] ss:$16 sps:$4 sm:$0xff]  }
 0x2c0   :  { %3049 = vmatpush1.bf16.msra.mxu0 %v6940_v17  ;;  %3131 = vmatpush1.bf16.msra.mxu1 %v6943_v20  ;;  %v7032_v17 = vld [vmem:[#allocation9 + $0x144] ss:$16 sps:$4 sm:$0xff]   ;;  %v7030_v20 = vld [vmem:[#allocation9 + $0x140] ss:$16 sps:$4 sm:$0xff]  }
 0x2c1   :  { %3050 = vmatprep.subr.bf16.mxu0 %v6948_v21  ;;  %3132 = vmatprep.subr.bf16.mxu1 %v6951_v22  ;;  %v7033_v21 = vld [vmem:[#allocation9 + $0x148] ss:$16 sps:$4 sm:$0xff]   ;;  %v7035_v22 = vld [vmem:[#allocation9 + $0x14c] ss:$16 sps:$4 sm:$0xff]  }
 0x2c4   :  { %3051 = vmatpush1.bf16.msra.mxu0 %v6946_v23  ;;  %3133 = vmatpush1.bf16.msra.mxu1 %v6949_v26  ;;  %v7038_v23 = vld [vmem:[#allocation9 + $0x164] ss:$16 sps:$4 sm:$0xff]   ;;  %v7041_v26 = vld [vmem:[#allocation9 + $0x16c] ss:$16 sps:$4 sm:$0xff]  }
 0x2c5   :  { %3052 = vmatprep.subr.bf16.mxu0 %v6954_v27  ;;  %3134 = vmatprep.subr.bf16.mxu1 %v6957_v28  ;;  %v7036_v27 = vld [vmem:[#allocation9 + $0x160] ss:$16 sps:$4 sm:$0xff]   ;;  %v7039_v28 = vld [vmem:[#allocation9 + $0x168] ss:$16 sps:$4 sm:$0xff]  }
 0x2c8   :  { %3053 = vmatpush1.bf16.msra.mxu0 %v6952_v29  ;;  %3135 = vmatpush1.bf16.msra.mxu1 %v6955_v30  ;;  %v7044_v29 = vld [vmem:[#allocation9 + $0x184] ss:$16 sps:$4 sm:$0xff]   ;;  %v7047_v30 = vld [vmem:[#allocation9 + $0x18c] ss:$16 sps:$4 sm:$0xff]  }
 0x2c9   :  { %3054 = vmatprep.subr.bf16.mxu0 %v6960_v31  ;;  %3136 = vmatprep.subr.bf16.mxu1 %v6963_v32  ;;  %v7042_v31 = vld [vmem:[#allocation9 + $0x180] ss:$16 sps:$4 sm:$0xff]   ;;  %v7045_v32 = vld [vmem:[#allocation9 + $0x188] ss:$16 sps:$4 sm:$0xff]  }
 0x2cc   :  { %3055 = vmatpush1.bf16.msra.mxu0 %v6958_v33  ;;  %3137 = vmatpush1.bf16.msra.mxu1 %v6961_v34  ;;  %v7050_v33 = vld [vmem:[#allocation9 + $0x1a4] ss:$16 sps:$4 sm:$0xff]   ;;  %v7053_v34 = vld [vmem:[#allocation9 + $0x1ac] ss:$16 sps:$4 sm:$0xff]  }
 0x2cd   :  { %3056 = vmatprep.subr.bf16.mxu0 %v6966_v35  ;;  %3138 = vmatprep.subr.bf16.mxu1 %v6969_v37  ;;  %v7048_v35 = vld [vmem:[#allocation9 + $0x1a0] ss:$16 sps:$4 sm:$0xff]   ;;  %v7051_v37 = vld [vmem:[#allocation9 + $0x1a8] ss:$16 sps:$4 sm:$0xff]  }
 0x2d0   :  { %3057 = vmatpush1.bf16.msra.mxu0 %v6964_v38  ;;  %3139 = vmatpush1.bf16.msra.mxu1 %v6967_v39  ;;  %v7056_v38 = vld [vmem:[#allocation9 + $0x1c4] ss:$16 sps:$4 sm:$0xff]   ;;  %v7059_v39 = vld [vmem:[#allocation9 + $0x1cc] ss:$16 sps:$4 sm:$0xff]  }
 0x2d1   :  { %4129 = vmatprep.subr.bf16.mxu0 %v6972_v41  ;;  %4211 = vmatprep.subr.bf16.mxu1 %v6975_v42  ;;  %v7057_v41 = vld [vmem:[#allocation9 + $0x1c8] ss:$16 sps:$4 sm:$0xff]   ;;  %v7062_v42 = vld [vmem:[#allocation9 + $0x1e4] ss:$16 sps:$4 sm:$0xff]  }
 0x2d3   :  { %3059 = vmatmul.mubr.bf16.vlgmr.msra.gmra.mrb[4].mxu0 %v2215_v40  ;;  %3141 = vmatmul.mubr.bf16.vlgmr.msra.gmra.mrb[4].mxu1 %v2215_v40  ;;  %v7054_v40 = vld [vmem:[#allocation9 + $0x1c0] ss:$16 sps:$4 sm:$0xff]  }
 0x2d4   :  { %4130 = vmatpush1.bf16.msra.mxu0 %v6970_v43  ;;  %4212 = vmatpush1.bf16.msra.mxu1 %v6973_v44  ;;  %v7060_v43 = vld [vmem:[#allocation9 + $0x1e0] ss:$16 sps:$4 sm:$0xff]   ;;  %v7065_v44 = vld [vmem:[#allocation9 + $0x1ec] ss:$16 sps:$4 sm:$0xff]  }
 0x2d5   :  { %4131 = vmatprep.subr.bf16.mxu0 %v6978_v46  ;;  %4213 = vmatprep.subr.bf16.mxu1 %v6981_v47  ;;  %v7063_v46 = vld [vmem:[#allocation9 + $0x1e8] ss:$16 sps:$4 sm:$0xff]   ;;  %v7068_v47 = vld [vmem:[#allocation9 + $0x204] ss:$16 sps:$4 sm:$0xff]  }
 0x2d8   :  { %4132 = vmatpush1.bf16.msra.mxu0 %v6976_v48  ;;  %4214 = vmatpush1.bf16.msra.mxu1 %v6979_v49  ;;  %v7071_v48 = vld [vmem:[#allocation9 + $0x20c] ss:$16 sps:$4 sm:$0xff]  }
 0x2d9   :  { %4133 = vmatprep.subr.bf16.mxu0 %v6984_v50  ;;  %4215 = vmatprep.subr.bf16.mxu1 %v6987_v36 }
 0x2dc   :  { %4134 = vmatpush1.bf16.msra.mxu0 %v6982_v51  ;;  %4216 = vmatpush1.bf16.msra.mxu1 %v6985_v52 }
 0x2dd   :  { %4135 = vmatprep.subr.bf16.mxu0 %v6990_v53  ;;  %4217 = vmatprep.subr.bf16.mxu1 %v6993_v55 }
 0x2e0   :  { %4136 = vmatpush1.bf16.msra.mxu0 %v6988_v59  ;;  %4218 = vmatpush1.bf16.msra.mxu1 %v6991_v60 }
 0x2e1   :  { %4137 = vmatprep.subr.bf16.mxu0 %v6996_v61  ;;  %4219 = vmatprep.subr.bf16.mxu1 %v6999_v62 }
 0x2e4   :  { %4138 = vmatpush1.bf16.msra.mxu0 %v6994_v63  ;;  %4220 = vmatpush1.bf16.msra.mxu1 %v6997_v0 }
 0x2e5   :  { %4139 = vmatprep.subr.bf16.mxu0 %v7002_v1  ;;  %4221 = vmatprep.subr.bf16.mxu1 %v7005_v4 }
 0x2e8   :  { %4140 = vmatpush1.bf16.msra.mxu0 %v7000_v2  ;;  %4222 = vmatpush1.bf16.msra.mxu1 %v7003_v3 }
 0x2e9   :  { %4141 = vmatprep.subr.bf16.mxu0 %v7008_v5  ;;  %4223 = vmatprep.subr.bf16.mxu1 %v7011_v6 }
 0x2ec   :  { %4142 = vmatpush1.bf16.msra.mxu0 %v7006_v7  ;;  %4224 = vmatpush1.bf16.msra.mxu1 %v7009_v8 }
 0x2ed   :  { %4143 = vmatprep.subr.bf16.mxu0 %v7014_v9  ;;  %4225 = vmatprep.subr.bf16.mxu1 %v7017_v11 }
 0x2f0   :  { %4144 = vmatpush1.bf16.msra.mxu0 %v7012_v13  ;;  %4226 = vmatpush1.bf16.msra.mxu1 %v7015_v15 }
 0x2f1   :  { %4145 = vmatprep.subr.bf16.mxu0 %v7020_v10  ;;  %4227 = vmatprep.subr.bf16.mxu1 %v7023_v12 }
 0x2f4   :  { %4146 = vmatpush1.bf16.msra.mxu0 %v7018_v14  ;;  %4228 = vmatpush1.bf16.msra.mxu1 %v7021_v25 }
 0x2f5   :  { %4147 = vmatprep.subr.bf16.mxu0 %v7026_v24  ;;  %4229 = vmatprep.subr.bf16.mxu1 %v7029_v18 }
 0x2f8   :  { %4148 = vmatpush1.bf16.msra.mxu0 %v7024_v19  ;;  %4230 = vmatpush1.bf16.msra.mxu1 %v7027_v16 }
 0x2f9   :  { %4149 = vmatprep.subr.bf16.mxu0 %v7032_v17  ;;  %4231 = vmatprep.subr.bf16.mxu1 %v7035_v22 }
 0x2fc   :  { %4150 = vmatpush1.bf16.msra.mxu0 %v7030_v20  ;;  %4232 = vmatpush1.bf16.msra.mxu1 %v7033_v21 }
 0x2fd   :  { %4151 = vmatprep.subr.bf16.mxu0 %v7038_v23  ;;  %4233 = vmatprep.subr.bf16.mxu1 %v7041_v26 }
 0x300   :  { %4152 = vmatpush1.bf16.msra.mxu0 %v7036_v27  ;;  %4234 = vmatpush1.bf16.msra.mxu1 %v7039_v28 }
 0x301   :  { %4153 = vmatprep.subr.bf16.mxu0 %v7044_v29  ;;  %4235 = vmatprep.subr.bf16.mxu1 %v7047_v30 }
 0x304   :  { %4154 = vmatpush1.bf16.msra.mxu0 %v7042_v31  ;;  %4236 = vmatpush1.bf16.msra.mxu1 %v7045_v32 }
 0x305   :  { %4155 = vmatprep.subr.bf16.mxu0 %v7050_v33  ;;  %4237 = vmatprep.subr.bf16.mxu1 %v7053_v34 }
 0x308   :  { %4156 = vmatpush1.bf16.msra.mxu0 %v7048_v35  ;;  %4238 = vmatpush1.bf16.msra.mxu1 %v7051_v37 }
 0x309   :  { %4157 = vmatprep.subr.bf16.mxu0 %v7056_v38  ;;  %4239 = vmatprep.subr.bf16.mxu1 %v7059_v39 }
 0x30c   :  { %4158 = vmatpush1.bf16.msra.mxu0 %v7054_v40  ;;  %4240 = vmatpush1.bf16.msra.mxu1 %v7057_v41 }
 0x30d   :  { %4159 = vmatprep.subr.bf16.mxu0 %v7062_v42  ;;  %4241 = vmatprep.subr.bf16.mxu1 %v7065_v44 }
 0x310   :  { %4160 = vmatpush1.bf16.msra.mxu0 %v7060_v43  ;;  %4242 = vmatpush1.bf16.msra.mxu1 %v7063_v46 }
 0x311   :  { %4170 = vmatprep.subr.bf16.mxu0 %v7068_v47  ;;  %4252 = vmatprep.subr.bf16.mxu1 %v7071_v48 }
 0x3a6   :  { %v7751_v49 = vpop.f32.mrb[4].mxu0  ;;  %v7753_v50 = vpop.f32.mrb[4].mxu1 }
 0x3a7   :  { %v3149_v36 = vrot.slane %v7751_v49, 4  ;;  %v3177_v51 = vmul.f32 %v7751_v49, %v7751_v49  ;;  %v3161_v52 = vrot.slane %v7753_v50, 4  ;;  %v3179_v53 = vmul.f32 %v7753_v50, %v7753_v50  ;;  %v7761_v55 = vpop.f32.mrb[5].mxu0  ;;  %v7763_v59 = vpop.f32.mrb[5].mxu1 }
 0x3a8   :  { %v3155_v60 = vrot.slane %v7761_v55, 4  ;;  %v3178_v61 = vmul.f32 %v7761_v55, %v7761_v55  ;;  %v3167_v62 = vrot.slane %v7763_v59, 4  ;;  %v3180_v63 = vmul.f32 %v7763_v59, %v7763_v59  ;;  %v3064_v0 = vpop.f32.mrb[6].mxu0  ;;  %v3146_v1 = vpop.f32.mrb[6].mxu1 }
 0x3a9   :  { %v3150_v2 = vadd.f32 %v3149_v36, %v7751_v49  ;;  %v3181_v3 = vrot.slane %v3177_v51, 4  ;;  %v3162_v4 = vadd.f32 %v3161_v52, %v7753_v50  ;;  %v3193_v5 = vrot.slane %v3179_v53, 4  ;;  %v3065_v6 = vpop.f32.mrb[7].mxu0  ;;  %v3147_v7 = vpop.f32.mrb[7].mxu1 }
 0x3aa   :  { %v3156_v8 = vadd.f32 %v3155_v60, %v7761_v55  ;;  %v3187_v9 = vrot.slane %v3178_v61, 4  ;;  %v3168_v11 = vadd.f32 %v3167_v62, %v7763_v59  ;;  %v3199_v13 = vrot.slane %v3180_v63, 4 }
 0x3ab   :  { %v3151_v15 = vrot.slane %v3150_v2, 2  ;;  %v3182_v10 = vadd.f32 %v3181_v3, %v3177_v51  ;;  %v3163_v12 = vrot.slane %v3162_v4, 2  ;;  %v3194_v14 = vadd.f32 %v3193_v5, %v3179_v53 }
 0x3ac   :  { %v3157_v25 = vrot.slane %v3156_v8, 2  ;;  %v3188_v24 = vadd.f32 %v3187_v9, %v3178_v61  ;;  %v3169_v18 = vrot.slane %v3168_v11, 2  ;;  %v3200_v19 = vadd.f32 %v3199_v13, %v3180_v63 }
 0x3ad   :  { %v3152_v16 = vadd.f32 %v3151_v15, %v3150_v2  ;;  %v3183_v17 = vrot.slane %v3182_v10, 2  ;;  %v3164_v20 = vadd.f32 %v3163_v12, %v3162_v4  ;;  %v3195_v21 = vrot.slane %v3194_v14, 2 }
 0x3ae   :  { %v3158_v22 = vadd.f32 %v3157_v25, %v3156_v8  ;;  %v3189_v23 = vrot.slane %v3188_v24, 2  ;;  %v3170_v26 = vadd.f32 %v3169_v18, %v3168_v11  ;;  %v3201_v27 = vrot.slane %v3200_v19, 2 }
 0x3af   :  { %v3153_v28 = vrot.slane %v3152_v16, 1  ;;  %v3184_v29 = vadd.f32 %v3183_v17, %v3182_v10  ;;  %v3165_v30 = vrot.slane %v3164_v20, 1  ;;  %v3196_v31 = vadd.f32 %v3195_v21, %v3194_v14 }
 0x3b0   :  { %v3159_v32 = vrot.slane %v3158_v22, 1  ;;  %v3190_v33 = vadd.f32 %v3189_v23, %v3188_v24  ;;  %v3171_v34 = vrot.slane %v3170_v26, 1  ;;  %v3202_v35 = vadd.f32 %v3201_v27, %v3200_v19 }
 0x3b1   :  { %v3154_v37 = vadd.f32 %v3153_v28, %v3152_v16  ;;  %v3185_v38 = vrot.slane %v3184_v29, 1  ;;  %v3166_v39 = vadd.f32 %v3165_v30, %v3164_v20  ;;  %v3197_v40 = vrot.slane %v3196_v31, 1  ;;  %v6074_v20 = vld [vmem:[%s7913_s6 + $0x1] ss:$4 sm:$0xf] }
 0x3b2   :  { %v3160_v41 = vadd.f32 %v3159_v32, %v3158_v22  ;;  %v3191_v42 = vrot.slane %v3190_v33, 1  ;;  %v3172_v43 = vadd.f32 %v3171_v34, %v3170_v26  ;;  %v3203_v44 = vrot.slane %v3202_v35, 1 }
 0x3b3   :  { %v3173_v46 = vmul.f32 0.125, %v3154_v37  ;;  %v3186_v47 = vadd.f32 %v3185_v38, %v3184_v29  ;;  %v3175_v48 = vmul.f32 0.125, %v3166_v39  ;;  %v3198_v36 = vadd.f32 %v3197_v40, %v3196_v31 }
 0x3b4   :  { %v3174_v51 = vmul.f32 0.125, %v3160_v41  ;;  %v3192_v52 = vadd.f32 %v3191_v42, %v3190_v33  ;;  %v3176_v53 = vmul.f32 0.125, %v3172_v43  ;;  %v3204_v60 = vadd.f32 %v3203_v44, %v3202_v35  ;;  %v3258_v43 = vld [vmem:[#allocation12 + $0x1] ss:$4 sm:$0xf] }
 0x3b5   :  { %v3205_v61 = vmul.f32 0.125, %v3186_v47  ;;  %v3209_v62 = vmul.f32 %v3173_v46, %v3173_v46  ;;  %v3207_v63 = vmul.f32 0.125, %v3198_v36  ;;  %v3211_v0 = vmul.f32 %v3175_v48, %v3175_v48 }
 0x3b6   :  { %v3206_v1 = vmul.f32 0.125, %v3192_v52  ;;  %v3210_v2 = vmul.f32 %v3174_v51, %v3174_v51  ;;  %v3208_v3 = vmul.f32 0.125, %v3204_v60  ;;  %v3212_v4 = vmul.f32 %v3176_v53, %v3176_v53 }
 0x3b7   :  { %v3213_v5 = vsub.f32 %v3205_v61, %v3209_v62  ;;  %v3215_v6 = vsub.f32 %v3207_v63, %v3211_v0  ;;  %v3348_v47 = vstv %s6075_s3 }
 0x3b8   :  { %v3214_v7 = vsub.f32 %v3206_v1, %v3210_v2  ;;  %v3216_v8 = vsub.f32 %v3208_v3, %v3212_v4  ;;  %v7066_v2 = vld [vmem:[#allocation9 + $0x200] ss:$16 sps:$4 sm:$0xff]   ;;  %v7069_v3 = vld [vmem:[#allocation9 + $0x208] ss:$16 sps:$4 sm:$0xff]  }
 0x3b9   :  { %v3219_v9 = vadd.f32 1e-05, %v3213_v5  ;;  %v3221_v11 = vadd.f32 1e-05, %v3215_v6 }
 0x3ba   :  { %v3220_v13 = vadd.f32 1e-05, %v3214_v7  ;;  %v3222_v15 = vadd.f32 1e-05, %v3216_v8  ;;  %v7074_v7 = vld [vmem:[#allocation9 + $0x224] ss:$16 sps:$4 sm:$0xff]  }
 0x3bb   :  { %7362 = vrsqrt.f32 %v3219_v9  ;;  %v7077_v8 = vld [vmem:[#allocation9 + $0x22c] ss:$16 sps:$4 sm:$0xff]  }
 0x3bc   :  { %7364 = vrsqrt.f32 %v3221_v11  ;;  %v7072_v11 = vld [vmem:[#allocation9 + $0x220] ss:$16 sps:$4 sm:$0xff]  }
 0x3bd   :  { %7366 = vrsqrt.f32 %v3220_v13  ;;  %v7075_v13 = vld [vmem:[#allocation9 + $0x228] ss:$16 sps:$4 sm:$0xff]  }
 0x3be   :  { %7368 = vrsqrt.f32 %v3222_v15  ;;  %v7080_v15 = vld [vmem:[#allocation9 + $0x244] ss:$16 sps:$4 sm:$0xff]  }
 0x3c5   :  { %v7363_v10 = vpop.eup %7362 }
 0x3c6   :  { %v7365_v12 = vpop.eup %7364 }
 0x3c7   :  { %v7367_v14 = vpop.eup %7366 }
 0x3c8   :  { %v7369_v25 = vpop.eup %7368  ;;  %v3231_v24 = vcombine.low %v7363_v10, %v7367_v14  ;;  %v7083_v10 = vld [vmem:[#allocation9 + $0x24c] ss:$16 sps:$4 sm:$0xff]   ;;  %v7081_v14 = vld [vmem:[#allocation9 + $0x248] ss:$16 sps:$4 sm:$0xff]  }
 0x3c9   :  { %v3232_v18 = vcombine.low %v7365_v12, %v7369_v25  ;;  %v7078_v12 = vld [vmem:[#allocation9 + $0x240] ss:$16 sps:$4 sm:$0xff]   ;;  %v7086_v25 = vld [vmem:[#allocation9 + $0x264] ss:$16 sps:$4 sm:$0xff]  }
 0x3ca   :  { %v3239_v19 = vrot.slane %v3231_v24, %v7716_v45  ;;  %v7089_v24 = vld [vmem:[#allocation9 + $0x26c] ss:$16 sps:$4 sm:$0xff]  }
 0x3cb   :  { %v3246_v16 = vrot.slane %v3232_v18, %v7716_v45  ;;  %v7084_v18 = vld [vmem:[#allocation9 + $0x260] ss:$16 sps:$4 sm:$0xff]  }
 0x3cd   :  { %v3247_v17 = vcombine.low %v3239_v19, %v3246_v16  ;;  %v7087_v19 = vld [vmem:[#allocation9 + $0x268] ss:$16 sps:$4 sm:$0xff]   ;;  %v7092_v16 = vld [vmem:[#allocation9 + $0x284] ss:$16 sps:$4 sm:$0xff]  }
 0x3cf   :  { %v3254_v21 = vrot.slane %v3247_v17, %v7716_v45  ;;  %v7095_v17 = vld [vmem:[#allocation9 + $0x28c] ss:$16 sps:$4 sm:$0xff]  }
 0x3d1   :  { %v3256_v22 = vmul.f32 %v6074_v20, %v3254_v21  ;;  %v7090_v20 = vld [vmem:[#allocation9 + $0x280] ss:$16 sps:$4 sm:$0xff]   ;;  %v7093_v21 = vld [vmem:[#allocation9 + $0x288] ss:$16 sps:$4 sm:$0xff]  }
 0x3d3   :  { %v3263_v23 = vrot.slane %v3256_v22, %v7723_v54  ;;  %v3267_v26 = vrot.slane %v3256_v22, %v7726_v56  ;;  %v3271_v27 = vrot.slane %v3256_v22, %v7728_v57  ;;  %v3275_v28 = vrot.slane %v3256_v22, %v7730_v58  ;;  %v7098_v22 = vld [vmem:[#allocation9 + $0x2a4] ss:$16 sps:$4 sm:$0xff]  }
 0x3d5   :  { %v3280_v29 = vmul.f32 %v3263_v23, %v3173_v46  ;;  %v3281_v30 = vmul.f32 %v3267_v26, %v3174_v51  ;;  %v3282_v31 = vmul.f32 %v3271_v27, %v3175_v48  ;;  %v3283_v32 = vmul.f32 %v3275_v28, %v3176_v53 }
 0x3d6   :  { %v3317_v33 = vmul.f32 %v3275_v28, %v7763_v59  ;;  %v3315_v34 = vmul.f32 %v3267_v26, %v7761_v55  ;;  %v3314_v35 = vmul.f32 %v3263_v23, %v7751_v49  ;;  %v3316_v37 = vmul.f32 %v3271_v27, %v7753_v50  ;;  %v7101_v23 = vld [vmem:[#allocation9 + $0x2ac] ss:$16 sps:$4 sm:$0xff]   ;;  %v7096_v26 = vld [vmem:[#allocation9 + $0x2a0] ss:$16 sps:$4 sm:$0xff]   ;;  %v7099_v27 = vld [vmem:[#allocation9 + $0x2a8] ss:$16 sps:$4 sm:$0xff]  }
 0x3d7   :  { %v3288_v38 = vcombine.low %v3280_v29, %v3281_v30  ;;  %v3289_v39 = vcombine.low %v3282_v31, %v3283_v32  ;;  %v7104_v28 = vld [vmem:[#allocation9 + $0x2c4] ss:$16 sps:$4 sm:$0xff]   ;;  %v7107_v29 = vld [vmem:[#allocation9 + $0x2cc] ss:$16 sps:$4 sm:$0xff]   ;;  %v7102_v30 = vld [vmem:[#allocation9 + $0x2c0] ss:$16 sps:$4 sm:$0xff]  }
 0x3d8   :  { %v7105_v31 = vld [vmem:[#allocation9 + $0x2c8] ss:$16 sps:$4 sm:$0xff]   ;;  %v7110_v32 = vld [vmem:[#allocation9 + $0x2e4] ss:$16 sps:$4 sm:$0xff]  }
 0x3d9   :  { %v3296_v40 = vrot.slane %v3288_v38, %v7716_v45  ;;  %v3303_v41 = vrot.slane %v3289_v39, %v7716_v45  ;;  %v7119_v38 = vld [vmem:[#allocation9 + $0x30c] ss:$16 sps:$4 sm:$0xff]   ;;  %v7114_v39 = vld [vmem:[#allocation9 + $0x300] ss:$16 sps:$4 sm:$0xff]  }
 0x3db   :  { %v3304_v42 = vcombine.low %v3296_v40, %v3303_v41  ;;  %v7117_v40 = vld [vmem:[#allocation9 + $0x308] ss:$16 sps:$4 sm:$0xff]   ;;  %v7122_v41 = vld [vmem:[#allocation9 + $0x324] ss:$16 sps:$4 sm:$0xff]  }
 0x3dd   :  { %v3311_v44 = vrot.slane %v3304_v42, %v7716_v45  ;;  %v7125_v42 = vld [vmem:[#allocation9 + $0x32c] ss:$16 sps:$4 sm:$0xff]  }
 0x3df   :  { %v3313_v46 = vsub.f32 %v3258_v43, %v3311_v44  ;;  %v7120_v43 = vld [vmem:[#allocation9 + $0x320] ss:$16 sps:$4 sm:$0xff]   ;;  %v7123_v44 = vld [vmem:[#allocation9 + $0x328] ss:$16 sps:$4 sm:$0xff]  }
 0x3e1   :  { %v3334_v59 = vrot.slane %v3313_v46, %v7730_v58  ;;  %v3326_v55 = vrot.slane %v3313_v46, %v7726_v56  ;;  %v3322_v49 = vrot.slane %v3313_v46, %v7723_v54  ;;  %v3330_v50 = vrot.slane %v3313_v46, %v7728_v57  ;;  %v7128_v46 = vld [vmem:[#allocation9 + $0x344] ss:$16 sps:$4 sm:$0xff]  }
 0x3e3   :  { %v3342_v48 = vadd.f32 %v3334_v59, %v3317_v33  ;;  %v3340_v36 = vadd.f32 %v3326_v55, %v3315_v34  ;;  %v3339_v51 = vadd.f32 %v3322_v49, %v3314_v35  ;;  %v3341_v52 = vadd.f32 %v3330_v50, %v3316_v37  ;;  %v7113_v33 = vld [vmem:[#allocation9 + $0x2ec] ss:$16 sps:$4 sm:$0xff]   ;;  %v7108_v34 = vld [vmem:[#allocation9 + $0x2e0] ss:$16 sps:$4 sm:$0xff]   ;;  %v7111_v35 = vld [vmem:[#allocation9 + $0x2e8] ss:$16 sps:$4 sm:$0xff]  }
 0x3e4   :  { %v7116_v37 = vld [vmem:[#allocation9 + $0x304] ss:$16 sps:$4 sm:$0xff]   ;;  %v7131_v59 = vld [vmem:[#allocation9 + $0x34c] ss:$16 sps:$4 sm:$0xff]   ;;  %v7126_v55 = vld [vmem:[#allocation9 + $0x340] ss:$16 sps:$4 sm:$0xff]  }
 0x3e5   :  { %vm3345_vm4 = vcmp.ge.f32.partialorder %v3340_v36, 0.0  ;;  %v3350_v53 = vmul.f32 %v3348_v47, %v3340_v36  ;;  %vm3344_vm5 = vcmp.ge.f32.partialorder %v3339_v51, 0.0  ;;  %v3349_v60 = vmul.f32 %v3348_v47, %v3339_v51  ;;  %v7129_v49 = vld [vmem:[#allocation9 + $0x348] ss:$16 sps:$4 sm:$0xff]   ;;  %v7134_v50 = vld [vmem:[#allocation9 + $0x364] ss:$16 sps:$4 sm:$0xff]  }
 0x3e6   :  { %vm3347_vm6 = vcmp.ge.f32.partialorder %v3342_v48, 0.0  ;;  %v3352_v61 = vmul.f32 %v3348_v47, %v3342_v48  ;;  %vm3346_vm7 = vcmp.ge.f32.partialorder %v3341_v52, 0.0  ;;  %v3351_v62 = vmul.f32 %v3348_v47, %v3341_v52  ;;  %v7137_v47 = vld [vmem:[#allocation9 + $0x36c] ss:$16 sps:$4 sm:$0xff]  }
 0x3e7   :  { %v3354_v63 = vsel %vm3345_vm4, %v3340_v36, %v3350_v53  ;;  %v3353_v0 = vsel %vm3344_vm5, %v3339_v51, %v3349_v60  ;;  %v7135_v36 = vld [vmem:[#allocation9 + $0x368] ss:$16 sps:$4 sm:$0xff]   ;;  %v7140_v51 = vld [vmem:[#allocation9 + $0x384] ss:$16 sps:$4 sm:$0xff]   ;;  %v7138_v53 = vld [vmem:[#allocation9 + $0x380] ss:$16 sps:$4 sm:$0xff]  }
 0x3e8   :  { %v3358_v1 = vpack.c.bf16 %v3354_v63, %v3354_v63  ;;  %v3357_v4 = vpack.c.bf16 %v3353_v0, %v3353_v0  ;;  %v3356_v5 = vsel %vm3347_vm6, %v3342_v48, %v3352_v61  ;;  %v7796_v6 = vsel %vm3346_vm7, %v3341_v52, %v3351_v62  ;;  %v7132_v48 = vld [vmem:[#allocation9 + $0x360] ss:$16 sps:$4 sm:$0xff]   ;;  %v7143_v52 = vld [vmem:[#allocation9 + $0x38c] ss:$16 sps:$4 sm:$0xff]   ;;  %v7141_v60 = vld [vmem:[#allocation9 + $0x388] ss:$16 sps:$4 sm:$0xff]  }
 0x3e9   :  { %v3360_v9 = vpack.c.bf16 %v3356_v5, %v3356_v5  ;;  %v7146_v61 = vld [vmem:[#allocation9 + $0x3a4] ss:$16 sps:$4 sm:$0xff]   ;;  %v7149_v62 = vld [vmem:[#allocation9 + $0x3ac] ss:$16 sps:$4 sm:$0xff]   ;;  %v7144_v63 = vld [vmem:[#allocation9 + $0x3a0] ss:$16 sps:$4 sm:$0xff]  }
 0x3ea   :  { %4161 = vmatprep.mubr.bf16.mxu0 %v3358_v1  ;;  %4243 = vmatprep.mubr.bf16.mxu1 %v3358_v1  ;;  %v7147_v0 = vld [vmem:[#allocation9 + $0x3a8] ss:$16 sps:$4 sm:$0xff]   ;;  %v7152_v1 = vld [vmem:[#allocation9 + $0x3c4] ss:$16 sps:$4 sm:$0xff]  }
 0x3eb   :  { %4162 = vmatmul.mubr.bf16.vlgmr.msra.gmra.mrb[8].mxu0 %v3357_v4  ;;  %4244 = vmatmul.mubr.bf16.vlgmr.msra.gmra.mrb[8].mxu1 %v3357_v4  ;;  %v7153_v4 = vld [vmem:[#allocation9 + $0x3c8] ss:$16 sps:$4 sm:$0xff]   ;;  %v7158_v5 = vld [vmem:[#allocation9 + $0x3e4] ss:$16 sps:$4 sm:$0xff]  }
 0x3ec   :  { %4171 = vmatpush1.bf16.msra.mxu0 %v7066_v2  ;;  %4253 = vmatpush1.bf16.msra.mxu1 %v7069_v3  ;;  %v7155_v2 = vld [vmem:[#allocation9 + $0x3cc] ss:$16 sps:$4 sm:$0xff]   ;;  %v7150_v3 = vld [vmem:[#allocation9 + $0x3c0] ss:$16 sps:$4 sm:$0xff]  }
 0x3ed   :  { %4202 = vmatprep.mubr.bf16.mxu0 %v3360_v9  ;;  %4284 = vmatprep.mubr.bf16.mxu1 %v3360_v9  ;;  %v7159_v9 = vld [vmem:[#allocation9 + $0x3e8] ss:$16 sps:$4 sm:$0xff]  }
 0x3ee   :  { %4172 = vmatprep.subr.bf16.mxu0 %v7074_v7  ;;  %4254 = vmatprep.subr.bf16.mxu1 %v7077_v8  ;;  %v7161_v7 = vld [vmem:[#allocation9 + $0x3ec] ss:$16 sps:$4 sm:$0xff]   ;;  %v7156_v8 = vld [vmem:[#allocation9 + $0x3e0] ss:$16 sps:$4 sm:$0xff]  }
 0x3f0   :  { %4173 = vmatpush1.bf16.msra.mxu0 %v7072_v11  ;;  %4255 = vmatpush1.bf16.msra.mxu1 %v7075_v13  ;;  %v3359_v11 = vpack.c.bf16 %v7796_v6, %v7796_v6  ;;  %v7164_v13 = vld [vmem:[#allocation11 + $0x4] ss:$16 sps:$4 sm:$0xff]   ;;  %v7179_v6 = vld [vmem:[#allocation11 + $0x4c] ss:$16 sps:$4 sm:$0xff]  }
 0x3f1   :  { %4174 = vmatprep.subr.bf16.mxu0 %v7080_v15  ;;  %4256 = vmatprep.subr.bf16.mxu1 %v7083_v10  ;;  %v7167_v15 = vld [vmem:[#allocation11 + $0xc] ss:$16 sps:$4 sm:$0xff]   ;;  %v7162_v10 = vld [vmem:[#allocation11] ss:$16 sps:$4 sm:$0xff]  }
 0x3f4   :  { %4175 = vmatpush1.bf16.msra.mxu0 %v7078_v12  ;;  %4257 = vmatpush1.bf16.msra.mxu1 %v7081_v14  ;;  %v7165_v12 = vld [vmem:[#allocation11 + $0x8] ss:$16 sps:$4 sm:$0xff]   ;;  %v7170_v14 = vld [vmem:[#allocation11 + $0x24] ss:$16 sps:$4 sm:$0xff]  }
 0x3f5   :  { %4176 = vmatprep.subr.bf16.mxu0 %v7086_v25  ;;  %4258 = vmatprep.subr.bf16.mxu1 %v7089_v24  ;;  %v7173_v25 = vld [vmem:[#allocation11 + $0x2c] ss:$16 sps:$4 sm:$0xff]   ;;  %v7168_v24 = vld [vmem:[#allocation11 + $0x20] ss:$16 sps:$4 sm:$0xff]  }
 0x3f8   :  { %4177 = vmatpush1.bf16.msra.mxu0 %v7084_v18  ;;  %4259 = vmatpush1.bf16.msra.mxu1 %v7087_v19  ;;  %v7171_v18 = vld [vmem:[#allocation11 + $0x28] ss:$16 sps:$4 sm:$0xff]   ;;  %v7176_v19 = vld [vmem:[#allocation11 + $0x44] ss:$16 sps:$4 sm:$0xff]  }
 0x3f9   :  { %4178 = vmatprep.subr.bf16.mxu0 %v7092_v16  ;;  %4260 = vmatprep.subr.bf16.mxu1 %v7095_v17  ;;  %v7174_v16 = vld [vmem:[#allocation11 + $0x40] ss:$16 sps:$4 sm:$0xff]   ;;  %v7177_v17 = vld [vmem:[#allocation11 + $0x48] ss:$16 sps:$4 sm:$0xff]  }
 0x3fc   :  { %4179 = vmatpush1.bf16.msra.mxu0 %v7090_v20  ;;  %4261 = vmatpush1.bf16.msra.mxu1 %v7093_v21  ;;  %v7182_v20 = vld [vmem:[#allocation11 + $0x64] ss:$16 sps:$4 sm:$0xff]   ;;  %v7185_v21 = vld [vmem:[#allocation11 + $0x6c] ss:$16 sps:$4 sm:$0xff]  }
 0x3fd   :  { %4180 = vmatprep.subr.bf16.mxu0 %v7098_v22  ;;  %4262 = vmatprep.subr.bf16.mxu1 %v7101_v23  ;;  %v7180_v22 = vld [vmem:[#allocation11 + $0x60] ss:$16 sps:$4 sm:$0xff]   ;;  %v7183_v23 = vld [vmem:[#allocation11 + $0x68] ss:$16 sps:$4 sm:$0xff]  }
 0x400   :  { %4181 = vmatpush1.bf16.msra.mxu0 %v7096_v26  ;;  %4263 = vmatpush1.bf16.msra.mxu1 %v7099_v27  ;;  %v7188_v26 = vld [vmem:[#allocation11 + $0x84] ss:$16 sps:$4 sm:$0xff]   ;;  %v7191_v27 = vld [vmem:[#allocation11 + $0x8c] ss:$16 sps:$4 sm:$0xff]  }
 0x401   :  { %4182 = vmatprep.subr.bf16.mxu0 %v7104_v28  ;;  %4264 = vmatprep.subr.bf16.mxu1 %v7107_v29  ;;  %v7186_v28 = vld [vmem:[#allocation11 + $0x80] ss:$16 sps:$4 sm:$0xff]   ;;  %v7189_v29 = vld [vmem:[#allocation11 + $0x88] ss:$16 sps:$4 sm:$0xff]  }
 0x404   :  { %4183 = vmatpush1.bf16.msra.mxu0 %v7102_v30  ;;  %4265 = vmatpush1.bf16.msra.mxu1 %v7105_v31  ;;  %v7194_v30 = vld [vmem:[#allocation11 + $0xa4] ss:$16 sps:$4 sm:$0xff]   ;;  %v7192_v31 = vld [vmem:[#allocation11 + $0xa0] ss:$16 sps:$4 sm:$0xff]  }
 0x405   :  { %4184 = vmatprep.subr.bf16.mxu0 %v7110_v32  ;;  %4266 = vmatprep.subr.bf16.mxu1 %v7113_v33  ;;  %v7195_v32 = vld [vmem:[#allocation11 + $0xa8] ss:$16 sps:$4 sm:$0xff]   ;;  %v7197_v33 = vld [vmem:[#allocation11 + $0xac] ss:$16 sps:$4 sm:$0xff]  }
 0x408   :  { %4185 = vmatpush1.bf16.msra.mxu0 %v7108_v34  ;;  %4267 = vmatpush1.bf16.msra.mxu1 %v7111_v35  ;;  %v7200_v34 = vld [vmem:[#allocation11 + $0xc4] ss:$16 sps:$4 sm:$0xff]   ;;  %v7203_v35 = vld [vmem:[#allocation11 + $0xcc] ss:$16 sps:$4 sm:$0xff]  }
 0x409   :  { %4186 = vmatprep.subr.bf16.mxu0 %v7116_v37  ;;  %4268 = vmatprep.subr.bf16.mxu1 %v7119_v38  ;;  %v7198_v37 = vld [vmem:[#allocation11 + $0xc0] ss:$16 sps:$4 sm:$0xff]   ;;  %v7201_v38 = vld [vmem:[#allocation11 + $0xc8] ss:$16 sps:$4 sm:$0xff]  }
 0x40c   :  { %4187 = vmatpush1.bf16.msra.mxu0 %v7114_v39  ;;  %4269 = vmatpush1.bf16.msra.mxu1 %v7117_v40  ;;  %v7206_v39 = vld [vmem:[#allocation11 + $0xe4] ss:$16 sps:$4 sm:$0xff]   ;;  %v7209_v40 = vld [vmem:[#allocation11 + $0xec] ss:$16 sps:$4 sm:$0xff]  }
 0x40d   :  { %4188 = vmatprep.subr.bf16.mxu0 %v7122_v41  ;;  %4270 = vmatprep.subr.bf16.mxu1 %v7125_v42  ;;  %v7204_v41 = vld [vmem:[#allocation11 + $0xe0] ss:$16 sps:$4 sm:$0xff]   ;;  %v7207_v42 = vld [vmem:[#allocation11 + $0xe8] ss:$16 sps:$4 sm:$0xff]  }
 0x410   :  { %4189 = vmatpush1.bf16.msra.mxu0 %v7120_v43  ;;  %4271 = vmatpush1.bf16.msra.mxu1 %v7123_v44  ;;  %v7212_v43 = vld [vmem:[#allocation11 + $0x104] ss:$16 sps:$4 sm:$0xff]   ;;  %v7215_v44 = vld [vmem:[#allocation11 + $0x10c] ss:$16 sps:$4 sm:$0xff]  }
 0x411   :  { %4190 = vmatprep.subr.bf16.mxu0 %v7128_v46  ;;  %4272 = vmatprep.subr.bf16.mxu1 %v7131_v59  ;;  %v7210_v46 = vld [vmem:[#allocation11 + $0x100] ss:$16 sps:$4 sm:$0xff]   ;;  %v7213_v59 = vld [vmem:[#allocation11 + $0x108] ss:$16 sps:$4 sm:$0xff]  }
 0x414   :  { %4191 = vmatpush1.bf16.msra.mxu0 %v7126_v55  ;;  %4273 = vmatpush1.bf16.msra.mxu1 %v7129_v49  ;;  %v7218_v55 = vld [vmem:[#allocation11 + $0x124] ss:$16 sps:$4 sm:$0xff]   ;;  %v7221_v49 = vld [vmem:[#allocation11 + $0x12c] ss:$16 sps:$4 sm:$0xff]  }
 0x415   :  { %4192 = vmatprep.subr.bf16.mxu0 %v7134_v50  ;;  %4274 = vmatprep.subr.bf16.mxu1 %v7137_v47  ;;  %v7216_v50 = vld [vmem:[#allocation11 + $0x120] ss:$16 sps:$4 sm:$0xff]   ;;  %v7219_v47 = vld [vmem:[#allocation11 + $0x128] ss:$16 sps:$4 sm:$0xff]  }
 0x418   :  { %4193 = vmatpush1.bf16.msra.mxu0 %v7132_v48  ;;  %4275 = vmatpush1.bf16.msra.mxu1 %v7135_v36  ;;  %v7224_v48 = vld [vmem:[#allocation11 + $0x144] ss:$16 sps:$4 sm:$0xff]   ;;  %v7222_v36 = vld [vmem:[#allocation11 + $0x140] ss:$16 sps:$4 sm:$0xff]  }
 0x419   :  { %4194 = vmatprep.subr.bf16.mxu0 %v7140_v51  ;;  %4276 = vmatprep.subr.bf16.mxu1 %v7143_v52  ;;  %v7225_v51 = vld [vmem:[#allocation11 + $0x148] ss:$16 sps:$4 sm:$0xff]   ;;  %v7227_v52 = vld [vmem:[#allocation11 + $0x14c] ss:$16 sps:$4 sm:$0xff]  }
 0x41c   :  { %4195 = vmatpush1.bf16.msra.mxu0 %v7138_v53  ;;  %4277 = vmatpush1.bf16.msra.mxu1 %v7141_v60  ;;  %v7230_v53 = vld [vmem:[#allocation11 + $0x164] ss:$16 sps:$4 sm:$0xff]   ;;  %v7233_v60 = vld [vmem:[#allocation11 + $0x16c] ss:$16 sps:$4 sm:$0xff]  }
 0x41d   :  { %4196 = vmatprep.subr.bf16.mxu0 %v7146_v61  ;;  %4278 = vmatprep.subr.bf16.mxu1 %v7149_v62  ;;  %v7228_v61 = vld [vmem:[#allocation11 + $0x160] ss:$16 sps:$4 sm:$0xff]   ;;  %v7231_v62 = vld [vmem:[#allocation11 + $0x168] ss:$16 sps:$4 sm:$0xff]  }
 0x420   :  { %4197 = vmatpush1.bf16.msra.mxu0 %v7144_v63  ;;  %4279 = vmatpush1.bf16.msra.mxu1 %v7147_v0  ;;  %v7236_v63 = vld [vmem:[#allocation11 + $0x184] ss:$16 sps:$4 sm:$0xff]   ;;  %v7239_v0 = vld [vmem:[#allocation11 + $0x18c] ss:$16 sps:$4 sm:$0xff]  }
 0x421   :  { %4198 = vmatprep.subr.bf16.mxu0 %v7152_v1  ;;  %4280 = vmatprep.subr.bf16.mxu1 %v7155_v2  ;;  %v7234_v1 = vld [vmem:[#allocation11 + $0x180] ss:$16 sps:$4 sm:$0xff]   ;;  %v7237_v2 = vld [vmem:[#allocation11 + $0x188] ss:$16 sps:$4 sm:$0xff]  }
 0x424   :  { %4199 = vmatpush1.bf16.msra.mxu0 %v7150_v3  ;;  %4281 = vmatpush1.bf16.msra.mxu1 %v7153_v4  ;;  %v7242_v3 = vld [vmem:[#allocation11 + $0x1a4] ss:$16 sps:$4 sm:$0xff]   ;;  %v7245_v4 = vld [vmem:[#allocation11 + $0x1ac] ss:$16 sps:$4 sm:$0xff]  }
 0x425   :  { %4200 = vmatprep.subr.bf16.mxu0 %v7158_v5  ;;  %4282 = vmatprep.subr.bf16.mxu1 %v7161_v7  ;;  %v7240_v5 = vld [vmem:[#allocation11 + $0x1a0] ss:$16 sps:$4 sm:$0xff]   ;;  %v7243_v7 = vld [vmem:[#allocation11 + $0x1a8] ss:$16 sps:$4 sm:$0xff]  }
 0x428   :  { %4201 = vmatpush1.bf16.msra.mxu0 %v7156_v8  ;;  %4283 = vmatpush1.bf16.msra.mxu1 %v7159_v9  ;;  %v7248_v8 = vld [vmem:[#allocation11 + $0x1c4] ss:$16 sps:$4 sm:$0xff]   ;;  %v7251_v9 = vld [vmem:[#allocation11 + $0x1cc] ss:$16 sps:$4 sm:$0xff]  }
 0x429   :  { %5273 = vmatprep.subr.bf16.mxu0 %v7164_v13  ;;  %5355 = vmatprep.subr.bf16.mxu1 %v7167_v15  ;;  %v7249_v13 = vld [vmem:[#allocation11 + $0x1c8] ss:$16 sps:$4 sm:$0xff]   ;;  %v7254_v15 = vld [vmem:[#allocation11 + $0x1e4] ss:$16 sps:$4 sm:$0xff]  }
 0x42b   :  { %4203 = vmatmul.mubr.bf16.vlgmr.msra.gmra.mrb[8].mxu0 %v3359_v11  ;;  %4285 = vmatmul.mubr.bf16.vlgmr.msra.gmra.mrb[8].mxu1 %v3359_v11  ;;  %v7246_v11 = vld [vmem:[#allocation11 + $0x1c0] ss:$16 sps:$4 sm:$0xff]  }
 0x42c   :  { %5274 = vmatpush1.bf16.msra.mxu0 %v7162_v10  ;;  %5356 = vmatpush1.bf16.msra.mxu1 %v7165_v12  ;;  %v7252_v10 = vld [vmem:[#allocation11 + $0x1e0] ss:$16 sps:$4 sm:$0xff]   ;;  %v7257_v12 = vld [vmem:[#allocation11 + $0x1ec] ss:$16 sps:$4 sm:$0xff]  }
 0x42d   :  { %5275 = vmatprep.subr.bf16.mxu0 %v7170_v14  ;;  %5357 = vmatprep.subr.bf16.mxu1 %v7173_v25  ;;  %v7255_v14 = vld [vmem:[#allocation11 + $0x1e8] ss:$16 sps:$4 sm:$0xff]   ;;  %v7260_v25 = vld [vmem:[#allocation11 + $0x204] ss:$16 sps:$4 sm:$0xff]  }
 0x430   :  { %5276 = vmatpush1.bf16.msra.mxu0 %v7168_v24  ;;  %5358 = vmatpush1.bf16.msra.mxu1 %v7171_v18  ;;  %v7263_v24 = vld [vmem:[#allocation11 + $0x20c] ss:$16 sps:$4 sm:$0xff]  }
 0x431   :  { %5277 = vmatprep.subr.bf16.mxu0 %v7176_v19  ;;  %5359 = vmatprep.subr.bf16.mxu1 %v7179_v6 }
 0x434   :  { %5278 = vmatpush1.bf16.msra.mxu0 %v7174_v16  ;;  %5360 = vmatpush1.bf16.msra.mxu1 %v7177_v17 }
 0x435   :  { %5279 = vmatprep.subr.bf16.mxu0 %v7182_v20  ;;  %5361 = vmatprep.subr.bf16.mxu1 %v7185_v21 }
 0x438   :  { %5280 = vmatpush1.bf16.msra.mxu0 %v7180_v22  ;;  %5362 = vmatpush1.bf16.msra.mxu1 %v7183_v23 }
 0x439   :  { %5281 = vmatprep.subr.bf16.mxu0 %v7188_v26  ;;  %5363 = vmatprep.subr.bf16.mxu1 %v7191_v27 }
 0x43c   :  { %5282 = vmatpush1.bf16.msra.mxu0 %v7186_v28  ;;  %5364 = vmatpush1.bf16.msra.mxu1 %v7189_v29 }
 0x43d   :  { %5283 = vmatprep.subr.bf16.mxu0 %v7194_v30  ;;  %5365 = vmatprep.subr.bf16.mxu1 %v7197_v33 }
 0x440   :  { %5284 = vmatpush1.bf16.msra.mxu0 %v7192_v31  ;;  %5366 = vmatpush1.bf16.msra.mxu1 %v7195_v32 }
 0x441   :  { %5285 = vmatprep.subr.bf16.mxu0 %v7200_v34  ;;  %5367 = vmatprep.subr.bf16.mxu1 %v7203_v35 }
 0x444   :  { %5286 = vmatpush1.bf16.msra.mxu0 %v7198_v37  ;;  %5368 = vmatpush1.bf16.msra.mxu1 %v7201_v38 }
 0x445   :  { %5287 = vmatprep.subr.bf16.mxu0 %v7206_v39  ;;  %5369 = vmatprep.subr.bf16.mxu1 %v7209_v40 }
 0x448   :  { %5288 = vmatpush1.bf16.msra.mxu0 %v7204_v41  ;;  %5370 = vmatpush1.bf16.msra.mxu1 %v7207_v42 }
 0x449   :  { %5289 = vmatprep.subr.bf16.mxu0 %v7212_v43  ;;  %5371 = vmatprep.subr.bf16.mxu1 %v7215_v44 }
 0x44c   :  { %5290 = vmatpush1.bf16.msra.mxu0 %v7210_v46  ;;  %5372 = vmatpush1.bf16.msra.mxu1 %v7213_v59 }
 0x44d   :  { %5291 = vmatprep.subr.bf16.mxu0 %v7218_v55  ;;  %5373 = vmatprep.subr.bf16.mxu1 %v7221_v49 }
 0x450   :  { %5292 = vmatpush1.bf16.msra.mxu0 %v7216_v50  ;;  %5374 = vmatpush1.bf16.msra.mxu1 %v7219_v47 }
 0x451   :  { %5293 = vmatprep.subr.bf16.mxu0 %v7224_v48  ;;  %5375 = vmatprep.subr.bf16.mxu1 %v7227_v52 }
 0x454   :  { %5294 = vmatpush1.bf16.msra.mxu0 %v7222_v36  ;;  %5376 = vmatpush1.bf16.msra.mxu1 %v7225_v51 }
 0x455   :  { %5295 = vmatprep.subr.bf16.mxu0 %v7230_v53  ;;  %5377 = vmatprep.subr.bf16.mxu1 %v7233_v60 }
 0x458   :  { %5296 = vmatpush1.bf16.msra.mxu0 %v7228_v61  ;;  %5378 = vmatpush1.bf16.msra.mxu1 %v7231_v62 }
 0x459   :  { %5297 = vmatprep.subr.bf16.mxu0 %v7236_v63  ;;  %5379 = vmatprep.subr.bf16.mxu1 %v7239_v0 }
 0x45c   :  { %5298 = vmatpush1.bf16.msra.mxu0 %v7234_v1  ;;  %5380 = vmatpush1.bf16.msra.mxu1 %v7237_v2 }
 0x45d   :  { %5299 = vmatprep.subr.bf16.mxu0 %v7242_v3  ;;  %5381 = vmatprep.subr.bf16.mxu1 %v7245_v4 }
 0x460   :  { %5300 = vmatpush1.bf16.msra.mxu0 %v7240_v5  ;;  %5382 = vmatpush1.bf16.msra.mxu1 %v7243_v7 }
 0x461   :  { %5301 = vmatprep.subr.bf16.mxu0 %v7248_v8  ;;  %5383 = vmatprep.subr.bf16.mxu1 %v7251_v9 }
 0x464   :  { %5302 = vmatpush1.bf16.msra.mxu0 %v7246_v11  ;;  %5384 = vmatpush1.bf16.msra.mxu1 %v7249_v13 }
 0x465   :  { %5303 = vmatprep.subr.bf16.mxu0 %v7254_v15  ;;  %5385 = vmatprep.subr.bf16.mxu1 %v7257_v12 }
 0x468   :  { %5304 = vmatpush1.bf16.msra.mxu0 %v7252_v10  ;;  %5386 = vmatpush1.bf16.msra.mxu1 %v7255_v14 }
 0x469   :  { %5314 = vmatprep.subr.bf16.mxu0 %v7260_v25  ;;  %5396 = vmatprep.subr.bf16.mxu1 %v7263_v24 }
 0x4fe   :  { %v7800_v18 = vpop.f32.mrb[8].mxu0  ;;  %v7802_v19 = vpop.f32.mrb[8].mxu1 }
 0x4ff   :  { %v4293_v6 = vrot.slane %v7800_v18, 4  ;;  %v4321_v16 = vmul.f32 %v7800_v18, %v7800_v18  ;;  %v4305_v17 = vrot.slane %v7802_v19, 4  ;;  %v4323_v20 = vmul.f32 %v7802_v19, %v7802_v19  ;;  %v7810_v21 = vpop.f32.mrb[9].mxu0  ;;  %v7812_v22 = vpop.f32.mrb[9].mxu1 }
 0x500   :  { %v4299_v23 = vrot.slane %v7810_v21, 4  ;;  %v4322_v26 = vmul.f32 %v7810_v21, %v7810_v21  ;;  %v4311_v27 = vrot.slane %v7812_v22, 4  ;;  %v4324_v28 = vmul.f32 %v7812_v22, %v7812_v22  ;;  %v4208_v29 = vpop.f32.mrb[10].mxu0  ;;  %v4290_v30 = vpop.f32.mrb[10].mxu1 }
 0x501   :  { %v4294_v31 = vadd.f32 %v4293_v6, %v7800_v18  ;;  %v4325_v32 = vrot.slane %v4321_v16, 4  ;;  %v4306_v33 = vadd.f32 %v4305_v17, %v7802_v19  ;;  %v4337_v34 = vrot.slane %v4323_v20, 4  ;;  %v4209_v35 = vpop.f32.mrb[11].mxu0  ;;  %v4291_v37 = vpop.f32.mrb[11].mxu1 }
 0x502   :  { %v4300_v38 = vadd.f32 %v4299_v23, %v7810_v21  ;;  %v4331_v39 = vrot.slane %v4322_v26, 4  ;;  %v4312_v40 = vadd.f32 %v4311_v27, %v7812_v22  ;;  %v4343_v41 = vrot.slane %v4324_v28, 4 }
 0x503   :  { %v4295_v42 = vrot.slane %v4294_v31, 2  ;;  %v4326_v43 = vadd.f32 %v4325_v32, %v4321_v16  ;;  %v4307_v44 = vrot.slane %v4306_v33, 2  ;;  %v4338_v46 = vadd.f32 %v4337_v34, %v4323_v20 }
 0x504   :  { %v4301_v59 = vrot.slane %v4300_v38, 2  ;;  %v4332_v55 = vadd.f32 %v4331_v39, %v4322_v26  ;;  %v4313_v49 = vrot.slane %v4312_v40, 2  ;;  %v4344_v50 = vadd.f32 %v4343_v41, %v4324_v28 }
 0x505   :  { %v4296_v47 = vadd.f32 %v4295_v42, %v4294_v31  ;;  %v4327_v48 = vrot.slane %v4326_v43, 2  ;;  %v4308_v36 = vadd.f32 %v4307_v44, %v4306_v33  ;;  %v4339_v51 = vrot.slane %v4338_v46, 2 }
 0x506   :  { %v4302_v52 = vadd.f32 %v4301_v59, %v4300_v38  ;;  %v4333_v53 = vrot.slane %v4332_v55, 2  ;;  %v4314_v60 = vadd.f32 %v4313_v49, %v4312_v40  ;;  %v4345_v61 = vrot.slane %v4344_v50, 2 }
 0x507   :  { %v4297_v62 = vrot.slane %v4296_v47, 1  ;;  %v4328_v63 = vadd.f32 %v4327_v48, %v4326_v43  ;;  %v4309_v0 = vrot.slane %v4308_v36, 1  ;;  %v4340_v1 = vadd.f32 %v4339_v51, %v4338_v46 }
 0x508   :  { %v4303_v2 = vrot.slane %v4302_v52, 1  ;;  %v4334_v3 = vadd.f32 %v4333_v53, %v4332_v55  ;;  %v4315_v4 = vrot.slane %v4314_v60, 1  ;;  %v4346_v5 = vadd.f32 %v4345_v61, %v4344_v50 }
 0x509   :  { %v4298_v7 = vadd.f32 %v4297_v62, %v4296_v47  ;;  %v4329_v8 = vrot.slane %v4328_v63, 1  ;;  %v4310_v9 = vadd.f32 %v4309_v0, %v4308_v36  ;;  %v4341_v11 = vrot.slane %v4340_v1, 1  ;;  %v6204_v36 = vld [vmem:[%s7913_s6 + $0x2] ss:$4 sm:$0xf] }
 0x50a   :  { %v4304_v13 = vadd.f32 %v4303_v2, %v4302_v52  ;;  %v4335_v15 = vrot.slane %v4334_v3, 1  ;;  %v4316_v10 = vadd.f32 %v4315_v4, %v4314_v60  ;;  %v4347_v12 = vrot.slane %v4346_v5, 1 }
 0x50b   :  { %v4317_v14 = vmul.f32 0.125, %v4298_v7  ;;  %v4330_v25 = vadd.f32 %v4329_v8, %v4328_v63  ;;  %v4319_v24 = vmul.f32 0.125, %v4310_v9  ;;  %v4342_v6 = vadd.f32 %v4341_v11, %v4340_v1 }
 0x50c   :  { %v4318_v16 = vmul.f32 0.125, %v4304_v13  ;;  %v4336_v17 = vadd.f32 %v4335_v15, %v4334_v3  ;;  %v4320_v20 = vmul.f32 0.125, %v4316_v10  ;;  %v4348_v23 = vadd.f32 %v4347_v12, %v4346_v5  ;;  %v4402_v10 = vld [vmem:[#allocation12 + $0x2] ss:$4 sm:$0xf] }
 0x50d   :  { %v4349_v26 = vmul.f32 0.125, %v4330_v25  ;;  %v4353_v27 = vmul.f32 %v4317_v14, %v4317_v14  ;;  %v4351_v28 = vmul.f32 0.125, %v4342_v6  ;;  %v4355_v29 = vmul.f32 %v4319_v24, %v4319_v24 }
 0x50e   :  { %v4350_v30 = vmul.f32 0.125, %v4336_v17  ;;  %v4354_v31 = vmul.f32 %v4318_v16, %v4318_v16  ;;  %v4352_v32 = vmul.f32 0.125, %v4348_v23  ;;  %v4356_v33 = vmul.f32 %v4320_v20, %v4320_v20 }
 0x50f   :  { %v4357_v34 = vsub.f32 %v4349_v26, %v4353_v27  ;;  %v4359_v35 = vsub.f32 %v4351_v28, %v4355_v29  ;;  %v4492_v25 = vstv %s6205_s2 }
 0x510   :  { %v4358_v37 = vsub.f32 %v4350_v30, %v4354_v31  ;;  %v4360_v38 = vsub.f32 %v4352_v32, %v4356_v33  ;;  %v7258_v31 = vld [vmem:[#allocation11 + $0x200] ss:$16 sps:$4 sm:$0xff]   ;;  %v7261_v32 = vld [vmem:[#allocation11 + $0x208] ss:$16 sps:$4 sm:$0xff]  }
 0x511   :  { %v4363_v39 = vadd.f32 1e-05, %v4357_v34  ;;  %v4365_v40 = vadd.f32 1e-05, %v4359_v35 }
 0x512   :  { %v4364_v41 = vadd.f32 1e-05, %v4358_v37  ;;  %v4366_v42 = vadd.f32 1e-05, %v4360_v38  ;;  %v7266_v37 = vld [vmem:[#allocation11 + $0x224] ss:$16 sps:$4 sm:$0xff]  }
 0x513   :  { %7370 = vrsqrt.f32 %v4363_v39  ;;  %v7269_v38 = vld [vmem:[#allocation11 + $0x22c] ss:$16 sps:$4 sm:$0xff]  }
 0x514   :  { %7372 = vrsqrt.f32 %v4365_v40  ;;  %v7264_v40 = vld [vmem:[#allocation11 + $0x220] ss:$16 sps:$4 sm:$0xff]  }
 0x515   :  { %7374 = vrsqrt.f32 %v4364_v41  ;;  %v7267_v41 = vld [vmem:[#allocation11 + $0x228] ss:$16 sps:$4 sm:$0xff]  }
 0x516   :  { %7376 = vrsqrt.f32 %v4366_v42  ;;  %v7272_v42 = vld [vmem:[#allocation11 + $0x244] ss:$16 sps:$4 sm:$0xff]  }
 0x51d   :  { %v7371_v43 = vpop.eup %7370 }
 0x51e   :  { %v7373_v44 = vpop.eup %7372 }
 0x51f   :  { %v7375_v46 = vpop.eup %7374 }
 0x520   :  { %v7377_v59 = vpop.eup %7376  ;;  %v4375_v55 = vcombine.low %v7371_v43, %v7375_v46  ;;  %v7275_v43 = vld [vmem:[#allocation11 + $0x24c] ss:$16 sps:$4 sm:$0xff]   ;;  %v7273_v46 = vld [vmem:[#allocation11 + $0x248] ss:$16 sps:$4 sm:$0xff]  }
 0x521   :  { %v4376_v49 = vcombine.low %v7373_v44, %v7377_v59  ;;  %v7270_v44 = vld [vmem:[#allocation11 + $0x240] ss:$16 sps:$4 sm:$0xff]   ;;  %v7278_v59 = vld [vmem:[#allocation11 + $0x264] ss:$16 sps:$4 sm:$0xff]  }
 0x522   :  { %v4383_v50 = vrot.slane %v4375_v55, %v7716_v45  ;;  %v7281_v55 = vld [vmem:[#allocation11 + $0x26c] ss:$16 sps:$4 sm:$0xff]  }
 0x523   :  { %v4390_v47 = vrot.slane %v4376_v49, %v7716_v45  ;;  %v7276_v49 = vld [vmem:[#allocation11 + $0x260] ss:$16 sps:$4 sm:$0xff]  }
 0x525   :  { %v4391_v48 = vcombine.low %v4383_v50, %v4390_v47  ;;  %v7279_v50 = vld [vmem:[#allocation11 + $0x268] ss:$16 sps:$4 sm:$0xff]   ;;  %v7284_v47 = vld [vmem:[#allocation11 + $0x284] ss:$16 sps:$4 sm:$0xff]  }
 0x527   :  { %v4398_v51 = vrot.slane %v4391_v48, %v7716_v45  ;;  %v7287_v48 = vld [vmem:[#allocation11 + $0x28c] ss:$16 sps:$4 sm:$0xff]  }
 0x529   :  { %v4400_v52 = vmul.f32 %v6204_v36, %v4398_v51  ;;  %v7282_v36 = vld [vmem:[#allocation11 + $0x280] ss:$16 sps:$4 sm:$0xff]   ;;  %v7285_v51 = vld [vmem:[#allocation11 + $0x288] ss:$16 sps:$4 sm:$0xff]  }
 0x52b   :  { %v4407_v53 = vrot.slane %v4400_v52, %v7723_v54  ;;  %v4411_v60 = vrot.slane %v4400_v52, %v7726_v56  ;;  %v4415_v61 = vrot.slane %v4400_v52, %v7728_v57  ;;  %v4419_v62 = vrot.slane %v4400_v52, %v7730_v58  ;;  %v7290_v52 = vld [vmem:[#allocation11 + $0x2a4] ss:$16 sps:$4 sm:$0xff]  }
 0x52d   :  { %v4424_v63 = vmul.f32 %v4407_v53, %v4317_v14  ;;  %v4425_v0 = vmul.f32 %v4411_v60, %v4318_v16  ;;  %v4426_v1 = vmul.f32 %v4415_v61, %v4319_v24  ;;  %v4427_v2 = vmul.f32 %v4419_v62, %v4320_v20 }
 0x52e   :  { %v4461_v3 = vmul.f32 %v4419_v62, %v7812_v22  ;;  %v4459_v4 = vmul.f32 %v4411_v60, %v7810_v21  ;;  %v4458_v5 = vmul.f32 %v4407_v53, %v7800_v18  ;;  %v4460_v7 = vmul.f32 %v4415_v61, %v7802_v19  ;;  %v7293_v53 = vld [vmem:[#allocation11 + $0x2ac] ss:$16 sps:$4 sm:$0xff]   ;;  %v7288_v60 = vld [vmem:[#allocation11 + $0x2a0] ss:$16 sps:$4 sm:$0xff]   ;;  %v7291_v61 = vld [vmem:[#allocation11 + $0x2a8] ss:$16 sps:$4 sm:$0xff]  }
 0x52f   :  { %v4432_v8 = vcombine.low %v4424_v63, %v4425_v0  ;;  %v4433_v9 = vcombine.low %v4426_v1, %v4427_v2  ;;  %v7296_v62 = vld [vmem:[#allocation11 + $0x2c4] ss:$16 sps:$4 sm:$0xff]   ;;  %v7299_v63 = vld [vmem:[#allocation11 + $0x2cc] ss:$16 sps:$4 sm:$0xff]   ;;  %v7294_v0 = vld [vmem:[#allocation11 + $0x2c0] ss:$16 sps:$4 sm:$0xff]  }
 0x530   :  { %v7297_v1 = vld [vmem:[#allocation11 + $0x2c8] ss:$16 sps:$4 sm:$0xff]   ;;  %v7302_v2 = vld [vmem:[#allocation11 + $0x2e4] ss:$16 sps:$4 sm:$0xff]  }
 0x531   :  { %v4440_v11 = vrot.slane %v4432_v8, %v7716_v45  ;;  %v4447_v13 = vrot.slane %v4433_v9, %v7716_v45  ;;  %v7311_v8 = vld [vmem:[#allocation11 + $0x30c] ss:$16 sps:$4 sm:$0xff]   ;;  %v7306_v9 = vld [vmem:[#allocation11 + $0x300] ss:$16 sps:$4 sm:$0xff]  }
 0x533   :  { %v4448_v15 = vcombine.low %v4440_v11, %v4447_v13  ;;  %v7309_v11 = vld [vmem:[#allocation11 + $0x308] ss:$16 sps:$4 sm:$0xff]   ;;  %v7314_v13 = vld [vmem:[#allocation11 + $0x324] ss:$16 sps:$4 sm:$0xff]  }
 0x535   :  { %v4455_v12 = vrot.slane %v4448_v15, %v7716_v45  ;;  %v7317_v15 = vld [vmem:[#allocation11 + $0x32c] ss:$16 sps:$4 sm:$0xff]  }
 0x537   :  { %v4457_v14 = vsub.f32 %v4402_v10, %v4455_v12  ;;  %v7312_v10 = vld [vmem:[#allocation11 + $0x320] ss:$16 sps:$4 sm:$0xff]   ;;  %v7315_v12 = vld [vmem:[#allocation11 + $0x328] ss:$16 sps:$4 sm:$0xff]  }
 0x539   :  { %v4478_v22 = vrot.slane %v4457_v14, %v7730_v58  ;;  %v4470_v21 = vrot.slane %v4457_v14, %v7726_v56  ;;  %v4466_v18 = vrot.slane %v4457_v14, %v7723_v54  ;;  %v4474_v19 = vrot.slane %v4457_v14, %v7728_v57  ;;  %v7320_v14 = vld [vmem:[#allocation11 + $0x344] ss:$16 sps:$4 sm:$0xff]  }
 0x53b   :  { %v4486_v24 = vadd.f32 %v4478_v22, %v4461_v3  ;;  %v4484_v6 = vadd.f32 %v4470_v21, %v4459_v4  ;;  %v4483_v16 = vadd.f32 %v4466_v18, %v4458_v5  ;;  %v4485_v17 = vadd.f32 %v4474_v19, %v4460_v7  ;;  %v7305_v3 = vld [vmem:[#allocation11 + $0x2ec] ss:$16 sps:$4 sm:$0xff]   ;;  %v7300_v4 = vld [vmem:[#allocation11 + $0x2e0] ss:$16 sps:$4 sm:$0xff]   ;;  %v7303_v5 = vld [vmem:[#allocation11 + $0x2e8] ss:$16 sps:$4 sm:$0xff]  }
 0x53c   :  { %v7308_v7 = vld [vmem:[#allocation11 + $0x304] ss:$16 sps:$4 sm:$0xff]   ;;  %v7323_v22 = vld [vmem:[#allocation11 + $0x34c] ss:$16 sps:$4 sm:$0xff]   ;;  %v7318_v21 = vld [vmem:[#allocation11 + $0x340] ss:$16 sps:$4 sm:$0xff]  }
 0x53d   :  { %vm4489_vm8 = vcmp.ge.f32.partialorder %v4484_v6, 0.0  ;;  %v4494_v20 = vmul.f32 %v4492_v25, %v4484_v6  ;;  %vm4488_vm9 = vcmp.ge.f32.partialorder %v4483_v16, 0.0  ;;  %v4493_v23 = vmul.f32 %v4492_v25, %v4483_v16  ;;  %v7321_v18 = vld [vmem:[#allocation11 + $0x348] ss:$16 sps:$4 sm:$0xff]   ;;  %v7326_v19 = vld [vmem:[#allocation11 + $0x364] ss:$16 sps:$4 sm:$0xff]  }
 0x53e   :  { %vm4491_vm10 = vcmp.ge.f32.partialorder %v4486_v24, 0.0  ;;  %v4496_v26 = vmul.f32 %v4492_v25, %v4486_v24  ;;  %vm4490_vm11 = vcmp.ge.f32.partialorder %v4485_v17, 0.0  ;;  %v4495_v27 = vmul.f32 %v4492_v25, %v4485_v17  ;;  %v7329_v25 = vld [vmem:[#allocation11 + $0x36c] ss:$16 sps:$4 sm:$0xff]  }
 0x53f   :  { %v4498_v28 = vsel %vm4489_vm8, %v4484_v6, %v4494_v20  ;;  %v4497_v29 = vsel %vm4488_vm9, %v4483_v16, %v4493_v23  ;;  %v7327_v6 = vld [vmem:[#allocation11 + $0x368] ss:$16 sps:$4 sm:$0xff]   ;;  %v7332_v16 = vld [vmem:[#allocation11 + $0x384] ss:$16 sps:$4 sm:$0xff]   ;;  %v7330_v20 = vld [vmem:[#allocation11 + $0x380] ss:$16 sps:$4 sm:$0xff]  }
 0x540   :  { %v4502_v30 = vpack.c.bf16 %v4498_v28, %v4498_v28  ;;  %v4501_v33 = vpack.c.bf16 %v4497_v29, %v4497_v29  ;;  %v4500_v34 = vsel %vm4491_vm10, %v4486_v24, %v4496_v26  ;;  %v7845_v35 = vsel %vm4490_vm11, %v4485_v17, %v4495_v27  ;;  %v7324_v24 = vld [vmem:[#allocation11 + $0x360] ss:$16 sps:$4 sm:$0xff]   ;;  %v7335_v17 = vld [vmem:[#allocation11 + $0x38c] ss:$16 sps:$4 sm:$0xff]   ;;  %v7333_v23 = vld [vmem:[#allocation11 + $0x388] ss:$16 sps:$4 sm:$0xff]  }
 0x541   :  { %v4504_v39 = vpack.c.bf16 %v4500_v34, %v4500_v34  ;;  %v7338_v26 = vld [vmem:[#allocation11 + $0x3a4] ss:$16 sps:$4 sm:$0xff]   ;;  %v7341_v27 = vld [vmem:[#allocation11 + $0x3ac] ss:$16 sps:$4 sm:$0xff]   ;;  %v7336_v28 = vld [vmem:[#allocation11 + $0x3a0] ss:$16 sps:$4 sm:$0xff]  }
 0x542   :  { %5305 = vmatprep.mubr.bf16.mxu0 %v4502_v30  ;;  %5387 = vmatprep.mubr.bf16.mxu1 %v4502_v30  ;;  %v7339_v29 = vld [vmem:[#allocation11 + $0x3a8] ss:$16 sps:$4 sm:$0xff]   ;;  %v7344_v30 = vld [vmem:[#allocation11 + $0x3c4] ss:$16 sps:$4 sm:$0xff]  }
 0x543   :  { %5306 = vmatmul.mubr.bf16.vlgmr.msra.gmra.mrb[12].mxu0 %v4501_v33  ;;  %5388 = vmatmul.mubr.bf16.vlgmr.msra.gmra.mrb[12].mxu1 %v4501_v33  ;;  %v7345_v33 = vld [vmem:[#allocation11 + $0x3c8] ss:$16 sps:$4 sm:$0xff]   ;;  %v7350_v34 = vld [vmem:[#allocation11 + $0x3e4] ss:$16 sps:$4 sm:$0xff]  }
 0x544   :  { %5315 = vmatpush1.bf16.msra.mxu0 %v7258_v31  ;;  %5397 = vmatpush1.bf16.msra.mxu1 %v7261_v32  ;;  %v7347_v31 = vld [vmem:[#allocation11 + $0x3cc] ss:$16 sps:$4 sm:$0xff]   ;;  %v7342_v32 = vld [vmem:[#allocation11 + $0x3c0] ss:$16 sps:$4 sm:$0xff]  }
 0x545   :  { %5346 = vmatprep.mubr.bf16.mxu0 %v4504_v39  ;;  %5428 = vmatprep.mubr.bf16.mxu1 %v4504_v39  ;;  %v7351_v39 = vld [vmem:[#allocation11 + $0x3e8] ss:$16 sps:$4 sm:$0xff]  }
 0x546   :  { %5316 = vmatprep.subr.bf16.mxu0 %v7266_v37  ;;  %5398 = vmatprep.subr.bf16.mxu1 %v7269_v38  ;;  %v7353_v37 = vld [vmem:[#allocation11 + $0x3ec] ss:$16 sps:$4 sm:$0xff]   ;;  %v7348_v38 = vld [vmem:[#allocation11 + $0x3e0] ss:$16 sps:$4 sm:$0xff]  }
 0x548   :  { %5317 = vmatpush1.bf16.msra.mxu0 %v7264_v40  ;;  %5399 = vmatpush1.bf16.msra.mxu1 %v7267_v41  ;;  %v4503_v40 = vpack.c.bf16 %v7845_v35, %v7845_v35 }
 0x549   :  { %5318 = vmatprep.subr.bf16.mxu0 %v7272_v42  ;;  %5400 = vmatprep.subr.bf16.mxu1 %v7275_v43 }
 0x54c   :  { %5319 = vmatpush1.bf16.msra.mxu0 %v7270_v44  ;;  %5401 = vmatpush1.bf16.msra.mxu1 %v7273_v46 }
 0x54d   :  { %5320 = vmatprep.subr.bf16.mxu0 %v7278_v59  ;;  %5402 = vmatprep.subr.bf16.mxu1 %v7281_v55 }
 0x550   :  { %5321 = vmatpush1.bf16.msra.mxu0 %v7276_v49  ;;  %5403 = vmatpush1.bf16.msra.mxu1 %v7279_v50 }
 0x551   :  { %5322 = vmatprep.subr.bf16.mxu0 %v7284_v47  ;;  %5404 = vmatprep.subr.bf16.mxu1 %v7287_v48 }
 0x554   :  { %5323 = vmatpush1.bf16.msra.mxu0 %v7282_v36  ;;  %5405 = vmatpush1.bf16.msra.mxu1 %v7285_v51 }
 0x555   :  { %5324 = vmatprep.subr.bf16.mxu0 %v7290_v52  ;;  %5406 = vmatprep.subr.bf16.mxu1 %v7293_v53 }
 0x558   :  { %5325 = vmatpush1.bf16.msra.mxu0 %v7288_v60  ;;  %5407 = vmatpush1.bf16.msra.mxu1 %v7291_v61 }
 0x559   :  { %5326 = vmatprep.subr.bf16.mxu0 %v7296_v62  ;;  %5408 = vmatprep.subr.bf16.mxu1 %v7299_v63 }
 0x55c   :  { %5327 = vmatpush1.bf16.msra.mxu0 %v7294_v0  ;;  %5409 = vmatpush1.bf16.msra.mxu1 %v7297_v1 }
 0x55d   :  { %5328 = vmatprep.subr.bf16.mxu0 %v7302_v2  ;;  %5410 = vmatprep.subr.bf16.mxu1 %v7305_v3 }
 0x560   :  { %5329 = vmatpush1.bf16.msra.mxu0 %v7300_v4  ;;  %5411 = vmatpush1.bf16.msra.mxu1 %v7303_v5 }
 0x561   :  { %5330 = vmatprep.subr.bf16.mxu0 %v7308_v7  ;;  %5412 = vmatprep.subr.bf16.mxu1 %v7311_v8 }
 0x564   :  { %5331 = vmatpush1.bf16.msra.mxu0 %v7306_v9  ;;  %5413 = vmatpush1.bf16.msra.mxu1 %v7309_v11 }
 0x565   :  { %5332 = vmatprep.subr.bf16.mxu0 %v7314_v13  ;;  %5414 = vmatprep.subr.bf16.mxu1 %v7317_v15 }
 0x568   :  { %5333 = vmatpush1.bf16.msra.mxu0 %v7312_v10  ;;  %5415 = vmatpush1.bf16.msra.mxu1 %v7315_v12 }
 0x569   :  { %5334 = vmatprep.subr.bf16.mxu0 %v7320_v14  ;;  %5416 = vmatprep.subr.bf16.mxu1 %v7323_v22 }
 0x56c   :  { %5335 = vmatpush1.bf16.msra.mxu0 %v7318_v21  ;;  %5417 = vmatpush1.bf16.msra.mxu1 %v7321_v18 }
 0x56d   :  { %5336 = vmatprep.subr.bf16.mxu0 %v7326_v19  ;;  %5418 = vmatprep.subr.bf16.mxu1 %v7329_v25 }
 0x570   :  { %5337 = vmatpush1.bf16.msra.mxu0 %v7324_v24  ;;  %5419 = vmatpush1.bf16.msra.mxu1 %v7327_v6 }
 0x571   :  { %5338 = vmatprep.subr.bf16.mxu0 %v7332_v16  ;;  %5420 = vmatprep.subr.bf16.mxu1 %v7335_v17 }
 0x574   :  { %5339 = vmatpush1.bf16.msra.mxu0 %v7330_v20  ;;  %5421 = vmatpush1.bf16.msra.mxu1 %v7333_v23 }
 0x575   :  { %5340 = vmatprep.subr.bf16.mxu0 %v7338_v26  ;;  %5422 = vmatprep.subr.bf16.mxu1 %v7341_v27 }
 0x578   :  { %5341 = vmatpush1.bf16.msra.mxu0 %v7336_v28  ;;  %5423 = vmatpush1.bf16.msra.mxu1 %v7339_v29 }
 0x579   :  { %5342 = vmatprep.subr.bf16.mxu0 %v7344_v30  ;;  %5424 = vmatprep.subr.bf16.mxu1 %v7347_v31 }
 0x57c   :  { %5343 = vmatpush1.bf16.msra.mxu0 %v7342_v32  ;;  %5425 = vmatpush1.bf16.msra.mxu1 %v7345_v33 }
 0x57d   :  { %5344 = vmatprep.subr.bf16.mxu0 %v7350_v34  ;;  %5426 = vmatprep.subr.bf16.mxu1 %v7353_v37 }
 0x580   :  { %5345 = vmatpush1.bf16.msra.mxu0 %v7348_v38  ;;  %5427 = vmatpush1.bf16.msra.mxu1 %v7351_v39 }
 0x583   :  { %5347 = vmatmul.mubr.bf16.vlgmr.msra.gmra.mrb[12].mxu0 %v4503_v40  ;;  %5429 = vmatmul.mubr.bf16.vlgmr.msra.gmra.mrb[12].mxu1 %v4503_v40 }
 0x656   :  { %v7849_v41 = vpop.f32.mrb[12].mxu0  ;;  %v7851_v42 = vpop.f32.mrb[12].mxu1 }
 0x657   :  { %v5437_v43 = vrot.slane %v7849_v41, 4  ;;  %v5465_v44 = vmul.f32 %v7849_v41, %v7849_v41  ;;  %v5449_v46 = vrot.slane %v7851_v42, 4  ;;  %v5467_v59 = vmul.f32 %v7851_v42, %v7851_v42  ;;  %v7859_v55 = vpop.f32.mrb[13].mxu0  ;;  %v7861_v49 = vpop.f32.mrb[13].mxu1 }
 0x658   :  { %v5443_v35 = vrot.slane %v7859_v55, 4  ;;  %v5466_v50 = vmul.f32 %v7859_v55, %v7859_v55  ;;  %v5455_v47 = vrot.slane %v7861_v49, 4  ;;  %v5468_v48 = vmul.f32 %v7861_v49, %v7861_v49  ;;  %v5352_v36 = vpop.f32.mrb[14].mxu0  ;;  %v5434_v51 = vpop.f32.mrb[14].mxu1 }
 0x659   :  { %v5438_v52 = vadd.f32 %v5437_v43, %v7849_v41  ;;  %v5469_v53 = vrot.slane %v5465_v44, 4  ;;  %v5450_v60 = vadd.f32 %v5449_v46, %v7851_v42  ;;  %v5481_v61 = vrot.slane %v5467_v59, 4  ;;  %v5353_v62 = vpop.f32.mrb[15].mxu0  ;;  %v5435_v63 = vpop.f32.mrb[15].mxu1 }
 0x65a   :  { %v5444_v0 = vadd.f32 %v5443_v35, %v7859_v55  ;;  %v5475_v1 = vrot.slane %v5466_v50, 4  ;;  %v5456_v2 = vadd.f32 %v5455_v47, %v7861_v49  ;;  %v5487_v3 = vrot.slane %v5468_v48, 4 }
 0x65b   :  { %v5439_v4 = vrot.slane %v5438_v52, 2  ;;  %v5470_v5 = vadd.f32 %v5469_v53, %v5465_v44  ;;  %v5451_v7 = vrot.slane %v5450_v60, 2  ;;  %v5482_v8 = vadd.f32 %v5481_v61, %v5467_v59 }
 0x65c   :  { %v5445_v9 = vrot.slane %v5444_v0, 2  ;;  %v5476_v11 = vadd.f32 %v5475_v1, %v5466_v50  ;;  %v5457_v13 = vrot.slane %v5456_v2, 2  ;;  %v5488_v15 = vadd.f32 %v5487_v3, %v5468_v48 }
 0x65d   :  { %v5440_v10 = vadd.f32 %v5439_v4, %v5438_v52  ;;  %v5471_v12 = vrot.slane %v5470_v5, 2  ;;  %v5452_v14 = vadd.f32 %v5451_v7, %v5450_v60  ;;  %v5483_v22 = vrot.slane %v5482_v8, 2 }
 0x65e   :  { %v5446_v21 = vadd.f32 %v5445_v9, %v5444_v0  ;;  %v5477_v18 = vrot.slane %v5476_v11, 2  ;;  %v5458_v19 = vadd.f32 %v5457_v13, %v5456_v2  ;;  %v5489_v25 = vrot.slane %v5488_v15, 2 }
 0x65f   :  { %v5441_v24 = vrot.slane %v5440_v10, 1  ;;  %v5472_v6 = vadd.f32 %v5471_v12, %v5470_v5  ;;  %v5453_v16 = vrot.slane %v5452_v14, 1  ;;  %v5484_v17 = vadd.f32 %v5483_v22, %v5482_v8 }
 0x660   :  { %v5447_v20 = vrot.slane %v5446_v21, 1  ;;  %v5478_v23 = vadd.f32 %v5477_v18, %v5476_v11  ;;  %v5459_v26 = vrot.slane %v5458_v19, 1  ;;  %v5490_v27 = vadd.f32 %v5489_v25, %v5488_v15 }
 0x661   :  { %v5442_v28 = vadd.f32 %v5441_v24, %v5440_v10  ;;  %v5473_v29 = vrot.slane %v5472_v6, 1  ;;  %v5454_v30 = vadd.f32 %v5453_v16, %v5452_v14  ;;  %v5485_v31 = vrot.slane %v5484_v17, 1  ;;  %v6334_v14 = vld [vmem:[%s7913_s6 + $0x3] ss:$4 sm:$0xf]  ;;  %s6335_s6 = sld [smem:[#allocation14 + $0x3]] }
 0x662   :  { %v5448_v32 = vadd.f32 %v5447_v20, %v5446_v21  ;;  %v5479_v33 = vrot.slane %v5478_v23, 1  ;;  %v5460_v34 = vadd.f32 %v5459_v26, %v5458_v19  ;;  %v5491_v37 = vrot.slane %v5490_v27, 1 }
 0x663   :  { %v5461_v38 = vmul.f32 0.125, %v5442_v28  ;;  %v5474_v39 = vadd.f32 %v5473_v29, %v5472_v6  ;;  %v5463_v40 = vmul.f32 0.125, %v5454_v30  ;;  %v5486_v43 = vadd.f32 %v5485_v31, %v5484_v17 }
 0x664   :  { %v5462_v44 = vmul.f32 0.125, %v5448_v32  ;;  %v5480_v46 = vadd.f32 %v5479_v33, %v5478_v23  ;;  %v5464_v59 = vmul.f32 0.125, %v5460_v34  ;;  %v5492_v35 = vadd.f32 %v5491_v37, %v5490_v27  ;;  %v5546_v34 = vld [vmem:[#allocation12 + $0x3] ss:$4 sm:$0xf] }
 0x665   :  { %v5493_v50 = vmul.f32 0.125, %v5474_v39  ;;  %v5497_v47 = vmul.f32 %v5461_v38, %v5461_v38  ;;  %v5495_v48 = vmul.f32 0.125, %v5486_v43  ;;  %v5499_v36 = vmul.f32 %v5463_v40, %v5463_v40  ;;  %v5645_v39 = vld [vmem:[%s7912_s5] sm:$0xf] }
 0x666   :  { %v5494_v51 = vmul.f32 0.125, %v5480_v46  ;;  %v5498_v52 = vmul.f32 %v5462_v44, %v5462_v44  ;;  %v5496_v53 = vmul.f32 0.125, %v5492_v35  ;;  %v5500_v60 = vmul.f32 %v5464_v59, %v5464_v59 }
 0x667   :  { %v5501_v61 = vsub.f32 %v5493_v50, %v5497_v47  ;;  %v5503_v62 = vsub.f32 %v5495_v48, %v5499_v36  ;;  %v5654_v35 = vrot.slane %v5645_v39, %v7726_v56 }
 0x668   :  { %v5502_v63 = vsub.f32 %v5494_v51, %v5498_v52  ;;  %v5504_v0 = vsub.f32 %v5496_v53, %v5500_v60  ;;  %v5658_v51 = vrot.slane %v5645_v39, %v7728_v57 }
 0x669   :  { %v5507_v1 = vadd.f32 1e-05, %v5501_v61  ;;  %v5509_v2 = vadd.f32 1e-05, %v5503_v62  ;;  %v5662_v61 = vrot.slane %v5645_v39, %v7730_v58 }
 0x66a   :  { %v5508_v3 = vadd.f32 1e-05, %v5502_v63  ;;  %v5510_v4 = vadd.f32 1e-05, %v5504_v0 }
 0x66b   :  { %7378 = vrsqrt.f32 %v5507_v1 }
 0x66c   :  { %7380 = vrsqrt.f32 %v5509_v2 }
 0x66d   :  { %7382 = vrsqrt.f32 %v5508_v3 }
 0x66e   :  { %7384 = vrsqrt.f32 %v5510_v4  ;;  %v5677_v4 = vstv %s7916_s9 }
 0x675   :  { %v7379_v5 = vpop.eup %7378 }
 0x676   :  { %v7381_v7 = vpop.eup %7380 }
 0x677   :  { %v7383_v8 = vpop.eup %7382 }
 0x678   :  { %v7385_v9 = vpop.eup %7384  ;;  %v5519_v11 = vcombine.low %v7379_v5, %v7383_v8 }
 0x679   :  { %v5520_v13 = vcombine.low %v7381_v7, %v7385_v9 }
 0x67a   :  { %v5527_v15 = vrot.slane %v5519_v11, %v7716_v45 }
 0x67b   :  { %v5534_v10 = vrot.slane %v5520_v13, %v7716_v45 }
 0x67d   :  { %v5535_v12 = vcombine.low %v5527_v15, %v5534_v10 }
 0x67f   :  { %v5542_v22 = vrot.slane %v5535_v12, %v7716_v45 }
 0x681   :  { %v5544_v21 = vmul.f32 %v6334_v14, %v5542_v22 }
 0x683   :  { %v5559_v18 = vrot.slane %v5544_v21, %v7728_v57  ;;  %v5563_v19 = vrot.slane %v5544_v21, %v7730_v58  ;;  %v5551_v25 = vrot.slane %v5544_v21, %v7723_v54  ;;  %v5555_v24 = vrot.slane %v5544_v21, %v7726_v56 }
 0x685   :  { %v5570_v6 = vmul.f32 %v5559_v18, %v5463_v40  ;;  %v5571_v16 = vmul.f32 %v5563_v19, %v5464_v59  ;;  %v5605_v17 = vmul.f32 %v5563_v19, %v7861_v49  ;;  %v5568_v20 = vmul.f32 %v5551_v25, %v5461_v38 }
 0x686   :  { %v5569_v23 = vmul.f32 %v5555_v24, %v5462_v44  ;;  %v5602_v26 = vmul.f32 %v5551_v25, %v7849_v41  ;;  %v5603_v27 = vmul.f32 %v5555_v24, %v7859_v55  ;;  %v5604_v28 = vmul.f32 %v5559_v18, %v7851_v42 }
 0x687   :  { %v5577_v29 = vcombine.low %v5570_v6, %v5571_v16  ;;  %v5636_v40 = vstv %s6335_s6 }
 0x688   :  { %v5576_v30 = vcombine.low %v5568_v20, %v5569_v23 }
 0x689   :  { %v5591_v31 = vrot.slane %v5577_v29, %v7716_v45 }
 0x68a   :  { %v5584_v32 = vrot.slane %v5576_v30, %v7716_v45 }
 0x68c   :  { %v5592_v33 = vcombine.low %v5584_v32, %v5591_v31 }
 0x68e   :  { %v5599_v37 = vrot.slane %v5592_v33, %v7716_v45  ;;  %v5650_v45 = vrot.slane %v5645_v39, %v7723_v54 }
 0x690   :  { %v5601_v49 = vsub.f32 %v5546_v34, %v5599_v37 }
 0x692   :  { %v5610_v38 = vrot.slane %v5601_v49, %v7723_v54  ;;  %v5614_v41 = vrot.slane %v5601_v49, %v7726_v56  ;;  %v5618_v55 = vrot.slane %v5601_v49, %v7728_v57  ;;  %v5622_v42 = vrot.slane %v5601_v49, %v7730_v58 }
 0x694   :  { %v5627_v43 = vadd.f32 %v5610_v38, %v5602_v26  ;;  %v5628_v44 = vadd.f32 %v5614_v41, %v5603_v27  ;;  %v5629_v46 = vadd.f32 %v5618_v55, %v5604_v28  ;;  %v5630_v59 = vadd.f32 %v5622_v42, %v5605_v17 }
 0x696   :  { %vm5632_vm12 = vcmp.ge.f32.partialorder %v5627_v43, 0.0  ;;  %vm5633_vm13 = vcmp.ge.f32.partialorder %v5628_v44, 0.0  ;;  %vm5634_vm14 = vcmp.ge.f32.partialorder %v5629_v46, 0.0  ;;  %v5637_v50 = vmul.f32 %v5636_v40, %v5627_v43 }
 0x697   :  { %v5638_v47 = vmul.f32 %v5636_v40, %v5628_v44  ;;  %v5639_v48 = vmul.f32 %v5636_v40, %v5629_v46  ;;  %v5640_v36 = vmul.f32 %v5636_v40, %v5630_v59  ;;  %vm5635_vm15 = vcmp.ge.f32.partialorder %v5630_v59, 0.0 }
 0x698   :  { %v5641_v52 = vsel %vm5632_vm12, %v5627_v43, %v5637_v50 }
 0x699   :  { %v5642_v53 = vsel %vm5633_vm13, %v5628_v44, %v5638_v47  ;;  %v5643_v60 = vsel %vm5634_vm14, %v5629_v46, %v5639_v48  ;;  %v5667_v62 = vmul.f32 %v5650_v45, %v5641_v52  ;;  %v5644_v54 = vsel %vm5635_vm15, %v5630_v59, %v5640_v36 }
 0x69a   :  { %v5668_v63 = vmul.f32 %v5654_v35, %v5642_v53  ;;  %v5669_v0 = vmul.f32 %v5658_v51, %v5643_v60  ;;  %v5670_v2 = vmul.f32 %v5662_v61, %v5644_v54 }
 0x69c   :  { %v5671_v1 = vadd.f32 %v5668_v63, %v5667_v62 }
 0x69e   :  { %v5672_v3 = vadd.f32 %v5671_v1, %v5669_v0 }
 0x6a0   :  { %v5673_v56 = vadd.f32 %v5672_v3, %v5670_v2 }
 0x6a2   :  { %5674 = vadd.xlane.f32.xlu0 %v5673_v56 }
 0x72f   :  { %v5675_v5 = vpop.xlane.xlu0 %5674 }
 0x730   :  { %v5678_v57 = vadd.f32 %v5677_v4, %v5675_v5 }
 0x732   :  { %5680 = vst.msk [vmem:[%s7917_s10] sm:$0xff] %vm5679_vm0, %v5678_v57 }
 0x733   :  { %5685 = vsyncpa [#allocation4], 1 }
 0x734   :  { %5686 = vsyncpa [#allocation7], 1 }
 0x735   :  { %5687 = vsyncpa [#allocation10], 1 }
 0x736   :  { %5688 = vsyncpa [#allocation13], 1 }
 0x737   :  { %5689 = vsyncpa [#allocation5], 1 }

</bundles_post_ra>
